<compile_context>
chip_gen: v7x
topology: tpu7x:2x2x1
jax: 0.10.0
libtpu: 0.0.40
codegen_flags: <defaults>
</compile_context>

<pallas_src>
import functools
import math

import jax
import jax.numpy as jnp
from jax import lax
from jax.experimental import pallas as pl
from jax.experimental.pallas import tpu as pltpu

N_CAPS = 10
VEC_LEN = 16
D_IN = N_CAPS * VEC_LEN          # 160
HIDDEN = 512
D_OUT = 28 * 28                  # 784


def _decoder_kernel(x_ref, seg_ref, w1_ref, b1_ref, w2_ref, b2_ref, w3_ref,
                    b3_ref, recon_ref, y_ref, *, ncaps, vlen):
    tb, d_in = x_ref.shape
    xf = x_ref[...].astype(jnp.float32)                          # (tb, 160)

    # ---- capsule squared norms: tiny f32 segment-sum matmul (seg is a
    # precomputed resident 160x10 selector; keeps argmax path exact) --------
    sq = xf * xf
    norms_sq = jnp.dot(sq, seg_ref[...],
                       preferred_element_type=jnp.float32)       # (tb, 10)

    # ---- argmax (first max) -> one-hot y (sqrt/softmax are argmax-invariant)
    ids = lax.broadcasted_iota(jnp.int32, (tb, ncaps), 1).astype(jnp.float32)
    maxv = jnp.max(norms_sq, axis=-1, keepdims=True)
    cand = jnp.where(norms_sq >= maxv, ids, jnp.float32(ncaps))
    arg = jnp.min(cand, axis=-1, keepdims=True)                  # (tb, 1)
    y = (ids == arg).astype(y_ref.dtype)
    y_ref[...] = y

    # ---- mask flattened input: keep only the winning capsule's 16 dims -----
    col = lax.broadcasted_iota(jnp.int32, (tb, d_in), 1).astype(jnp.float32)
    lo = arg * vlen
    keep = jnp.logical_and(col >= lo, col < lo + vlen)
    xm = jnp.where(keep, xf, 0.0)

    # ---- dense decoder: bf16 operands, f32 accumulation, f32 biases --------
    h1 = jnp.dot(xm.astype(w1_ref.dtype), w1_ref[...],
                 preferred_element_type=jnp.float32) + b1_ref[...]
    h1 = jnp.maximum(h1, 0.0)
    h2 = jnp.dot(h1.astype(w2_ref.dtype), w2_ref[...],
                 preferred_element_type=jnp.float32) + b2_ref[...]
    h2 = jnp.maximum(h2, 0.0)
    logits = jnp.dot(h2.astype(w3_ref.dtype), w3_ref[...],
                     preferred_element_type=jnp.float32) + b3_ref[...]
    recon = pl.reciprocal(1.0 + jnp.exp(-logits), approx=True)   # sigmoid (EUP)
    recon_ref[...] = recon.astype(recon_ref.dtype)


def dense_decoder_forward(x, params, *, batch_tile=1024):
    """Pallas equivalent of DenseDecoder.forward. x: (B, 10, 16). Returns (recon, y)."""
    w1, b1, w2, b2, w3, b3 = params
    B = x.shape[0]
    x_flat = x.reshape(B, D_IN)            # contiguous view, no data movement

    # bf16 weights -> native MXU rate; biases stay f32 (added post-accumulation).
    w1b, w2b, w3b = (w.astype(jnp.bfloat16) for w in (w1, w2, w3))
    b1f, b2f, b3f = (b.astype(jnp.float32).reshape(1, -1) for b in (b1, b2, b3))

    # Precomputed 160x10 capsule segment-sum selector (f32: argmax path exact).
    seg = (jnp.arange(D_IN)[:, None] // VEC_LEN
           == jnp.arange(N_CAPS)[None, :]).astype(jnp.float32)

    # ---- batch tiling -------------------------------------------------------
    tb = min(batch_tile, B)
    if pl.cdiv(B, tb) < 2 and B >= 16:
        # Ensure >= 2 grid steps so v7x's two TensorCores both get work; keep
        # the tile sublane-aligned (multiple of 8).
        tb = ((B + 1) // 2 + 7) // 8 * 8
    grid = (pl.cdiv(B, tb),)

    # ---- VMEM budget: actual need + slack (v7x has only 64 MiB physical) ---
    resident_bytes = sum(int(a.size) * a.dtype.itemsize
                         for a in (seg, w1b, b1f, w2b, b2f, w3b, b3f))
    io_bytes = 2 * tb * (D_IN + D_OUT + 128) * 4      # double-buffered x/recon/y
    act_bytes = 2 * tb * (HIDDEN + 2 * HIDDEN + D_OUT) * 4   # h1/h2/logits + temps
    vmem_limit = int(min(max(resident_bytes + io_bytes + act_bytes + (8 << 20),
                             32 << 20),
                         100 << 20))

    resident = lambda i: (0, 0)            # weights stay VMEM-resident across tiles
    res_spec = lambda shape: pl.BlockSpec(shape, resident,
                                          pipeline_mode=pl.Buffered(1))
    kernel = functools.partial(_decoder_kernel, ncaps=N_CAPS, vlen=VEC_LEN)

    recon, y = pl.pallas_call(
        kernel,
        out_shape=(jax.ShapeDtypeStruct((B, D_OUT), x.dtype),
                   jax.ShapeDtypeStruct((B, N_CAPS), x.dtype)),
        grid=grid,
        in_specs=[
            pl.BlockSpec((tb, D_IN), lambda i: (i, 0)),
            res_spec(seg.shape),
            res_spec(w1b.shape), res_spec(b1f.shape),
            res_spec(w2b.shape), res_spec(b2f.shape),
            res_spec(w3b.shape), res_spec(b3f.shape),
        ],
        out_specs=(pl.BlockSpec((tb, D_OUT), lambda i: (i, 0)),
                   pl.BlockSpec((tb, N_CAPS), lambda i: (i, 0))),
        compiler_params=pltpu.CompilerParams(
            dimension_semantics=("parallel",),
            vmem_limit_bytes=vmem_limit),
    )(x_flat, seg, w1b, b1f, w2b, b2f, w3b, b3f)
    return recon, y


if __name__ == "__main__":
    key = jax.random.PRNGKey(0)
    kx, k1, k2, k3 = jax.random.split(key, 4)
    B = 2
    x = jax.random.normal(kx, (B, N_CAPS, VEC_LEN), dtype=jnp.float32)

    def _linear(k, fan_in, fan_out):
        kw, kb = jax.random.split(k)
        lim = 1.0 / math.sqrt(fan_in)
        w = jax.random.uniform(kw, (fan_in, fan_out), jnp.float32, -lim, lim)
        b = jax.random.uniform(kb, (1, fan_out), jnp.float32, -lim, lim)
        return w, b

    w1, b1 = _linear(k1, D_IN, HIDDEN)
    w2, b2 = _linear(k2, HIDDEN, 2 * HIDDEN)
    w3, b3 = _linear(k3, 2 * HIDDEN, D_OUT)
    params = (w1, b1, w2, b2, w3, b3)

    recon, y = jax.block_until_ready(dense_decoder_forward(x, params))

    # -------- plain-JAX f32 reference (mirrors the PyTorch forward) ---------
    classes = jnp.sqrt(jnp.sum(x ** 2, axis=-1))
    classes = jax.nn.softmax(classes, axis=-1)
    idx = jnp.argmax(classes, axis=1)
    y_ref = jax.nn.one_hot(idx, N_CAPS, dtype=x.dtype)
    xm = (x * y_ref[:, :, None]).reshape(B, D_IN)
    h = jnp.maximum(xm @ w1 + b1, 0.0)
    h = jnp.maximum(h @ w2 + b2, 0.0)
    recon_ref = 1.0 / (1.0 + jnp.exp(-(h @ w3 + b3)))

    assert recon.shape == (B, D_OUT) and y.shape == (B, N_CAPS)
    assert recon.dtype == x.dtype and y.dtype == x.dtype
    assert bool(jnp.allclose(y, y_ref)), "class one-hot mismatch"
    # Matmuls run bf16 x bf16 -> f32 on the MXU, so compare against the f32
    # reference with a correspondingly relaxed (but still tight, sigmoid-range)
    # tolerance.
    assert bool(jnp.allclose(recon, recon_ref, rtol=1e-2, atol=1e-2)), \
        "reconstruction mismatch"

    print("KERNEL_OK")
</pallas_src>

<mosaic_0001>
module attributes {stable_mosaic.version = 11 : i64} {
  func.func @_decoder_kernel(%arg0: i32, %arg1: memref<2x160xf32, #tpu.memory_space<vmem>>, %arg2: memref<160x10xf32, #tpu.memory_space<vmem>>, %arg3: memref<160x512xbf16, #tpu.memory_space<vmem>>, %arg4: memref<1x512xf32, #tpu.memory_space<vmem>>, %arg5: memref<512x1024xbf16, #tpu.memory_space<vmem>>, %arg6: memref<1x1024xf32, #tpu.memory_space<vmem>>, %arg7: memref<1024x784xbf16, #tpu.memory_space<vmem>>, %arg8: memref<1x784xf32, #tpu.memory_space<vmem>>, %arg9: memref<2x784xf32, #tpu.memory_space<vmem>>, %arg10: memref<2x10xf32, #tpu.memory_space<vmem>>) attributes {dimension_semantics = [#tpu.dimension_semantics<parallel>], iteration_bounds = array<i64: 1>, scalar_prefetch = 0 : i64, scratch_operands = 0 : i64, tpu.core_type = #tpu.core_type<tc>, window_params = [{transform_indices = @transform_0, window_bounds = array<i64: 2, 160>}, {pipeline_mode = #tpu.pipeline_mode<synchronous>, transform_indices = @transform_1, window_bounds = array<i64: 160, 10>}, {pipeline_mode = #tpu.pipeline_mode<synchronous>, transform_indices = @transform_2, window_bounds = array<i64: 160, 512>}, {pipeline_mode = #tpu.pipeline_mode<synchronous>, transform_indices = @transform_3, window_bounds = array<i64: 1, 512>}, {pipeline_mode = #tpu.pipeline_mode<synchronous>, transform_indices = @transform_4, window_bounds = array<i64: 512, 1024>}, {pipeline_mode = #tpu.pipeline_mode<synchronous>, transform_indices = @transform_5, window_bounds = array<i64: 1, 1024>}, {pipeline_mode = #tpu.pipeline_mode<synchronous>, transform_indices = @transform_6, window_bounds = array<i64: 1024, 784>}, {pipeline_mode = #tpu.pipeline_mode<synchronous>, transform_indices = @transform_7, window_bounds = array<i64: 1, 784>}, {transform_indices = @transform_8, window_bounds = array<i64: 2, 784>}, {transform_indices = @transform_9, window_bounds = array<i64: 2, 10>}]} {
    %c0 = arith.constant 0 : index
    %c0_0 = arith.constant 0 : index
    %0 = vector.load %arg1[%c0, %c0_0] : memref<2x160xf32, #tpu.memory_space<vmem>>, vector<2x160xf32>
    %1 = arith.mulf %0, %0 : vector<2x160xf32>
    %c0_1 = arith.constant 0 : index
    %c0_2 = arith.constant 0 : index
    %2 = vector.load %arg2[%c0_1, %c0_2] : memref<160x10xf32, #tpu.memory_space<vmem>>, vector<160x10xf32>
    %cst = arith.constant dense<0.000000e+00> : vector<2x10xf32>
    %3 = tpu.matmul %1, %2, %cst {dimension_numbers = #tpu.dot_dimension_numbers<[1], [0], [0], [1], [0, 0, 1, 1], [], []>} : vector<2x160xf32>, vector<160x10xf32>, vector<2x10xf32> -> vector<2x10xf32>
    %4 = tpu.iota {dimensions = array<i32: 1>} : vector<2x10xi32>
    %5 = arith.sitofp %4 : vector<2x10xi32> to vector<2x10xf32>
    %cst_3 = arith.constant dense<0xFF800000> : vector<2xf32>
    %6 = vector.multi_reduction <maximumf>, %3, %cst_3 [1] : vector<2x10xf32> to vector<2xf32>
    %7 = vector.shape_cast %6 : vector<2xf32> to vector<2x1xf32>
    %8 = vector.broadcast %7 : vector<2x1xf32> to vector<2x10xf32>
    %9 = arith.cmpf oge, %3, %8 : vector<2x10xf32>
    %cst_4 = arith.constant 1.000000e+01 : f32
    %10 = vector.broadcast %cst_4 : f32 to vector<2x10xf32>
    %11 = arith.select %9, %5, %10 : vector<2x10xi1>, vector<2x10xf32>
    %cst_5 = arith.constant dense<0x7F800000> : vector<2xf32>
    %12 = vector.multi_reduction <minimumf>, %11, %cst_5 [1] : vector<2x10xf32> to vector<2xf32>
    %13 = vector.shape_cast %12 : vector<2xf32> to vector<2x1xf32>
    %14 = vector.broadcast %13 : vector<2x1xf32> to vector<2x10xf32>
    %15 = arith.cmpf oeq, %5, %14 : vector<2x10xf32>
    %16 = arith.extui %15 : vector<2x10xi1> to vector<2x10xi32>
    %17 = arith.sitofp %16 : vector<2x10xi32> to vector<2x10xf32>
    %c0_6 = arith.constant 0 : index
    %c0_7 = arith.constant 0 : index
    %18 = vector.load %arg10[%c0_6, %c0_7] : memref<2x10xf32, #tpu.memory_space<vmem>>, vector<2x10xf32>
    tpu.vector_store %arg10[%c0_6, %c0_7], %17 {strides = array<i32>} : memref<2x10xf32, #tpu.memory_space<vmem>>, vector<2x10xf32>,
    %19 = tpu.iota {dimensions = array<i32: 1>} : vector<2x160xi32>
    %20 = arith.sitofp %19 : vector<2x160xi32> to vector<2x160xf32>
    %cst_8 = arith.constant 1.600000e+01 : f32
    %21 = vector.broadcast %cst_8 : f32 to vector<2x1xf32>
    %22 = arith.mulf %13, %21 : vector<2x1xf32>
    %23 = vector.broadcast %22 : vector<2x1xf32> to vector<2x160xf32>
    %24 = arith.cmpf oge, %20, %23 : vector<2x160xf32>
    %cst_9 = arith.constant 1.600000e+01 : f32
    %25 = vector.broadcast %cst_9 : f32 to vector<2x1xf32>
    %26 = arith.addf %22, %25 : vector<2x1xf32>
    %27 = vector.broadcast %26 : vector<2x1xf32> to vector<2x160xf32>
    %28 = arith.cmpf olt, %20, %27 : vector<2x160xf32>
    %29 = arith.andi %24, %28 : vector<2x160xi1>
    %cst_10 = arith.constant 0.000000e+00 : f32
    %30 = vector.broadcast %cst_10 : f32 to vector<2x160xf32>
    %31 = arith.select %29, %0, %30 : vector<2x160xi1>, vector<2x160xf32>
    %32 = arith.truncf %31 : vector<2x160xf32> to vector<2x160xbf16>
    %c0_11 = arith.constant 0 : index
    %c0_12 = arith.constant 0 : index
    %33 = vector.load %arg3[%c0_11, %c0_12] : memref<160x512xbf16, #tpu.memory_space<vmem>>, vector<160x512xbf16>
    %cst_13 = arith.constant dense<0.000000e+00> : vector<2x512xf32>
    %34 = tpu.matmul %32, %33, %cst_13 {dimension_numbers = #tpu.dot_dimension_numbers<[1], [0], [0], [1], [0, 0, 1, 1], [], []>} : vector<2x160xbf16>, vector<160x512xbf16>, vector<2x512xf32> -> vector<2x512xf32>
    %c0_14 = arith.constant 0 : index
    %c0_15 = arith.constant 0 : index
    %35 = vector.load %arg4[%c0_14, %c0_15] : memref<1x512xf32, #tpu.memory_space<vmem>>, vector<1x512xf32>
    %36 = vector.broadcast %35 : vector<1x512xf32> to vector<2x512xf32>
    %37 = arith.addf %34, %36 : vector<2x512xf32>
    %cst_16 = arith.constant 0.000000e+00 : f32
    %38 = vector.broadcast %cst_16 : f32 to vector<2x512xf32>
    %39 = arith.maximumf %37, %38 : vector<2x512xf32>
    %40 = arith.truncf %39 : vector<2x512xf32> to vector<2x512xbf16>
    %c0_17 = arith.constant 0 : index
    %c0_18 = arith.constant 0 : index
    %41 = vector.load %arg5[%c0_17, %c0_18] : memref<512x1024xbf16, #tpu.memory_space<vmem>>, vector<512x1024xbf16>
    %cst_19 = arith.constant dense<0.000000e+00> : vector<2x1024xf32>
    %42 = tpu.matmul %40, %41, %cst_19 {dimension_numbers = #tpu.dot_dimension_numbers<[1], [0], [0], [1], [0, 0, 1, 1], [], []>} : vector<2x512xbf16>, vector<512x1024xbf16>, vector<2x1024xf32> -> vector<2x1024xf32>
    %c0_20 = arith.constant 0 : index
    %c0_21 = arith.constant 0 : index
    %43 = vector.load %arg6[%c0_20, %c0_21] : memref<1x1024xf32, #tpu.memory_space<vmem>>, vector<1x1024xf32>
    %44 = vector.broadcast %43 : vector<1x1024xf32> to vector<2x1024xf32>
    %45 = arith.addf %42, %44 : vector<2x1024xf32>
    %cst_22 = arith.constant 0.000000e+00 : f32
    %46 = vector.broadcast %cst_22 : f32 to vector<2x1024xf32>
    %47 = arith.maximumf %45, %46 : vector<2x1024xf32>
    %48 = arith.truncf %47 : vector<2x1024xf32> to vector<2x1024xbf16>
    %c0_23 = arith.constant 0 : index
    %c0_24 = arith.constant 0 : index
    %49 = vector.load %arg7[%c0_23, %c0_24] : memref<1024x784xbf16, #tpu.memory_space<vmem>>, vector<1024x784xbf16>
    %cst_25 = arith.constant dense<0.000000e+00> : vector<2x784xf32>
    %50 = tpu.matmul %48, %49, %cst_25 {dimension_numbers = #tpu.dot_dimension_numbers<[1], [0], [0], [1], [0, 0, 1, 1], [], []>} : vector<2x1024xbf16>, vector<1024x784xbf16>, vector<2x784xf32> -> vector<2x784xf32>
    %c0_26 = arith.constant 0 : index
    %c0_27 = arith.constant 0 : index
    %51 = vector.load %arg8[%c0_26, %c0_27] : memref<1x784xf32, #tpu.memory_space<vmem>>, vector<1x784xf32>
    %52 = vector.broadcast %51 : vector<1x784xf32> to vector<2x784xf32>
    %53 = arith.addf %50, %52 : vector<2x784xf32>
    %cst_28 = arith.constant 0.000000e+00 : f32
    %54 = vector.broadcast %cst_28 : f32 to vector<2x784xf32>
    %55 = arith.subf %54, %53 : vector<2x784xf32>
    %56 = math.exp %55 : vector<2x784xf32>
    %cst_29 = arith.constant 1.000000e+00 : f32
    %57 = vector.broadcast %cst_29 : f32 to vector<2x784xf32>
    %58 = arith.addf %57, %56 : vector<2x784xf32>
    %59 = tpu.reciprocal %58 {approx = true} : vector<2x784xf32> -> vector<2x784xf32>
    %c0_30 = arith.constant 0 : index
    %c0_31 = arith.constant 0 : index
    %60 = vector.load %arg9[%c0_30, %c0_31] : memref<2x784xf32, #tpu.memory_space<vmem>>, vector<2x784xf32>
    tpu.vector_store %arg9[%c0_30, %c0_31], %59 {strides = array<i32>} : memref<2x784xf32, #tpu.memory_space<vmem>>, vector<2x784xf32>,
    return
  }
  func.func @transform_0(%arg0: i32) -> (i32, i32) {
    %c0_i32 = arith.constant 0 : i32
    %c0_i32_0 = arith.constant 0 : i32
    return %arg0, %c0_i32 : i32, i32
  }
  func.func @transform_1(%arg0: i32) -> (i32, i32) {
    %c0_i32 = arith.constant 0 : i32
    %c0_i32_0 = arith.constant 0 : i32
    %c0_i32_1 = arith.constant 0 : i32
    return %c0_i32, %c0_i32_0 : i32, i32
  }
  func.func @transform_2(%arg0: i32) -> (i32, i32) {
    %c0_i32 = arith.constant 0 : i32
    %c0_i32_0 = arith.constant 0 : i32
    %c0_i32_1 = arith.constant 0 : i32
    return %c0_i32, %c0_i32_0 : i32, i32
  }
  func.func @transform_3(%arg0: i32) -> (i32, i32) {
    %c0_i32 = arith.constant 0 : i32
    %c0_i32_0 = arith.constant 0 : i32
    %c0_i32_1 = arith.constant 0 : i32
    return %c0_i32, %c0_i32_0 : i32, i32
  }
  func.func @transform_4(%arg0: i32) -> (i32, i32) {
    %c0_i32 = arith.constant 0 : i32
    %c0_i32_0 = arith.constant 0 : i32
    %c0_i32_1 = arith.constant 0 : i32
    return %c0_i32, %c0_i32_0 : i32, i32
  }
  func.func @transform_5(%arg0: i32) -> (i32, i32) {
    %c0_i32 = arith.constant 0 : i32
    %c0_i32_0 = arith.constant 0 : i32
    %c0_i32_1 = arith.constant 0 : i32
    return %c0_i32, %c0_i32_0 : i32, i32
  }
  func.func @transform_6(%arg0: i32) -> (i32, i32) {
    %c0_i32 = arith.constant 0 : i32
    %c0_i32_0 = arith.constant 0 : i32
    %c0_i32_1 = arith.constant 0 : i32
    return %c0_i32, %c0_i32_0 : i32, i32
  }
  func.func @transform_7(%arg0: i32) -> (i32, i32) {
    %c0_i32 = arith.constant 0 : i32
    %c0_i32_0 = arith.constant 0 : i32
    %c0_i32_1 = arith.constant 0 : i32
    return %c0_i32, %c0_i32_0 : i32, i32
  }
  func.func @transform_8(%arg0: i32) -> (i32, i32) {
    %c0_i32 = arith.constant 0 : i32
    %c0_i32_0 = arith.constant 0 : i32
    return %arg0, %c0_i32 : i32, i32
  }
  func.func @transform_9(%arg0: i32) -> (i32, i32) {
    %c0_i32 = arith.constant 0 : i32
    %c0_i32_0 = arith.constant 0 : i32
    return %arg0, %c0_i32 : i32, i32
  }
}

</mosaic_0001>

<bundles_post_ra>
// kernel: tpu_custom_call.1
= control target key start
LH: loop header
LB: loop body
LE: loop exit
PB: predicated region body
PF: predicated region fallthrough
CT: control target
= control target key end

     0   :  { %15 = vsyncpa [#allocation3], 0  ;;  %v60_v3 = vlaneseq  ;;  %v7795_v4 = vmov 0.0|0.0   ;;  %v7796_v7 = vmov 1983009808   ;;  %vm66_vm0 = vcmask 261120   ;;  %s10372_s0 = inlined_call_operand.vmem [shape: f32[2,160], index: 0, kind: input, shape index: {}]   ;;  %s10373_s1 = inlined_call_operand.vmem [shape: f32[160,10], index: 1, kind: input, shape index: {}]   ;;  %s10374_s2 = inlined_call_operand.vmem [shape: bf16[160,512], index: 2, kind: input, shape index: {}]   ;;  %s10375_s3 = inlined_call_operand.vmem [shape: f32[1,512], index: 3, kind: input, shape index: {}]   ;;  %s10376_s4 = inlined_call_operand.vmem [shape: bf16[512,1024], index: 4, kind: input, shape index: {}]   ;;  %s10377_s5 = inlined_call_operand.vmem [shape: f32[1,1024], index: 5, kind: input, shape index: {}]   ;;  %s10378_s6 = inlined_call_operand.vmem [shape: bf16[1024,784], index: 6, kind: input, shape index: {}]   ;;  %s10379_s7 = inlined_call_operand.vmem [shape: f32[1,784], index: 7, kind: input, shape index: {}]   ;;  %s10380_s8 = inlined_call_operand.hbm [shape: f32[2,784], index: 8, kind: output, shape index: {0}]   ;;  %s10381_s9 = inlined_call_operand.hbm [shape: f32[2,10], index: 9, kind: output, shape index: {1}]  }
   0x1   :  { %v36_v0 = vld [vmem:[%s10373_s1] sm:$0xff]  ;;  %v37_v1 = vld [vmem:[%s10373_s1 + $0x8] sm:$0xff]  ;;  %v38_v2 = vld [vmem:[%s10373_s1 + $0x10] sm:$0xff]  ;;  %6916 = vmatprep.subr.bf16.mxu0 %v7795_v4  ;;  %v58_v8 = vunpack.c.l.s4 %v7796_v7 }
   0x2   :  { %v6917_v5 = vpack.c.bf16 %v37_v1, %v36_v0  ;;  %v39_v6 = vld [vmem:[%s10373_s1 + $0x18] sm:$0xff]  ;;  %v7863_v9 = vshrl.u32 %v60_v3, 7  ;;  %v40_v12 = vld [vmem:[%s10373_s1 + $0x20] sm:$0xff]  ;;  %v41_v13 = vld [vmem:[%s10373_s1 + $0x28] sm:$0xff] }
   0x3   :  { %v6920_v10 = vpack.c.bf16 %v39_v6, %v38_v2  ;;  %v59_v11 = vunpack.c.0.s8 %v58_v8  ;;  %v42_v15 = vld [vmem:[%s10373_s1 + $0x30] sm:$0xff]  ;;  %v43_v16 = vld [vmem:[%s10373_s1 + $0x38] sm:$0xff]  ;;  %v34_v17 = vld [vmem:[%s10372_s0] sm:$0xf]  ;;  %v6923_v18 = vpack.c.bf16 %v41_v13, %v40_v12 }
   0x4   :  { %6918 = vmatpush1.bf16.msra.mxu0 %v6917_v5  ;;  %v35_v19 = vmul.f32 %v34_v17, %v34_v17  ;;  %v44_v21 = vld [vmem:[%s10373_s1 + $0x40] sm:$0xff]  ;;  %v45_v22 = vld [vmem:[%s10373_s1 + $0x48] sm:$0xff]  ;;  %v6926_v23 = vpack.c.bf16 %v43_v16, %v42_v15  ;;  %v46_v25 = vld [vmem:[%s10373_s1 + $0x50] sm:$0xff] }
   0x5   :  { %6919 = vmatprep.subr.bf16.mxu0 %v7795_v4  ;;  %v7872_v14 = vsub.s32 %v59_v11, %v7863_v9  ;;  %v47_v26 = vld [vmem:[%s10373_s1 + $0x58] sm:$0xff]  ;;  %v6929_v27 = vpack.c.bf16 %v45_v22, %v44_v21  ;;  %v48_v28 = vld [vmem:[%s10373_s1 + $0x60] sm:$0xff]  ;;  %v49_v29 = vld [vmem:[%s10373_s1 + $0x68] sm:$0xff] }
   0x6   :  { %v6932_v30 = vpack.c.bf16 %v47_v26, %v46_v25  ;;  %v50_v31 = vld [vmem:[%s10373_s1 + $0x70] sm:$0xff]  ;;  %v51_v32 = vld [vmem:[%s10373_s1 + $0x78] sm:$0xff]  ;;  %v6935_v33 = vpack.c.bf16 %v49_v29, %v48_v28  ;;  %v52_v34 = vld [vmem:[%s10373_s1 + $0x80] sm:$0xff] }
   0x7   :  { %v63_v20 = vrot.slane %v35_v19, %v7872_v14  ;;  %v53_v35 = vld [vmem:[%s10373_s1 + $0x88] sm:$0xff]  ;;  %v6938_v36 = vpack.c.bf16 %v51_v32, %v50_v31  ;;  %v54_v37 = vld [vmem:[%s10373_s1 + $0x90] sm:$0xff]  ;;  %v55_v38 = vld [vmem:[%s10373_s1 + $0x98] sm:$0xff] }
   0x8   :  { %6921 = vmatpush1.bf16.msra.mxu0 %v6920_v10  ;;  %v6941_v39 = vpack.c.bf16 %v53_v35, %v52_v34  ;;  %v6944_v40 = vpack.c.bf16 %v55_v38, %v54_v37 }
   0x9   :  { %6922 = vmatprep.subr.bf16.mxu0 %v7795_v4  ;;  %v64_v24 = vcombine.high %v63_v20, %v63_v20 }
   0xb   :  { %6074 = vmatprep.mubr.msk.f32.mxu0 %vm66_vm0, %v64_v24 }
   0xc   :  { %6924 = vmatpush1.bf16.msra.mxu0 %v6923_v18 }
   0xd   :  { %6925 = vmatprep.subr.bf16.mxu0 %v7795_v4 }
  0x10   :  { %6927 = vmatpush1.bf16.msra.mxu0 %v6926_v23 }
  0x11   :  { %6928 = vmatprep.subr.bf16.mxu0 %v7795_v4 }
  0x14   :  { %6930 = vmatpush1.bf16.msra.mxu0 %v6929_v27 }
  0x15   :  { %6931 = vmatprep.subr.bf16.mxu0 %v7795_v4 }
  0x18   :  { %6933 = vmatpush1.bf16.msra.mxu0 %v6932_v30 }
  0x19   :  { %6934 = vmatprep.subr.bf16.mxu0 %v7795_v4 }
  0x1c   :  { %6936 = vmatpush1.bf16.msra.mxu0 %v6935_v33 }
  0x1d   :  { %6937 = vmatprep.subr.bf16.mxu0 %v7795_v4 }
  0x20   :  { %6939 = vmatpush1.bf16.msra.mxu0 %v6938_v36 }
  0x21   :  { %6940 = vmatprep.subr.bf16.mxu0 %v7795_v4 }
  0x24   :  { %6942 = vmatpush1.bf16.msra.mxu0 %v6941_v39 }
  0x25   :  { %6943 = vmatprep.subr.bf16.mxu0 %v7795_v4 }
  0x28   :  { %6945 = vmatpush1.bf16.msra.mxu0 %v6944_v40 }
  0x2b   :  { %134 = vmatmul.mubr.f32.vlgmr.msra.gmra.mrb[0].mxu0 %v63_v20 }
  0x2c   :  { %16 = vsyncpa [#allocation5], 0  ;;  %vm142_vm1 = vcmask 74752   ;;  %v7017_v44 = vld [vmem:[%s10374_s2] ss:$16 sps:$4 sm:$0xff]   ;;  %v7971_v60 = vand.u32 127, %v60_v3 }
  0x2d   :  { %v7019_v45 = vld [vmem:[%s10374_s2 + $0x4] ss:$16 sps:$4 sm:$0xff]   ;;  %v7020_v47 = vld [vmem:[%s10374_s2 + $0x20] ss:$16 sps:$4 sm:$0xff]   ;;  %v7049_v5 = vld [vmem:[%s10374_s2 + $0xc] ss:$16 sps:$4 sm:$0xff]  }
  0x2e   :  { %v7022_v46 = vld [vmem:[%s10374_s2 + $0x24] ss:$16 sps:$4 sm:$0xff]   ;;  %445 = vmatprep.subr.bf16.mxu0 %v7019_v45  ;;  %v7023_v49 = vld [vmem:[%s10374_s2 + $0x40] ss:$16 sps:$4 sm:$0xff]   ;;  %v7974_v61 = vcvt.s32.f32 %v7971_v60 }
  0x2f   :  { %446 = vmatpush1.bf16.msra.mxu0 %v7017_v44  ;;  %v7025_v48 = vld [vmem:[%s10374_s2 + $0x44] ss:$16 sps:$4 sm:$0xff]   ;;  %v7026_v51 = vld [vmem:[%s10374_s2 + $0x60] ss:$16 sps:$4 sm:$0xff]  }
  0x30   :  { %447 = vmatprep.subr.bf16.mxu0 %v7022_v46  ;;  %v7028_v50 = vld [vmem:[%s10374_s2 + $0x64] ss:$16 sps:$4 sm:$0xff]   ;;  %v7029_v53 = vld [vmem:[%s10374_s2 + $0x80] ss:$16 sps:$4 sm:$0xff]  }
  0x31   :  { %v7031_v52 = vld [vmem:[%s10374_s2 + $0x84] ss:$16 sps:$4 sm:$0xff]   ;;  %v7032_v55 = vld [vmem:[%s10374_s2 + $0xa0] ss:$16 sps:$4 sm:$0xff]  }
  0x32   :  { %v7034_v54 = vld [vmem:[%s10374_s2 + $0xa4] ss:$16 sps:$4 sm:$0xff]   ;;  %v7035_v57 = vld [vmem:[%s10374_s2 + $0xc0] ss:$16 sps:$4 sm:$0xff]  }
  0x33   :  { %448 = vmatpush1.bf16.msra.mxu0 %v7020_v47  ;;  %v7037_v56 = vld [vmem:[%s10374_s2 + $0xc4] ss:$16 sps:$4 sm:$0xff]   ;;  %v7038_v59 = vld [vmem:[%s10374_s2 + $0xe0] ss:$16 sps:$4 sm:$0xff]  }
  0x34   :  { %449 = vmatprep.subr.bf16.mxu0 %v7025_v48  ;;  %v7040_v58 = vld [vmem:[%s10374_s2 + $0xe4] ss:$16 sps:$4 sm:$0xff]   ;;  %v7041_v2 = vld [vmem:[%s10374_s2 + $0x100] ss:$16 sps:$4 sm:$0xff]  }
  0x35   :  { %v7043_v1 = vld [vmem:[%s10374_s2 + $0x104] ss:$16 sps:$4 sm:$0xff]   ;;  %v7044_v4 = vld [vmem:[%s10374_s2 + $0x120] ss:$16 sps:$4 sm:$0xff]  }
  0x36   :  { %v7046_v3 = vld [vmem:[%s10374_s2 + $0x124] ss:$16 sps:$4 sm:$0xff]  }
  0x37   :  { %450 = vmatpush1.bf16.msra.mxu0 %v7023_v49  ;;  %v535_v6 = vld [vmem:[%s10376_s4] sm:$0xff] }
  0x38   :  { %451 = vmatprep.subr.bf16.mxu0 %v7028_v50  ;;  %v539_v7 = vld [vmem:[%s10376_s4 + $0x20] sm:$0xff] }
  0x39   :  { %v6125_v8 = vcombine.high %v535_v6, %v539_v7  ;;  %v6124_v10 = vcombine.low %v535_v6, %v539_v7  ;;  %v543_v11 = vld [vmem:[%s10376_s4 + $0x40] sm:$0xff]  ;;  %v7797_v7 = vmov 0.0  }
  0x3a   :  { %v547_v12 = vld [vmem:[%s10376_s4 + $0x60] sm:$0xff] }
  0x3b   :  { %452 = vmatpush1.bf16.msra.mxu0 %v7026_v51  ;;  %v6133_v13 = vcombine.high %v543_v11, %v547_v12  ;;  %2113 = vmatprep.subr.bf16.mxu1 %v6125_v8  ;;  %v6132_v15 = vcombine.low %v543_v11, %v547_v12  ;;  %v551_v16 = vld [vmem:[%s10376_s4 + $0x80] sm:$0xff] }
  0x3c   :  { %453 = vmatprep.subr.bf16.mxu0 %v7031_v52  ;;  %2114 = vmatpush1.bf16.msra.mxu1 %v6124_v10  ;;  %v555_v17 = vld [vmem:[%s10376_s4 + $0xa0] sm:$0xff] }
  0x3d   :  { %2115 = vmatprep.subr.bf16.mxu1 %v6133_v13  ;;  %v6141_v18 = vcombine.high %v551_v16, %v555_v17  ;;  %v6140_v19 = vcombine.low %v551_v16, %v555_v17  ;;  %v559_v20 = vld [vmem:[%s10376_s4 + $0xc0] sm:$0xff]  ;;  %v7047_v16 = vld [vmem:[%s10374_s2 + $0x8] ss:$16 sps:$4 sm:$0xff]   ;;  %v7052_v17 = vld [vmem:[%s10374_s2 + $0x2c] ss:$16 sps:$4 sm:$0xff]  }
  0x3e   :  { %v563_v21 = vld [vmem:[%s10376_s4 + $0xe0] sm:$0xff] }
  0x3f   :  { %454 = vmatpush1.bf16.msra.mxu0 %v7029_v53  ;;  %v6149_v22 = vcombine.high %v559_v20, %v563_v21  ;;  %v6148_v23 = vcombine.low %v559_v20, %v563_v21  ;;  %v567_v24 = vld [vmem:[%s10376_s4 + $0x100] sm:$0xff]  ;;  %v7058_v20 = vld [vmem:[%s10374_s2 + $0x6c] ss:$16 sps:$4 sm:$0xff]   ;;  %v7056_v21 = vld [vmem:[%s10374_s2 + $0x68] ss:$16 sps:$4 sm:$0xff]  }
  0x40   :  { %455 = vmatprep.subr.bf16.mxu0 %v7034_v54  ;;  %2116 = vmatpush1.bf16.msra.mxu1 %v6132_v15  ;;  %v571_v25 = vld [vmem:[%s10376_s4 + $0x120] sm:$0xff] }
  0x41   :  { %2117 = vmatprep.subr.bf16.mxu1 %v6141_v18  ;;  %v6157_v26 = vcombine.high %v567_v24, %v571_v25  ;;  %v6156_v27 = vcombine.low %v567_v24, %v571_v25  ;;  %v575_v28 = vld [vmem:[%s10376_s4 + $0x140] sm:$0xff]  ;;  %v7055_v18 = vld [vmem:[%s10374_s2 + $0x4c] ss:$16 sps:$4 sm:$0xff]   ;;  %v7062_v25 = vld [vmem:[%s10374_s2 + $0xa8] ss:$16 sps:$4 sm:$0xff]  }
  0x42   :  { %v579_v29 = vld [vmem:[%s10376_s4 + $0x160] sm:$0xff]  ;;  %v7064_v24 = vld [vmem:[%s10374_s2 + $0xac] ss:$16 sps:$4 sm:$0xff]  }
  0x43   :  { %456 = vmatpush1.bf16.msra.mxu0 %v7032_v55  ;;  %v6165_v30 = vcombine.high %v575_v28, %v579_v29  ;;  %v6164_v31 = vcombine.low %v575_v28, %v579_v29  ;;  %v583_v32 = vld [vmem:[%s10376_s4 + $0x180] sm:$0xff]  ;;  %v7070_v28 = vld [vmem:[%s10374_s2 + $0xec] ss:$16 sps:$4 sm:$0xff]   ;;  %v7068_v29 = vld [vmem:[%s10374_s2 + $0xe8] ss:$16 sps:$4 sm:$0xff]  }
  0x44   :  { %457 = vmatprep.subr.bf16.mxu0 %v7037_v56  ;;  %2118 = vmatpush1.bf16.msra.mxu1 %v6140_v19  ;;  %v587_v33 = vld [vmem:[%s10376_s4 + $0x1a0] sm:$0xff]  ;;  %v7053_v19 = vld [vmem:[%s10374_s2 + $0x48] ss:$16 sps:$4 sm:$0xff]  }
  0x45   :  { %2119 = vmatprep.subr.bf16.mxu1 %v6149_v22  ;;  %v6173_v34 = vcombine.high %v583_v32, %v587_v33  ;;  %v6172_v35 = vcombine.low %v583_v32, %v587_v33  ;;  %v591_v36 = vld [vmem:[%s10376_s4 + $0x1c0] sm:$0xff]  ;;  %v7061_v22 = vld [vmem:[%s10374_s2 + $0x8c] ss:$16 sps:$4 sm:$0xff]  }
  0x46   :  { %v595_v37 = vld [vmem:[%s10376_s4 + $0x1e0] sm:$0xff]  ;;  %v7076_v32 = vld [vmem:[%s10374_s2 + $0x12c] ss:$16 sps:$4 sm:$0xff]  }
  0x47   :  { %458 = vmatpush1.bf16.msra.mxu0 %v7035_v57  ;;  %v6181_v38 = vcombine.high %v591_v36, %v595_v37  ;;  %v6180_v39 = vcombine.low %v591_v36, %v595_v37  ;;  %v599_v40 = vld [vmem:[%s10376_s4 + $0x200] sm:$0xff]  ;;  %v536_v33 = vld [vmem:[%s10376_s4 + $0x8] sm:$0xff] }
  0x48   :  { %459 = vmatprep.subr.bf16.mxu0 %v7040_v58  ;;  %2120 = vmatpush1.bf16.msra.mxu1 %v6148_v23  ;;  %v607_v44 = vld [vmem:[%s10376_s4 + $0x240] sm:$0xff]  ;;  %v7059_v23 = vld [vmem:[%s10374_s2 + $0x88] ss:$16 sps:$4 sm:$0xff]  }
  0x49   :  { %2121 = vmatprep.subr.bf16.mxu1 %v6157_v26  ;;  %v611_v45 = vld [vmem:[%s10376_s4 + $0x260] sm:$0xff]  ;;  %v7067_v26 = vld [vmem:[%s10374_s2 + $0xcc] ss:$16 sps:$4 sm:$0xff]  }
  0x4a   :  { %v6197_v46 = vcombine.high %v607_v44, %v611_v45  ;;  %v6196_v47 = vcombine.low %v607_v44, %v611_v45  ;;  %v615_v48 = vld [vmem:[%s10376_s4 + $0x280] sm:$0xff]  ;;  %v544_v37 = vld [vmem:[%s10376_s4 + $0x48] sm:$0xff] }
  0x4b   :  { %460 = vmatpush1.bf16.msra.mxu0 %v7038_v59  ;;  %v619_v49 = vld [vmem:[%s10376_s4 + $0x2a0] sm:$0xff]  ;;  %v560_v45 = vld [vmem:[%s10376_s4 + $0xc8] sm:$0xff] }
  0x4c   :  { %461 = vmatprep.subr.bf16.mxu0 %v7043_v1  ;;  %2122 = vmatpush1.bf16.msra.mxu1 %v6156_v27  ;;  %v6205_v50 = vcombine.high %v615_v48, %v619_v49  ;;  %v6204_v51 = vcombine.low %v615_v48, %v619_v49  ;;  %v623_v52 = vld [vmem:[%s10376_s4 + $0x2c0] sm:$0xff]  ;;  %v7065_v27 = vld [vmem:[%s10374_s2 + $0xc8] ss:$16 sps:$4 sm:$0xff]  }
  0x4d   :  { %2123 = vmatprep.subr.bf16.mxu1 %v6165_v30  ;;  %v627_v53 = vld [vmem:[%s10376_s4 + $0x2e0] sm:$0xff]  ;;  %v7073_v30 = vld [vmem:[%s10374_s2 + $0x10c] ss:$16 sps:$4 sm:$0xff]  }
  0x4e   :  { %v6213_v54 = vcombine.high %v623_v52, %v627_v53  ;;  %v6212_v55 = vcombine.low %v623_v52, %v627_v53  ;;  %v631_v56 = vld [vmem:[%s10376_s4 + $0x300] sm:$0xff]  ;;  %v568_v49 = vld [vmem:[%s10376_s4 + $0x108] sm:$0xff] }
  0x4f   :  { %462 = vmatpush1.bf16.msra.mxu0 %v7041_v2  ;;  %v635_v57 = vld [vmem:[%s10376_s4 + $0x320] sm:$0xff]  ;;  %v155_v2 = vadd.s32 128, %v7971_v60  ;;  %v576_v53 = vld [vmem:[%s10376_s4 + $0x148] sm:$0xff] }
  0x50   :  { %463 = vmatprep.subr.bf16.mxu0 %v7046_v3  ;;  %2124 = vmatpush1.bf16.msra.mxu1 %v6164_v31  ;;  %v6221_v58 = vcombine.high %v631_v56, %v635_v57  ;;  %v6220_v59 = vcombine.low %v631_v56, %v635_v57  ;;  %v7746_v3 = vld.sshfl [vmem:[%s10372_s0] sm:$0x33 pattern:$0x76325410]  ;;  %v7071_v31 = vld [vmem:[%s10374_s2 + $0x108] ss:$16 sps:$4 sm:$0xff]  }
  0x51   :  { %2125 = vmatprep.subr.bf16.mxu1 %v6173_v34  ;;  %v173_v10 = vcombine.high %v7746_v3, %v7746_v3  ;;  %v6118_v60 = vpack.c.bf16 %v7746_v3, %v7746_v3  ;;  %v540_v34 = vld [vmem:[%s10376_s4 + $0x28] sm:$0xff] }
  0x52   :  { %v6127_v36 = vcombine.high %v536_v33, %v540_v34  ;;  %v584_v57 = vld [vmem:[%s10376_s4 + $0x188] sm:$0xff] }
  0x53   :  { %464 = vmatpush1.bf16.msra.mxu0 %v7044_v4  ;;  %v600_v3 = vld [vmem:[%s10376_s4 + $0x208] sm:$0xff] }
  0x54   :  { %486 = vmatprep.subr.bf16.mxu0 %v7049_v5  ;;  %2126 = vmatpush1.bf16.msra.mxu1 %v6172_v35  ;;  %v156_v5 = vcvt.s32.f32 %v155_v2  ;;  %v7074_v35 = vld [vmem:[%s10374_s2 + $0x128] ss:$16 sps:$4 sm:$0xff]  }
  0x55   :  { %2127 = vmatprep.subr.bf16.mxu1 %v6181_v38  ;;  %v548_v38 = vld [vmem:[%s10376_s4 + $0x68] sm:$0xff] }
  0x58   :  { %2128 = vmatpush1.bf16.msra.mxu1 %v6180_v39  ;;  %v6126_v39 = vcombine.low %v536_v33, %v540_v34  ;;  %v648_v34 = vld [vmem:[%s10376_s4 + $0x388] sm:$0xff] }
  0xfe   :  { %v135_v41 = vpop.f32.mrb[0].mxu0 }
  0xff   :  { %v137_v42 = vpop.f32.mrb[1].mxu0  ;;  %v143_v43 = vsel %vm142_vm1, %v135_v41, -inf }
 0x100   :  { %144 = vmax.xlane.f32.xlu0 %v143_v43 }
 0x18d   :  { %v145_v62 = vpop.xlane.xlu0 %144 }
 0x18e   :  { %vm146_vm2 = vcmp.ge.f32.partialorder %v135_v41, %v145_v62  ;;  %v603_v41 = vld [vmem:[%s10376_s4 + $0x220] sm:$0xff] }
 0x18f   :  { %v147_v63 = vsel %vm146_vm2, %v7974_v61, 10.0  ;;  %v6189_v42 = vcombine.high %v599_v40, %v603_v41  ;;  %v6188_v43 = vcombine.low %v599_v40, %v603_v41  ;;  %v639_v62 = vld [vmem:[%s10376_s4 + $0x340] sm:$0xff]  ;;  %v6135_v40 = vcombine.high %v544_v37, %v548_v38  ;;  %v552_v41 = vld [vmem:[%s10376_s4 + $0x88] sm:$0xff] }
 0x190   :  { %v148_v0 = vsel %vm142_vm1, %v147_v63, inf  ;;  %v643_v63 = vld [vmem:[%s10376_s4 + $0x360] sm:$0xff] }
 0x191   :  { %149 = vmin.xlane.f32.xlu0 %v148_v0  ;;  %2129 = vmatprep.subr.bf16.mxu1 %v6189_v42  ;;  %v6229_v0 = vcombine.high %v639_v62, %v643_v63  ;;  %v6228_v1 = vcombine.low %v639_v62, %v643_v63  ;;  %v556_v42 = vld [vmem:[%s10376_s4 + $0xa8] sm:$0xff] }
 0x192   :  { %2130 = vmatpush1.bf16.msra.mxu1 %v6188_v43  ;;  %v6134_v43 = vcombine.low %v544_v37, %v548_v38  ;;  %v6143_v44 = vcombine.high %v552_v41, %v556_v42  ;;  %v592_v63 = vld [vmem:[%s10376_s4 + $0x1c8] sm:$0xff]  ;;  %v663_v38 = vld [vmem:[%s10376_s4 + $0x400] sm:$0xff] }
 0x193   :  { %2131 = vmatprep.subr.bf16.mxu1 %v6197_v46  ;;  %v564_v46 = vld [vmem:[%s10376_s4 + $0xe8] sm:$0xff] }
 0x194   :  { %v6151_v48 = vcombine.high %v560_v45, %v564_v46 }
 0x196   :  { %2132 = vmatpush1.bf16.msra.mxu1 %v6196_v47  ;;  %v6142_v47 = vcombine.low %v552_v41, %v556_v42 }
 0x197   :  { %2133 = vmatprep.subr.bf16.mxu1 %v6205_v50  ;;  %v572_v50 = vld [vmem:[%s10376_s4 + $0x128] sm:$0xff] }
 0x198   :  { %v6159_v52 = vcombine.high %v568_v49, %v572_v50 }
 0x19a   :  { %2134 = vmatpush1.bf16.msra.mxu1 %v6204_v51  ;;  %v6150_v51 = vcombine.low %v560_v45, %v564_v46  ;;  %v660_v45 = vld [vmem:[%s10376_s4 + $0x3e8] sm:$0xff] }
 0x19b   :  { %2135 = vmatprep.subr.bf16.mxu1 %v6213_v54  ;;  %v580_v54 = vld [vmem:[%s10376_s4 + $0x168] sm:$0xff] }
 0x19c   :  { %v6167_v56 = vcombine.high %v576_v53, %v580_v54 }
 0x19e   :  { %2136 = vmatpush1.bf16.msra.mxu1 %v6212_v55  ;;  %v6158_v55 = vcombine.low %v568_v49, %v572_v50 }
 0x19f   :  { %2137 = vmatprep.subr.bf16.mxu1 %v6221_v58  ;;  %v588_v58 = vld [vmem:[%s10376_s4 + $0x1a8] sm:$0xff] }
 0x1a0   :  { %v6175_v62 = vcombine.high %v584_v57, %v588_v58 }
 0x1a2   :  { %2138 = vmatpush1.bf16.msra.mxu1 %v6220_v59  ;;  %v6166_v59 = vcombine.low %v576_v53, %v580_v54  ;;  %v8287_v53 = vld [vmem:[%s10375_s3] sm:$0xf]  ;;  %v8290_v54 = vsub.s32 1, %v7863_v9 }
 0x1a3   :  { %2139 = vmatprep.subr.bf16.mxu1 %v6229_v0  ;;  %v596_v0 = vld [vmem:[%s10376_s4 + $0x1e8] sm:$0xff] }
 0x1a4   :  { %v6183_v2 = vcombine.high %v592_v63, %v596_v0 }
 0x1a6   :  { %2140 = vmatpush1.bf16.msra.mxu1 %v6228_v1  ;;  %v6174_v1 = vcombine.low %v584_v57, %v588_v58 }
 0x21e   :  { %v150_v4 = vpop.xlane.xlu0 %149 }
 0x21f   :  { %vm151_vm3 = vcmp.eq.f32.partialorder %v7974_v61, %v150_v4  ;;  %v157_v6 = vmul.f32 16.0, %v150_v4  ;;  %v604_v4 = vld [vmem:[%s10376_s4 + $0x228] sm:$0xff] }
 0x220   :  { %v6075_v8 = vsel %vm151_vm3, 1.0, %v7797_v7  ;;  %v608_v7 = vld [vmem:[%s10376_s4 + $0x248] sm:$0xff] }
 0x221   :  { %v160_v11 = vadd.f32 16.0, %v157_v6  ;;  %154 = vst.msk [vmem:[#allocation4] sm:$0x3] %vm142_vm1, %v6075_v8  ;;  %vm159_vm4 = vcmp.ge.f32.partialorder %v156_v5, %v157_v6  ;;  %vm158_vm7 = vcmp.ge.f32.partialorder %v7974_v61, %v157_v6  ;;  %v6191_v6 = vcombine.high %v600_v3, %v604_v4  ;;  %v612_v8 = vld [vmem:[%s10376_s4 + $0x268] sm:$0xff] }
 0x222   :  { %v6198_v13 = vcombine.low %v608_v7, %v612_v8 }
 0x223   :  { %vm162_vm5 = vcmp.lt.f32.partialorder %v156_v5, %v160_v11  ;;  %vm161_vm6 = vcmp.lt.f32.partialorder %v7974_v61, %v160_v11  ;;  %v7050_v61 = vld [vmem:[%s10374_s2 + $0x28] ss:$16 sps:$4 sm:$0xff]   ;;  %v6182_v5 = vcombine.low %v592_v63, %v596_v0  ;;  %v6199_v11 = vcombine.high %v608_v7, %v612_v8 }
 0x224   :  { %vm164_vm8 = vmand %vm159_vm4, %vm162_vm5 }
 0x225   :  { %v177_v12 = vsel %vm164_vm8, %v173_v10, 0.0  ;;  %vm8085_vm9 = vmand %vm158_vm7, %vm161_vm6  ;;  %v6190_v10 = vcombine.low %v600_v3, %v604_v4  ;;  %v675_v4 = vld [vmem:[%s10376_s4 + $0x460] sm:$0xff] }
 0x226   :  { %v179_v15 = vpack.c.bf16 %v177_v12, %v177_v12  ;;  %vm6117_vm10 = vmpackc.low %vm8085_vm9, %vm8085_vm9  ;;  %v620_v12 = vld [vmem:[%s10376_s4 + $0x2a8] sm:$0xff] }
 0x228   :  { %6116 = vmatprep.mubr.msk.bf16.mxu0 %vm66_vm0, %v179_v15 }
 0x229   :  { %6119 = vmatmul.mubr.msk.bf16.vlgmr.msra.gmra.mrb[4].mxu0 %vm6117_vm10, %v6118_v60 }
 0x22a   :  { %487 = vmatpush1.bf16.msra.mxu0 %v7047_v16  ;;  %6120 = vmatprep.mubr.msk.bf16.mxu0 %vm66_vm0, %v179_v15  ;;  %v624_v16 = vld [vmem:[%s10376_s4 + $0x2c8] sm:$0xff] }
 0x22b   :  { %488 = vmatprep.subr.bf16.mxu0 %v7052_v17  ;;  %v628_v17 = vld [vmem:[%s10376_s4 + $0x2e8] sm:$0xff] }
 0x22e   :  { %489 = vmatpush1.bf16.msra.mxu0 %v7050_v61 }
 0x22f   :  { %490 = vmatprep.subr.bf16.mxu0 %v7055_v18  ;;  %v6215_v18 = vcombine.high %v624_v16, %v628_v17 }
 0x232   :  { %491 = vmatpush1.bf16.msra.mxu0 %v7053_v19  ;;  %v632_v19 = vld [vmem:[%s10376_s4 + $0x308] sm:$0xff] }
 0x233   :  { %492 = vmatprep.subr.bf16.mxu0 %v7058_v20  ;;  %v636_v20 = vld [vmem:[%s10376_s4 + $0x328] sm:$0xff] }
 0x236   :  { %493 = vmatpush1.bf16.msra.mxu0 %v7056_v21  ;;  %v6214_v21 = vcombine.low %v624_v16, %v628_v17 }
 0x237   :  { %494 = vmatprep.subr.bf16.mxu0 %v7061_v22  ;;  %v647_v22 = vld [vmem:[%s10376_s4 + $0x380] sm:$0xff] }
 0x23a   :  { %495 = vmatpush1.bf16.msra.mxu0 %v7059_v23  ;;  %v651_v23 = vld [vmem:[%s10376_s4 + $0x3a0] sm:$0xff] }
 0x23b   :  { %496 = vmatprep.subr.bf16.mxu0 %v7064_v24  ;;  %v6223_v24 = vcombine.high %v632_v19, %v636_v20 }
 0x23e   :  { %497 = vmatpush1.bf16.msra.mxu0 %v7062_v25  ;;  %v6237_v25 = vcombine.high %v647_v22, %v651_v23 }
 0x23f   :  { %498 = vmatprep.subr.bf16.mxu0 %v7067_v26  ;;  %v640_v26 = vld [vmem:[%s10376_s4 + $0x348] sm:$0xff] }
 0x240   :  { %2141 = vmatprep.subr.bf16.mxu1 %v6237_v25 }
 0x242   :  { %499 = vmatpush1.bf16.msra.mxu0 %v7065_v27  ;;  %v644_v27 = vld [vmem:[%s10376_s4 + $0x368] sm:$0xff] }
 0x243   :  { %500 = vmatprep.subr.bf16.mxu0 %v7070_v28  ;;  %v6236_v28 = vcombine.low %v647_v22, %v651_v23  ;;  %v6230_v37 = vcombine.low %v640_v26, %v644_v27  ;;  %v692_v22 = vld [vmem:[%s10376_s4 + $0x4e8] sm:$0xff] }
 0x245   :  { %2142 = vmatpush1.bf16.msra.mxu1 %v6236_v28  ;;  %v699_v28 = vld [vmem:[%s10376_s4 + $0x520] sm:$0xff] }
 0x246   :  { %501 = vmatpush1.bf16.msra.mxu0 %v7068_v29  ;;  %v6222_v29 = vcombine.low %v632_v19, %v636_v20  ;;  %v687_v19 = vld [vmem:[%s10376_s4 + $0x4c0] sm:$0xff] }
 0x247   :  { %502 = vmatprep.subr.bf16.mxu0 %v7073_v30  ;;  %v655_v30 = vld [vmem:[%s10376_s4 + $0x3c0] sm:$0xff] }
 0x248   :  { %v691_v20 = vld [vmem:[%s10376_s4 + $0x4e0] sm:$0xff] }
 0x249   :  { %v6277_v25 = vcombine.high %v687_v19, %v691_v20 }
 0x24a   :  { %503 = vmatpush1.bf16.msra.mxu0 %v7071_v31  ;;  %v659_v31 = vld [vmem:[%s10376_s4 + $0x3e0] sm:$0xff] }
 0x24b   :  { %504 = vmatprep.subr.bf16.mxu0 %v7076_v32  ;;  %v6231_v32 = vcombine.high %v640_v26, %v644_v27  ;;  %v6245_v33 = vcombine.high %v655_v30, %v659_v31  ;;  %v695_v27 = vld [vmem:[%s10376_s4 + $0x500] sm:$0xff] }
 0x24d   :  { %2143 = vmatprep.subr.bf16.mxu1 %v6245_v33  ;;  %v6285_v33 = vcombine.high %v695_v27, %v699_v28 }
 0x24e   :  { %505 = vmatpush1.bf16.msra.mxu0 %v7074_v35  ;;  %v652_v35 = vld [vmem:[%s10376_s4 + $0x3a8] sm:$0xff] }
 0x24f   :  { %2195 = vmatprep.subr.bf16.mxu0 %v6127_v36  ;;  %v6244_v36 = vcombine.low %v655_v30, %v659_v31  ;;  %v6239_v41 = vcombine.high %v648_v34, %v652_v35  ;;  %v700_v30 = vld [vmem:[%s10376_s4 + $0x528] sm:$0xff]  ;;  %v6276_v31 = vcombine.low %v687_v19, %v691_v20  ;;  %v743_v20 = vld [vmem:[%s10376_s4 + $0x680] sm:$0xff] }
 0x251   :  { %6123 = vmatmul.mubr.msk.bf16.vlgmr.msra.gmra.mrb[8].mxu0 %vm6117_vm10, %v6118_v60  ;;  %v616_v60 = vld [vmem:[%s10376_s4 + $0x288] sm:$0xff]  ;;  %2144 = vmatpush1.bf16.msra.mxu1 %v6244_v36  ;;  %v707_v36 = vld [vmem:[%s10376_s4 + $0x560] sm:$0xff] }
 0x252   :  { %2196 = vmatpush1.bf16.msra.mxu0 %v6126_v39  ;;  %v6207_v15 = vcombine.high %v616_v60, %v620_v12  ;;  %v6206_v61 = vcombine.low %v616_v60, %v620_v12  ;;  %v667_v39 = vld [vmem:[%s10376_s4 + $0x420] sm:$0xff] }
 0x253   :  { %2197 = vmatprep.subr.bf16.mxu0 %v6135_v40  ;;  %v664_v40 = vld [vmem:[%s10376_s4 + $0x408] sm:$0xff]  ;;  %v6253_v42 = vcombine.high %v663_v38, %v667_v39  ;;  %v6252_v46 = vcombine.low %v663_v38, %v667_v39  ;;  %v679_v60 = vld [vmem:[%s10376_s4 + $0x480] sm:$0xff]  ;;  %v6284_v39 = vcombine.low %v695_v27, %v699_v28 }
 0x254   :  { %v683_v12 = vld [vmem:[%s10376_s4 + $0x4a0] sm:$0xff]  ;;  %v708_v38 = vld [vmem:[%s10376_s4 + $0x568] sm:$0xff] }
 0x255   :  { %2154 = vmatprep.subr.bf16.mxu1 %v6253_v42  ;;  %v6268_v23 = vcombine.low %v679_v60, %v683_v12 }
 0x256   :  { %2198 = vmatpush1.bf16.msra.mxu0 %v6134_v43  ;;  %v668_v43 = vld [vmem:[%s10376_s4 + $0x428] sm:$0xff] }
 0x257   :  { %2199 = vmatprep.subr.bf16.mxu0 %v6143_v44  ;;  %v656_v44 = vld [vmem:[%s10376_s4 + $0x3c8] sm:$0xff] }
 0x258   :  { %v6247_v49 = vcombine.high %v656_v44, %v660_v45  ;;  %v6246_v50 = vcombine.low %v656_v44, %v660_v45  ;;  %v715_v44 = vld [vmem:[%s10376_s4 + $0x5a0] sm:$0xff]  ;;  %v712_v45 = vld [vmem:[%s10376_s4 + $0x588] sm:$0xff] }
 0x25a   :  { %2200 = vmatpush1.bf16.msra.mxu0 %v6142_v47  ;;  %v6254_v47 = vcombine.low %v664_v40, %v668_v43 }
 0x25b   :  { %2201 = vmatprep.subr.bf16.mxu0 %v6151_v48  ;;  %v6238_v48 = vcombine.low %v648_v34, %v652_v35  ;;  %v703_v35 = vld [vmem:[%s10376_s4 + $0x540] sm:$0xff] }
 0x25e   :  { %2202 = vmatpush1.bf16.msra.mxu0 %v6150_v51  ;;  %v6255_v51 = vcombine.high %v664_v40, %v668_v43  ;;  %v711_v43 = vld [vmem:[%s10376_s4 + $0x580] sm:$0xff] }
 0x25f   :  { %2203 = vmatprep.subr.bf16.mxu0 %v6159_v52  ;;  %v8282_v52 = vsub.s32 0, %v7863_v9 }
 0x262   :  { %2204 = vmatpush1.bf16.msra.mxu0 %v6158_v55  ;;  %v225_v55 = vrot.slane %v8287_v53, %v8282_v52 }
 0x263   :  { %2205 = vmatprep.subr.bf16.mxu0 %v6167_v56  ;;  %v229_v56 = vrot.slane %v8287_v53, %v8290_v54 }
 0x266   :  { %2206 = vmatpush1.bf16.msra.mxu0 %v6166_v59 }
 0x267   :  { %2207 = vmatprep.subr.bf16.mxu0 %v6175_v62 }
 0x26a   :  { %2208 = vmatpush1.bf16.msra.mxu0 %v6174_v1 }
 0x26b   :  { %2209 = vmatprep.subr.bf16.mxu0 %v6183_v2  ;;  %v671_v2 = vld [vmem:[%s10376_s4 + $0x440] sm:$0xff] }
 0x26c   :  { %v6260_v16 = vcombine.low %v671_v2, %v675_v4 }
 0x26e   :  { %2210 = vmatpush1.bf16.msra.mxu0 %v6182_v5  ;;  %v672_v5 = vld [vmem:[%s10376_s4 + $0x448] sm:$0xff] }
 0x26f   :  { %2211 = vmatprep.subr.bf16.mxu0 %v6191_v6  ;;  %v676_v6 = vld [vmem:[%s10376_s4 + $0x468] sm:$0xff] }
 0x270   :  { %v6262_v17 = vcombine.low %v672_v5, %v676_v6 }
 0x272   :  { %2212 = vmatpush1.bf16.msra.mxu0 %v6190_v10  ;;  %v6261_v10 = vcombine.high %v671_v2, %v675_v4  ;;  %v728_v2 = vld [vmem:[%s10376_s4 + $0x608] sm:$0xff] }
 0x273   :  { %2213 = vmatprep.subr.bf16.mxu0 %v6199_v11  ;;  %v6263_v11 = vcombine.high %v672_v5, %v676_v6  ;;  %v8401_v6 = vsub.s32 3, %v7863_v9 }
 0x276   :  { %2214 = vmatpush1.bf16.msra.mxu0 %v6198_v13  ;;  %v680_v13 = vld [vmem:[%s10376_s4 + $0x488] sm:$0xff] }
 0x277   :  { %2215 = vmatprep.subr.bf16.mxu0 %v6207_v15  ;;  %v684_v15 = vld [vmem:[%s10376_s4 + $0x4a8] sm:$0xff] }
 0x27a   :  { %2216 = vmatpush1.bf16.msra.mxu0 %v6206_v61  ;;  %v6269_v61 = vcombine.high %v679_v60, %v683_v12  ;;  %v735_v60 = vld [vmem:[%s10376_s4 + $0x640] sm:$0xff] }
 0x27b   :  { %2217 = vmatprep.subr.bf16.mxu0 %v6215_v18  ;;  %v6271_v18 = vcombine.high %v680_v13, %v684_v15  ;;  %v739_v12 = vld [vmem:[%s10376_s4 + $0x660] sm:$0xff] }
 0x27c   :  { %v6324_v28 = vcombine.low %v735_v60, %v739_v12 }
 0x27e   :  { %2218 = vmatpush1.bf16.msra.mxu0 %v6214_v21  ;;  %v688_v21 = vld [vmem:[%s10376_s4 + $0x4c8] sm:$0xff] }
 0x27f   :  { %2219 = vmatprep.subr.bf16.mxu0 %v6223_v24  ;;  %v6270_v24 = vcombine.low %v680_v13, %v684_v15  ;;  %v6279_v26 = vcombine.high %v688_v21, %v692_v22  ;;  %v736_v13 = vld [vmem:[%s10376_s4 + $0x648] sm:$0xff] }
 0x280   :  { %v740_v15 = vld [vmem:[%s10376_s4 + $0x668] sm:$0xff] }
 0x281   :  { %v6327_v19 = vcombine.high %v736_v13, %v740_v15 }
 0x282   :  { %2220 = vmatpush1.bf16.msra.mxu0 %v6222_v29  ;;  %v696_v29 = vld [vmem:[%s10376_s4 + $0x508] sm:$0xff] }
 0x283   :  { %2221 = vmatprep.subr.bf16.mxu0 %v6231_v32  ;;  %v6278_v32 = vcombine.low %v688_v21, %v692_v22  ;;  %v6287_v34 = vcombine.high %v696_v29, %v700_v30  ;;  %v6286_v40 = vcombine.low %v696_v29, %v700_v30  ;;  %v747_v22 = vld [vmem:[%s10376_s4 + $0x6a0] sm:$0xff]  ;;  %v6326_v29 = vcombine.low %v736_v13, %v740_v15 }
 0x284   :  { %v783_v13 = vld [vmem:[%s10376_s4 + $0x7c0] sm:$0xff] }
 0x285   :  { %v787_v15 = vld [vmem:[%s10376_s4 + $0x7e0] sm:$0xff] }
 0x286   :  { %2222 = vmatpush1.bf16.msra.mxu0 %v6230_v37  ;;  %v704_v37 = vld [vmem:[%s10376_s4 + $0x548] sm:$0xff] }
 0x287   :  { %2223 = vmatprep.subr.bf16.mxu0 %v6239_v41  ;;  %v6293_v41 = vcombine.high %v703_v35, %v707_v36  ;;  %v6295_v42 = vcombine.high %v704_v37, %v708_v38 }
 0x28a   :  { %2224 = vmatpush1.bf16.msra.mxu0 %v6238_v48  ;;  %v6294_v48 = vcombine.low %v704_v37, %v708_v38  ;;  %v756_v37 = vld [vmem:[%s10376_s4 + $0x6e8] sm:$0xff] }
 0x28b   :  { %2225 = vmatprep.subr.bf16.mxu0 %v6247_v49  ;;  %v6301_v49 = vcombine.high %v711_v43, %v715_v44 }
 0x28e   :  { %2226 = vmatpush1.bf16.msra.mxu0 %v6246_v50 }
 0x28f   :  { %2236 = vmatprep.subr.bf16.mxu0 %v6255_v51  ;;  %v719_v51 = vld [vmem:[%s10376_s4 + $0x5c0] sm:$0xff] }
 0x2fc   :  { %v479_v57 = vpop.f32.mrb[4].mxu0 }
 0x2fd   :  { %v480_v58 = vadd.f32 %v479_v57, %v225_v55  ;;  %v481_v59 = vpop.f32.mrb[5].mxu0  ;;  %v723_v55 = vld [vmem:[%s10376_s4 + $0x5e0] sm:$0xff]  ;;  %v724_v57 = vld [vmem:[%s10376_s4 + $0x5e8] sm:$0xff] }
 0x2fe   :  { %v482_v62 = vadd.f32 %v481_v59, %v229_v56  ;;  %v483_v63 = vpop.f32.mrb[6].mxu0  ;;  %v720_v56 = vld [vmem:[%s10376_s4 + $0x5c8] sm:$0xff]  ;;  %v6308_v4 = vcombine.low %v719_v51, %v723_v55 }
 0x2ff   :  { %v527_v0 = vmax.f32 %v480_v58, 0.0  ;;  %v484_v1 = vpop.f32.mrb[7].mxu0  ;;  %v6300_v58 = vcombine.low %v711_v43, %v715_v44  ;;  %v6311_v63 = vcombine.high %v720_v56, %v724_v57  ;;  %v6310_v5 = vcombine.low %v720_v56, %v724_v57  ;;  %v759_v43 = vld [vmem:[%s10376_s4 + $0x700] sm:$0xff]  ;;  %v768_v56 = vld [vmem:[%s10376_s4 + $0x748] sm:$0xff] }
 0x300   :  { %v528_v3 = vmax.f32 %v482_v62, 0.0  ;;  %v6309_v62 = vcombine.high %v719_v51, %v723_v55  ;;  %v731_v1 = vld [vmem:[%s10376_s4 + $0x620] sm:$0xff]  ;;  %v772_v57 = vld [vmem:[%s10376_s4 + $0x768] sm:$0xff] }
 0x301   :  { %v8310_v8 = vpack.c.bf16 %v527_v0, %v527_v0  ;;  %v727_v0 = vld [vmem:[%s10376_s4 + $0x600] sm:$0xff] }
 0x302   :  { %v8308_v7 = vpack.c.bf16 %v528_v3, %v528_v3  ;;  %v732_v3 = vld [vmem:[%s10376_s4 + $0x628] sm:$0xff]  ;;  %v763_v44 = vld [vmem:[%s10376_s4 + $0x720] sm:$0xff] }
 0x303   :  { %v767_v51 = vld [vmem:[%s10376_s4 + $0x740] sm:$0xff] }
 0x304   :  { %2145 = vmatprep.mubr.bf16.mxu1 %v8308_v7  ;;  %2227 = vmatprep.mubr.bf16.mxu0 %v8308_v7  ;;  %v771_v55 = vld [vmem:[%s10376_s4 + $0x760] sm:$0xff] }
 0x305   :  { %2146 = vmatmul.mubr.bf16.vlgmr.msra.gmra.mrb[0].mxu1 %v8310_v8  ;;  %2228 = vmatmul.mubr.bf16.vlgmr.msra.gmra.mrb[12].mxu0 %v8310_v8 }
 0x306   :  { %2155 = vmatpush1.bf16.msra.mxu1 %v6252_v46  ;;  %2237 = vmatpush1.bf16.msra.mxu0 %v6254_v47  ;;  %v716_v46 = vld [vmem:[%s10376_s4 + $0x5a8] sm:$0xff]  ;;  %v6292_v47 = vcombine.low %v703_v35, %v707_v36  ;;  %v755_v35 = vld [vmem:[%s10376_s4 + $0x6e0] sm:$0xff] }
 0x307   :  { %2156 = vmatprep.subr.bf16.mxu1 %v6261_v10  ;;  %2238 = vmatprep.subr.bf16.mxu0 %v6263_v11  ;;  %v6303_v50 = vcombine.high %v712_v45, %v716_v46  ;;  %v6302_v59 = vcombine.low %v712_v45, %v716_v46  ;;  %v6317_v10 = vcombine.high %v727_v0, %v731_v1  ;;  %v752_v36 = vld [vmem:[%s10376_s4 + $0x6c8] sm:$0xff] }
 0x308   :  { %v6319_v11 = vcombine.high %v728_v2, %v732_v3  ;;  %v760_v45 = vld [vmem:[%s10376_s4 + $0x708] sm:$0xff] }
 0x309   :  { %v764_v46 = vld [vmem:[%s10376_s4 + $0x728] sm:$0xff] }
 0x30a   :  { %2157 = vmatpush1.bf16.msra.mxu1 %v6260_v16  ;;  %2239 = vmatpush1.bf16.msra.mxu0 %v6262_v17  ;;  %v237_v16 = vrot.slane %v8287_v53, %v8401_v6  ;;  %v6316_v17 = vcombine.low %v727_v0, %v731_v1  ;;  %v6359_v0 = vcombine.high %v768_v56, %v772_v57  ;;  %v775_v1 = vld [vmem:[%s10376_s4 + $0x780] sm:$0xff] }
 0x30b   :  { %2158 = vmatprep.subr.bf16.mxu1 %v6269_v61  ;;  %2240 = vmatprep.subr.bf16.mxu0 %v6271_v18  ;;  %v6318_v61 = vcombine.low %v728_v2, %v732_v3  ;;  %v6325_v18 = vcombine.high %v735_v60, %v739_v12  ;;  %v779_v2 = vld [vmem:[%s10376_s4 + $0x7a0] sm:$0xff]  ;;  %v776_v3 = vld [vmem:[%s10376_s4 + $0x788] sm:$0xff] }
 0x30c   :  { %v6365_v60 = vcombine.high %v775_v1, %v779_v2 }
 0x30e   :  { %2159 = vmatpush1.bf16.msra.mxu1 %v6268_v23  ;;  %2241 = vmatpush1.bf16.msra.mxu0 %v6270_v24  ;;  %v744_v23 = vld [vmem:[%s10376_s4 + $0x688] sm:$0xff] }
 0x30f   :  { %2160 = vmatprep.subr.bf16.mxu1 %v6277_v25  ;;  %2242 = vmatprep.subr.bf16.mxu0 %v6279_v26  ;;  %v748_v24 = vld [vmem:[%s10376_s4 + $0x6a8] sm:$0xff] }
 0x312   :  { %2161 = vmatpush1.bf16.msra.mxu1 %v6276_v31  ;;  %2243 = vmatpush1.bf16.msra.mxu0 %v6278_v32  ;;  %v6333_v31 = vcombine.high %v743_v20, %v747_v22  ;;  %v6335_v32 = vcombine.high %v744_v23, %v748_v24 }
 0x313   :  { %2162 = vmatprep.subr.bf16.mxu1 %v6285_v33  ;;  %2244 = vmatprep.subr.bf16.mxu0 %v6287_v34  ;;  %v751_v33 = vld [vmem:[%s10376_s4 + $0x6c0] sm:$0xff] }
 0x316   :  { %2163 = vmatpush1.bf16.msra.mxu1 %v6284_v39  ;;  %2245 = vmatpush1.bf16.msra.mxu0 %v6286_v40  ;;  %v6332_v39 = vcombine.low %v743_v20, %v747_v22  ;;  %v6334_v40 = vcombine.low %v744_v23, %v748_v24  ;;  %v537_v22 = vld [vmem:[%s10376_s4 + $0x10] sm:$0xff]  ;;  %v538_v24 = vld [vmem:[%s10376_s4 + $0x18] sm:$0xff] }
 0x317   :  { %2164 = vmatprep.subr.bf16.mxu1 %v6293_v41  ;;  %2246 = vmatprep.subr.bf16.mxu0 %v6295_v42  ;;  %v6341_v41 = vcombine.high %v751_v33, %v755_v35  ;;  %v6343_v42 = vcombine.high %v752_v36, %v756_v37  ;;  %v541_v23 = vld [vmem:[%s10376_s4 + $0x30] sm:$0xff] }
 0x31a   :  { %2165 = vmatpush1.bf16.msra.mxu1 %v6292_v47  ;;  %2247 = vmatpush1.bf16.msra.mxu0 %v6294_v48  ;;  %v6340_v47 = vcombine.low %v751_v33, %v755_v35  ;;  %v6342_v48 = vcombine.low %v752_v36, %v756_v37  ;;  %v550_v33 = vld [vmem:[%s10376_s4 + $0x78] sm:$0xff] }
 0x31b   :  { %2166 = vmatprep.subr.bf16.mxu1 %v6301_v49  ;;  %2248 = vmatprep.subr.bf16.mxu0 %v6303_v50  ;;  %v6349_v49 = vcombine.high %v759_v43, %v763_v44  ;;  %v6351_v50 = vcombine.high %v760_v45, %v764_v46 }
 0x31e   :  { %2167 = vmatpush1.bf16.msra.mxu1 %v6300_v58  ;;  %2249 = vmatpush1.bf16.msra.mxu0 %v6302_v59  ;;  %v6348_v58 = vcombine.low %v759_v43, %v763_v44  ;;  %v6350_v59 = vcombine.low %v760_v45, %v764_v46  ;;  %v558_v43 = vld [vmem:[%s10376_s4 + $0xb8] sm:$0xff] }
 0x31f   :  { %2168 = vmatprep.subr.bf16.mxu1 %v6309_v62  ;;  %2250 = vmatprep.subr.bf16.mxu0 %v6311_v63  ;;  %v8472_v62 = vsub.s32 2, %v7863_v9  ;;  %v6357_v63 = vcombine.high %v767_v51, %v771_v55 }
 0x322   :  { %2169 = vmatpush1.bf16.msra.mxu1 %v6308_v4  ;;  %2251 = vmatpush1.bf16.msra.mxu0 %v6310_v5  ;;  %v780_v4 = vld [vmem:[%s10376_s4 + $0x7a8] sm:$0xff]  ;;  %v6356_v5 = vcombine.low %v767_v51, %v771_v55 }
 0x323   :  { %2170 = vmatprep.subr.bf16.mxu1 %v6317_v10  ;;  %2252 = vmatprep.subr.bf16.mxu0 %v6319_v11  ;;  %v6358_v10 = vcombine.low %v768_v56, %v772_v57  ;;  %v233_v11 = vrot.slane %v8287_v53, %v8472_v62  ;;  %v6367_v12 = vcombine.high %v776_v3, %v780_v4  ;;  %v788_v53 = vld [vmem:[%s10376_s4 + $0x7e8] sm:$0xff] }
 0x324   :  { %v8420_v21 = vpop.f32.mrb[8].mxu0 }
 0x325   :  { %v522_v25 = vpop.f32.mrb[9].mxu0 }
 0x326   :  { %v523_v26 = vadd.f32 %v522_v25, %v237_v16  ;;  %v524_v27 = vpop.f32.mrb[10].mxu0  ;;  %2171 = vmatpush1.bf16.msra.mxu1 %v6316_v17  ;;  %2253 = vmatpush1.bf16.msra.mxu0 %v6318_v61  ;;  %v784_v16 = vld [vmem:[%s10376_s4 + $0x7c8] sm:$0xff]  ;;  %v6364_v17 = vcombine.low %v775_v1, %v779_v2  ;;  %v6366_v61 = vcombine.low %v776_v3, %v780_v4 }
 0x327   :  { %v525_v30 = vpop.f32.mrb[11].mxu0  ;;  %2172 = vmatprep.subr.bf16.mxu1 %v6325_v18  ;;  %2254 = vmatprep.subr.bf16.mxu0 %v6327_v19  ;;  %v521_v18 = vadd.f32 %v8420_v21, %v233_v11  ;;  %v6373_v19 = vcombine.high %v783_v13, %v787_v15  ;;  %v6375_v20 = vcombine.high %v784_v16, %v788_v53  ;;  %v542_v21 = vld [vmem:[%s10376_s4 + $0x38] sm:$0xff] }
 0x328   :  { %v530_v34 = vmax.f32 %v523_v26, 0.0  ;;  %v6372_v25 = vcombine.low %v783_v13, %v787_v15  ;;  %v6374_v26 = vcombine.low %v784_v16, %v788_v53  ;;  %v545_v30 = vld [vmem:[%s10376_s4 + $0x50] sm:$0xff]  ;;  %v6130_v36 = vcombine.low %v538_v24, %v542_v21  ;;  %v578_v11 = vld [vmem:[%s10376_s4 + $0x158] sm:$0xff] }
 0x329   :  { %v529_v27 = vmax.f32 %v521_v18, 0.0  ;;  %v585_v53 = vld [vmem:[%s10376_s4 + $0x190] sm:$0xff]  ;;  %v590_v18 = vld [vmem:[%s10376_s4 + $0x1b8] sm:$0xff] }
 0x32a   :  { %v8443_v38 = vpack.c.bf16 %v530_v34, %v530_v34  ;;  %2173 = vmatpush1.bf16.msra.mxu1 %v6324_v28  ;;  %2255 = vmatpush1.bf16.msra.mxu0 %v6326_v29  ;;  %v6129_v28 = vcombine.high %v537_v22, %v541_v23  ;;  %v6131_v29 = vcombine.high %v538_v24, %v542_v21  ;;  %v593_v24 = vld [vmem:[%s10376_s4 + $0x1d0] sm:$0xff] }
 0x32b   :  { %2174 = vmatprep.subr.bf16.mxu1 %v6333_v31  ;;  %2256 = vmatprep.subr.bf16.mxu0 %v6335_v32  ;;  %v549_v31 = vld [vmem:[%s10376_s4 + $0x70] sm:$0xff]  ;;  %v546_v32 = vld [vmem:[%s10376_s4 + $0x58] sm:$0xff]  ;;  %v6128_v34 = vcombine.low %v537_v22, %v541_v23  ;;  %v8525_v35 = vpack.c.bf16 %v529_v27, %v529_v27 }
 0x32c   :  { %2186 = vmatprep.mubr.bf16.mxu1 %v8443_v38  ;;  %2268 = vmatprep.mubr.bf16.mxu0 %v8443_v38  ;;  %v6137_v37 = vcombine.high %v545_v30, %v549_v31  ;;  %v6136_v44 = vcombine.low %v545_v30, %v549_v31  ;;  %v6138_v45 = vcombine.low %v546_v32, %v550_v33  ;;  %v597_v21 = vld [vmem:[%s10376_s4 + $0x1f0] sm:$0xff] }
 0x32d   :  { %v601_v31 = vld [vmem:[%s10376_s4 + $0x210] sm:$0xff] }
 0x32e   :  { %2175 = vmatpush1.bf16.msra.mxu1 %v6332_v39  ;;  %2257 = vmatpush1.bf16.msra.mxu0 %v6334_v40  ;;  %v6139_v39 = vcombine.high %v546_v32, %v550_v33  ;;  %v553_v40 = vld [vmem:[%s10376_s4 + $0x90] sm:$0xff]  ;;  %v602_v33 = vld [vmem:[%s10376_s4 + $0x218] sm:$0xff] }
 0x32f   :  { %2176 = vmatprep.subr.bf16.mxu1 %v6341_v41  ;;  %2258 = vmatprep.subr.bf16.mxu0 %v6343_v42  ;;  %v557_v41 = vld [vmem:[%s10376_s4 + $0xb0] sm:$0xff]  ;;  %v554_v42 = vld [vmem:[%s10376_s4 + $0x98] sm:$0xff] }
 0x330   :  { %v6145_v46 = vcombine.high %v553_v40, %v557_v41  ;;  %v6144_v51 = vcombine.low %v553_v40, %v557_v41  ;;  %v6146_v55 = vcombine.low %v554_v42, %v558_v43  ;;  %v605_v32 = vld [vmem:[%s10376_s4 + $0x230] sm:$0xff] }
 0x331   :  { %v609_v41 = vld [vmem:[%s10376_s4 + $0x250] sm:$0xff] }
 0x332   :  { %2177 = vmatpush1.bf16.msra.mxu1 %v6340_v47  ;;  %2259 = vmatpush1.bf16.msra.mxu0 %v6342_v48  ;;  %v6147_v47 = vcombine.high %v554_v42, %v558_v43  ;;  %v561_v48 = vld [vmem:[%s10376_s4 + $0xd0] sm:$0xff]  ;;  %v610_v43 = vld [vmem:[%s10376_s4 + $0x258] sm:$0xff] }
 0x333   :  { %2178 = vmatprep.subr.bf16.mxu1 %v6349_v49  ;;  %2260 = vmatprep.subr.bf16.mxu0 %v6351_v50  ;;  %v565_v49 = vld [vmem:[%s10376_s4 + $0xf0] sm:$0xff]  ;;  %v562_v50 = vld [vmem:[%s10376_s4 + $0xd8] sm:$0xff] }
 0x334   :  { %v6153_v56 = vcombine.high %v561_v48, %v565_v49  ;;  %v6152_v1 = vcombine.low %v561_v48, %v565_v49  ;;  %v613_v42 = vld [vmem:[%s10376_s4 + $0x270] sm:$0xff] }
 0x335   :  { %v617_v49 = vld [vmem:[%s10376_s4 + $0x290] sm:$0xff] }
 0x336   :  { %2179 = vmatpush1.bf16.msra.mxu1 %v6348_v58  ;;  %2261 = vmatpush1.bf16.msra.mxu0 %v6350_v59  ;;  %v569_v58 = vld [vmem:[%s10376_s4 + $0x110] sm:$0xff] }
 0x337   :  { %2180 = vmatprep.subr.bf16.mxu1 %v6357_v63  ;;  %2262 = vmatprep.subr.bf16.mxu0 %v6359_v0  ;;  %v573_v59 = vld [vmem:[%s10376_s4 + $0x130] sm:$0xff]  ;;  %v570_v63 = vld [vmem:[%s10376_s4 + $0x118] sm:$0xff] }
 0x338   :  { %v574_v0 = vld [vmem:[%s10376_s4 + $0x138] sm:$0xff]  ;;  %v6161_v3 = vcombine.high %v569_v58, %v573_v59 }
 0x339   :  { %v6163_v4 = vcombine.high %v570_v63, %v574_v0  ;;  %v6162_v13 = vcombine.low %v570_v63, %v574_v0  ;;  %v629_v63 = vld [vmem:[%s10376_s4 + $0x2f0] sm:$0xff]  ;;  %v626_v0 = vld [vmem:[%s10376_s4 + $0x2d8] sm:$0xff] }
 0x33a   :  { %2181 = vmatpush1.bf16.msra.mxu1 %v6356_v5  ;;  %2263 = vmatpush1.bf16.msra.mxu0 %v6358_v10  ;;  %v577_v5 = vld [vmem:[%s10376_s4 + $0x150] sm:$0xff] }
 0x33b   :  { %2182 = vmatprep.subr.bf16.mxu1 %v6365_v60  ;;  %2264 = vmatprep.subr.bf16.mxu0 %v6367_v12  ;;  %v581_v10 = vld [vmem:[%s10376_s4 + $0x170] sm:$0xff]  ;;  %v582_v60 = vld [vmem:[%s10376_s4 + $0x178] sm:$0xff]  ;;  %v6160_v12 = vcombine.low %v569_v58, %v573_v59 }
 0x33c   :  { %v6169_v15 = vcombine.high %v577_v5, %v581_v10  ;;  %v6171_v16 = vcombine.high %v578_v11, %v582_v60  ;;  %v625_v59 = vld [vmem:[%s10376_s4 + $0x2d0] sm:$0xff] }
 0x33e   :  { %2183 = vmatpush1.bf16.msra.mxu1 %v6364_v17  ;;  %2265 = vmatpush1.bf16.msra.mxu0 %v6366_v61  ;;  %v589_v17 = vld [vmem:[%s10376_s4 + $0x1b0] sm:$0xff]  ;;  %v586_v61 = vld [vmem:[%s10376_s4 + $0x198] sm:$0xff] }
 0x33f   :  { %2184 = vmatprep.subr.bf16.mxu1 %v6373_v19  ;;  %2266 = vmatprep.subr.bf16.mxu0 %v6375_v20  ;;  %v6168_v19 = vcombine.low %v577_v5, %v581_v10  ;;  %v6170_v20 = vcombine.low %v578_v11, %v582_v60  ;;  %v6177_v22 = vcombine.high %v585_v53, %v589_v17  ;;  %v633_v10 = vld [vmem:[%s10376_s4 + $0x310] sm:$0xff]  ;;  %v634_v60 = vld [vmem:[%s10376_s4 + $0x318] sm:$0xff] }
 0x340   :  { %v6179_v23 = vcombine.high %v586_v61, %v590_v18  ;;  %v6176_v27 = vcombine.low %v585_v53, %v589_v17  ;;  %v637_v11 = vld [vmem:[%s10376_s4 + $0x330] sm:$0xff] }
 0x341   :  { %v641_v17 = vld [vmem:[%s10376_s4 + $0x350] sm:$0xff] }
 0x342   :  { %2185 = vmatpush1.bf16.msra.mxu1 %v6372_v25  ;;  %2267 = vmatpush1.bf16.msra.mxu0 %v6374_v26  ;;  %v594_v25 = vld [vmem:[%s10376_s4 + $0x1d8] sm:$0xff] }
 0x343   :  { %2277 = vmatprep.subr.bf16.mxu1 %v6129_v28  ;;  %2359 = vmatprep.subr.bf16.mxu0 %v6131_v29  ;;  %v598_v26 = vld [vmem:[%s10376_s4 + $0x1f8] sm:$0xff]  ;;  %v6178_v28 = vcombine.low %v586_v61, %v590_v18  ;;  %v6185_v29 = vcombine.high %v593_v24, %v597_v21  ;;  %v645_v61 = vld [vmem:[%s10376_s4 + $0x370] sm:$0xff] }
 0x344   :  { %v6187_v30 = vcombine.high %v594_v25, %v598_v26  ;;  %v642_v18 = vld [vmem:[%s10376_s4 + $0x358] sm:$0xff] }
 0x345   :  { %2187 = vmatmul.mubr.bf16.vlgmr.msra.gmra.mrb[0].mxu1 %v8525_v35  ;;  %2269 = vmatmul.mubr.bf16.vlgmr.msra.gmra.mrb[12].mxu0 %v8525_v35 }
 0x346   :  { %2278 = vmatpush1.bf16.msra.mxu1 %v6128_v34  ;;  %2309 = vmatprep.mubr.bf16.mxu1 %v8308_v7  ;;  %v606_v34 = vld [vmem:[%s10376_s4 + $0x238] sm:$0xff] }
 0x347   :  { %2360 = vmatpush1.bf16.msra.mxu0 %v6130_v36  ;;  %2391 = vmatprep.mubr.bf16.mxu0 %v8308_v7  ;;  %v566_v7 = vld [vmem:[%s10376_s4 + $0xf8] sm:$0xff]  ;;  %v6184_v36 = vcombine.low %v593_v24, %v597_v21  ;;  %v6195_v40 = vcombine.high %v602_v33, %v606_v34  ;;  %v649_v21 = vld [vmem:[%s10376_s4 + $0x390] sm:$0xff] }
 0x348   :  { %2279 = vmatprep.subr.bf16.mxu1 %v6137_v37  ;;  %2361 = vmatprep.subr.bf16.mxu0 %v6139_v39  ;;  %v6155_v57 = vcombine.high %v562_v50, %v566_v7  ;;  %v6154_v2 = vcombine.low %v562_v50, %v566_v7  ;;  %v6186_v37 = vcombine.low %v594_v25, %v598_v26  ;;  %v621_v50 = vld [vmem:[%s10376_s4 + $0x2b0] sm:$0xff]  ;;  %v618_v7 = vld [vmem:[%s10376_s4 + $0x298] sm:$0xff] }
 0x349   :  { %v6193_v39 = vcombine.high %v601_v31, %v605_v32  ;;  %v653_v25 = vld [vmem:[%s10376_s4 + $0x3b0] sm:$0xff]  ;;  %v650_v26 = vld [vmem:[%s10376_s4 + $0x398] sm:$0xff] }
 0x34a   :  { %2280 = vmatpush1.bf16.msra.mxu1 %v6136_v44  ;;  %v614_v44 = vld [vmem:[%s10376_s4 + $0x278] sm:$0xff] }
 0x34b   :  { %2362 = vmatpush1.bf16.msra.mxu0 %v6138_v45  ;;  %2281 = vmatprep.subr.bf16.mxu1 %v6145_v46  ;;  %v6192_v45 = vcombine.low %v601_v31, %v605_v32  ;;  %v6194_v46 = vcombine.low %v602_v33, %v606_v34  ;;  %v6203_v48 = vcombine.high %v610_v43, %v614_v44  ;;  %v657_v32 = vld [vmem:[%s10376_s4 + $0x3d0] sm:$0xff]  ;;  %v658_v34 = vld [vmem:[%s10376_s4 + $0x3d8] sm:$0xff] }
 0x34c   :  { %2363 = vmatprep.subr.bf16.mxu0 %v6147_v47  ;;  %v6201_v47 = vcombine.high %v609_v41, %v613_v42  ;;  %v661_v33 = vld [vmem:[%s10376_s4 + $0x3f0] sm:$0xff] }
 0x34e   :  { %2282 = vmatpush1.bf16.msra.mxu1 %v6144_v51  ;;  %v622_v51 = vld [vmem:[%s10376_s4 + $0x2b8] sm:$0xff] }
 0x34f   :  { %2364 = vmatpush1.bf16.msra.mxu0 %v6146_v55  ;;  %2283 = vmatprep.subr.bf16.mxu1 %v6153_v56  ;;  %v6200_v55 = vcombine.low %v609_v41, %v613_v42  ;;  %v6202_v56 = vcombine.low %v610_v43, %v614_v44  ;;  %v6211_v58 = vcombine.high %v618_v7, %v622_v51  ;;  %v665_v42 = vld [vmem:[%s10376_s4 + $0x410] sm:$0xff]  ;;  %v666_v44 = vld [vmem:[%s10376_s4 + $0x418] sm:$0xff] }
 0x350   :  { %2365 = vmatprep.subr.bf16.mxu0 %v6155_v57  ;;  %v6209_v57 = vcombine.high %v617_v49, %v621_v50  ;;  %v669_v43 = vld [vmem:[%s10376_s4 + $0x430] sm:$0xff] }
 0x352   :  { %2284 = vmatpush1.bf16.msra.mxu1 %v6152_v1  ;;  %v630_v1 = vld [vmem:[%s10376_s4 + $0x2f8] sm:$0xff] }
 0x353   :  { %2366 = vmatpush1.bf16.msra.mxu0 %v6154_v2  ;;  %2285 = vmatprep.subr.bf16.mxu1 %v6161_v3  ;;  %v6208_v2 = vcombine.low %v617_v49, %v621_v50  ;;  %v6210_v3 = vcombine.low %v618_v7, %v622_v51  ;;  %v6219_v5 = vcombine.high %v626_v0, %v630_v1  ;;  %v673_v50 = vld [vmem:[%s10376_s4 + $0x450] sm:$0xff] }
 0x354   :  { %2367 = vmatprep.subr.bf16.mxu0 %v6163_v4  ;;  %v6217_v4 = vcombine.high %v625_v59, %v629_v63  ;;  %v677_v7 = vld [vmem:[%s10376_s4 + $0x470] sm:$0xff]  ;;  %v6256_v51 = vcombine.low %v665_v42, %v669_v43 }
 0x356   :  { %2286 = vmatpush1.bf16.msra.mxu1 %v6160_v12  ;;  %v638_v12 = vld [vmem:[%s10376_s4 + $0x338] sm:$0xff] }
 0x357   :  { %2368 = vmatpush1.bf16.msra.mxu0 %v6162_v13  ;;  %2287 = vmatprep.subr.bf16.mxu1 %v6169_v15  ;;  %v6216_v13 = vcombine.low %v625_v59, %v629_v63  ;;  %v6218_v15 = vcombine.low %v626_v0, %v630_v1  ;;  %v6227_v53 = vcombine.high %v634_v60, %v638_v12  ;;  %v681_v59 = vld [vmem:[%s10376_s4 + $0x490] sm:$0xff]  ;;  %v682_v1 = vld [vmem:[%s10376_s4 + $0x498] sm:$0xff] }
 0x358   :  { %2369 = vmatprep.subr.bf16.mxu0 %v6171_v16  ;;  %v6225_v16 = vcombine.high %v633_v10, %v637_v11  ;;  %v685_v63 = vld [vmem:[%s10376_s4 + $0x4b0] sm:$0xff] }
 0x35a   :  { %2288 = vmatpush1.bf16.msra.mxu1 %v6168_v19  ;;  %v646_v19 = vld [vmem:[%s10376_s4 + $0x378] sm:$0xff] }
 0x35b   :  { %2370 = vmatpush1.bf16.msra.mxu0 %v6170_v20  ;;  %2289 = vmatprep.subr.bf16.mxu1 %v6177_v22  ;;  %v6224_v20 = vcombine.low %v633_v10, %v637_v11  ;;  %v6226_v22 = vcombine.low %v634_v60, %v638_v12  ;;  %v6235_v24 = vcombine.high %v642_v18, %v646_v19  ;;  %v689_v11 = vld [vmem:[%s10376_s4 + $0x4d0] sm:$0xff]  ;;  %v694_v12 = vld [vmem:[%s10376_s4 + $0x4f8] sm:$0xff] }
 0x35c   :  { %2371 = vmatprep.subr.bf16.mxu0 %v6179_v23  ;;  %v6233_v23 = vcombine.high %v641_v17, %v645_v61  ;;  %v693_v60 = vld [vmem:[%s10376_s4 + $0x4f0] sm:$0xff] }
 0x35e   :  { %2290 = vmatpush1.bf16.msra.mxu1 %v6176_v27  ;;  %v654_v27 = vld [vmem:[%s10376_s4 + $0x3b8] sm:$0xff] }
 0x35f   :  { %2372 = vmatpush1.bf16.msra.mxu0 %v6178_v28  ;;  %2291 = vmatprep.subr.bf16.mxu1 %v6185_v29  ;;  %v6232_v28 = vcombine.low %v641_v17, %v645_v61  ;;  %v6234_v29 = vcombine.low %v642_v18, %v646_v19  ;;  %v6243_v31 = vcombine.high %v650_v26, %v654_v27  ;;  %v701_v17 = vld [vmem:[%s10376_s4 + $0x530] sm:$0xff]  ;;  %v698_v61 = vld [vmem:[%s10376_s4 + $0x518] sm:$0xff] }
 0x360   :  { %2373 = vmatprep.subr.bf16.mxu0 %v6187_v30  ;;  %v6241_v30 = vcombine.high %v649_v21, %v653_v25  ;;  %v702_v18 = vld [vmem:[%s10376_s4 + $0x538] sm:$0xff]  ;;  %v6280_v19 = vcombine.low %v689_v11, %v693_v60 }
 0x362   :  { %2292 = vmatpush1.bf16.msra.mxu1 %v6184_v36  ;;  %v662_v36 = vld [vmem:[%s10376_s4 + $0x3f8] sm:$0xff] }
 0x363   :  { %2374 = vmatpush1.bf16.msra.mxu0 %v6186_v37  ;;  %2293 = vmatprep.subr.bf16.mxu1 %v6193_v39  ;;  %v6240_v37 = vcombine.low %v649_v21, %v653_v25  ;;  %v6242_v39 = vcombine.low %v650_v26, %v654_v27  ;;  %v6251_v41 = vcombine.high %v658_v34, %v662_v36  ;;  %v709_v21 = vld [vmem:[%s10376_s4 + $0x570] sm:$0xff]  ;;  %v706_v25 = vld [vmem:[%s10376_s4 + $0x558] sm:$0xff] }
 0x364   :  { %2375 = vmatprep.subr.bf16.mxu0 %v6195_v40  ;;  %v6249_v40 = vcombine.high %v657_v32, %v661_v33  ;;  %v710_v26 = vld [vmem:[%s10376_s4 + $0x578] sm:$0xff] }
 0x366   :  { %2294 = vmatpush1.bf16.msra.mxu1 %v6192_v45  ;;  %v670_v45 = vld [vmem:[%s10376_s4 + $0x438] sm:$0xff] }
 0x367   :  { %2376 = vmatpush1.bf16.msra.mxu0 %v6194_v46  ;;  %2295 = vmatprep.subr.bf16.mxu1 %v6201_v47  ;;  %v6248_v46 = vcombine.low %v657_v32, %v661_v33  ;;  %v6250_v47 = vcombine.low %v658_v34, %v662_v36  ;;  %v6259_v49 = vcombine.high %v666_v44, %v670_v45  ;;  %v717_v32 = vld [vmem:[%s10376_s4 + $0x5b0] sm:$0xff]  ;;  %v714_v33 = vld [vmem:[%s10376_s4 + $0x598] sm:$0xff] }
 0x368   :  { %2377 = vmatprep.subr.bf16.mxu0 %v6203_v48  ;;  %v6257_v48 = vcombine.high %v665_v42, %v669_v43  ;;  %v718_v34 = vld [vmem:[%s10376_s4 + $0x5b8] sm:$0xff]  ;;  %v725_v42 = vld [vmem:[%s10376_s4 + $0x5f0] sm:$0xff] }
 0x369   :  { %v722_v43 = vld [vmem:[%s10376_s4 + $0x5d8] sm:$0xff] }
 0x36a   :  { %2296 = vmatpush1.bf16.msra.mxu1 %v6200_v55  ;;  %v674_v55 = vld [vmem:[%s10376_s4 + $0x458] sm:$0xff] }
 0x36b   :  { %2378 = vmatpush1.bf16.msra.mxu0 %v6202_v56  ;;  %2297 = vmatprep.subr.bf16.mxu1 %v6209_v57  ;;  %v678_v56 = vld [vmem:[%s10376_s4 + $0x478] sm:$0xff]  ;;  %v6258_v57 = vcombine.low %v666_v44, %v670_v45 }
 0x36c   :  { %2379 = vmatprep.subr.bf16.mxu0 %v6211_v58  ;;  %v6265_v58 = vcombine.high %v673_v50, %v677_v7  ;;  %v6267_v0 = vcombine.high %v674_v55, %v678_v56  ;;  %v726_v44 = vld [vmem:[%s10376_s4 + $0x5f8] sm:$0xff] }
 0x36e   :  { %2298 = vmatpush1.bf16.msra.mxu1 %v6208_v2  ;;  %v686_v2 = vld [vmem:[%s10376_s4 + $0x4b8] sm:$0xff] }
 0x36f   :  { %2380 = vmatpush1.bf16.msra.mxu0 %v6210_v3  ;;  %2299 = vmatprep.subr.bf16.mxu1 %v6217_v4  ;;  %v6264_v3 = vcombine.low %v673_v50, %v677_v7  ;;  %v6266_v4 = vcombine.low %v674_v55, %v678_v56  ;;  %v6275_v10 = vcombine.high %v682_v1, %v686_v2  ;;  %v733_v50 = vld [vmem:[%s10376_s4 + $0x630] sm:$0xff]  ;;  %v730_v7 = vld [vmem:[%s10376_s4 + $0x618] sm:$0xff] }
 0x370   :  { %2381 = vmatprep.subr.bf16.mxu0 %v6219_v5  ;;  %v6273_v5 = vcombine.high %v681_v59, %v685_v63  ;;  %v6314_v56 = vcombine.low %v722_v43, %v726_v44 }
 0x372   :  { %2300 = vmatpush1.bf16.msra.mxu1 %v6216_v13  ;;  %v6274_v13 = vcombine.low %v682_v1, %v686_v2  ;;  %v742_v1 = vld [vmem:[%s10376_s4 + $0x678] sm:$0xff] }
 0x373   :  { %2382 = vmatpush1.bf16.msra.mxu0 %v6218_v15  ;;  %2301 = vmatprep.subr.bf16.mxu1 %v6225_v16  ;;  %v6281_v15 = vcombine.high %v689_v11, %v693_v60  ;;  %v749_v11 = vld [vmem:[%s10376_s4 + $0x6b0] sm:$0xff]  ;;  %v746_v60 = vld [vmem:[%s10376_s4 + $0x698] sm:$0xff] }
 0x374   :  { %2383 = vmatprep.subr.bf16.mxu0 %v6227_v53  ;;  %v697_v53 = vld [vmem:[%s10376_s4 + $0x510] sm:$0xff] }
 0x375   :  { %v6288_v27 = vcombine.low %v697_v53, %v701_v17 }
 0x376   :  { %2302 = vmatpush1.bf16.msra.mxu1 %v6224_v20 }
 0x377   :  { %2384 = vmatpush1.bf16.msra.mxu0 %v6226_v22  ;;  %2303 = vmatprep.subr.bf16.mxu1 %v6233_v23  ;;  %v6289_v22 = vcombine.high %v697_v53, %v701_v17  ;;  %v6291_v23 = vcombine.high %v698_v61, %v702_v18  ;;  %v757_v53 = vld [vmem:[%s10376_s4 + $0x6f0] sm:$0xff]  ;;  %v754_v17 = vld [vmem:[%s10376_s4 + $0x6d8] sm:$0xff] }
 0x378   :  { %2385 = vmatprep.subr.bf16.mxu0 %v6235_v24  ;;  %v705_v24 = vld [vmem:[%s10376_s4 + $0x550] sm:$0xff] }
 0x379   :  { %v6296_v36 = vcombine.low %v705_v24, %v709_v21 }
 0x37a   :  { %2304 = vmatpush1.bf16.msra.mxu1 %v6232_v28  ;;  %v6290_v28 = vcombine.low %v698_v61, %v702_v18  ;;  %v758_v61 = vld [vmem:[%s10376_s4 + $0x6f8] sm:$0xff] }
 0x37b   :  { %2386 = vmatpush1.bf16.msra.mxu0 %v6234_v29  ;;  %2305 = vmatprep.subr.bf16.mxu1 %v6241_v30  ;;  %v6297_v29 = vcombine.high %v705_v24, %v709_v21  ;;  %v6299_v30 = vcombine.high %v706_v25, %v710_v26  ;;  %v765_v24 = vld [vmem:[%s10376_s4 + $0x730] sm:$0xff]  ;;  %v762_v21 = vld [vmem:[%s10376_s4 + $0x718] sm:$0xff] }
 0x37c   :  { %2387 = vmatprep.subr.bf16.mxu0 %v6243_v31  ;;  %v713_v31 = vld [vmem:[%s10376_s4 + $0x590] sm:$0xff] }
 0x37d   :  { %v6304_v45 = vcombine.low %v713_v31, %v717_v32 }
 0x37e   :  { %2306 = vmatpush1.bf16.msra.mxu1 %v6240_v37  ;;  %v6298_v37 = vcombine.low %v706_v25, %v710_v26  ;;  %v766_v25 = vld [vmem:[%s10376_s4 + $0x738] sm:$0xff] }
 0x37f   :  { %2388 = vmatpush1.bf16.msra.mxu0 %v6242_v39  ;;  %2307 = vmatprep.subr.bf16.mxu1 %v6249_v40  ;;  %v6305_v39 = vcombine.high %v713_v31, %v717_v32  ;;  %v6307_v40 = vcombine.high %v714_v33, %v718_v34  ;;  %v773_v31 = vld [vmem:[%s10376_s4 + $0x770] sm:$0xff]  ;;  %v770_v32 = vld [vmem:[%s10376_s4 + $0x758] sm:$0xff] }
 0x380   :  { %2389 = vmatprep.subr.bf16.mxu0 %v6251_v41  ;;  %v721_v41 = vld [vmem:[%s10376_s4 + $0x5d0] sm:$0xff] }
 0x381   :  { %v6312_v55 = vcombine.low %v721_v41, %v725_v42 }
 0x382   :  { %2308 = vmatpush1.bf16.msra.mxu1 %v6248_v46  ;;  %v6306_v46 = vcombine.low %v714_v33, %v718_v34  ;;  %v774_v33 = vld [vmem:[%s10376_s4 + $0x778] sm:$0xff] }
 0x383   :  { %2390 = vmatpush1.bf16.msra.mxu0 %v6250_v47  ;;  %2318 = vmatprep.subr.bf16.mxu1 %v6257_v48  ;;  %v6313_v47 = vcombine.high %v721_v41, %v725_v42  ;;  %v6315_v48 = vcombine.high %v722_v43, %v726_v44  ;;  %v781_v41 = vld [vmem:[%s10376_s4 + $0x7b0] sm:$0xff]  ;;  %v778_v42 = vld [vmem:[%s10376_s4 + $0x798] sm:$0xff] }
 0x384   :  { %2400 = vmatprep.subr.bf16.mxu0 %v6259_v49  ;;  %v729_v49 = vld [vmem:[%s10376_s4 + $0x610] sm:$0xff]  ;;  %v782_v43 = vld [vmem:[%s10376_s4 + $0x7b8] sm:$0xff] }
 0x385   :  { %2310 = vmatmul.mubr.bf16.vlgmr.msra.gmra.mrb[4].mxu1 %v8310_v8  ;;  %v6320_v2 = vcombine.low %v729_v49, %v733_v50 }
 0x386   :  { %2392 = vmatmul.mubr.bf16.vlgmr.msra.gmra.mrb[16].mxu0 %v8310_v8  ;;  %2319 = vmatpush1.bf16.msra.mxu1 %v6256_v51  ;;  %v690_v8 = vld [vmem:[%s10376_s4 + $0x4d8] sm:$0xff] }
 0x387   :  { %2350 = vmatprep.mubr.bf16.mxu1 %v8443_v38  ;;  %2401 = vmatpush1.bf16.msra.mxu0 %v6258_v57  ;;  %v6283_v16 = vcombine.high %v690_v8, %v694_v12  ;;  %v6282_v20 = vcombine.low %v690_v8, %v694_v12  ;;  %v734_v51 = vld [vmem:[%s10376_s4 + $0x638] sm:$0xff]  ;;  %v6321_v57 = vcombine.high %v729_v49, %v733_v50  ;;  %v789_v49 = vld [vmem:[%s10376_s4 + $0x7f0] sm:$0xff] }
 0x388   :  { %2432 = vmatprep.mubr.bf16.mxu0 %v8443_v38  ;;  %2320 = vmatprep.subr.bf16.mxu1 %v6265_v58  ;;  %v6272_v38 = vcombine.low %v681_v59, %v685_v63  ;;  %v6323_v58 = vcombine.high %v730_v7, %v734_v51  ;;  %v737_v59 = vld [vmem:[%s10376_s4 + $0x650] sm:$0xff]  ;;  %v750_v8 = vld [vmem:[%s10376_s4 + $0x6b8] sm:$0xff] }
 0x389   :  { %2402 = vmatprep.subr.bf16.mxu0 %v6267_v0  ;;  %v741_v63 = vld [vmem:[%s10376_s4 + $0x670] sm:$0xff]  ;;  %v738_v0 = vld [vmem:[%s10376_s4 + $0x658] sm:$0xff] }
 0x38a   :  { %2321 = vmatpush1.bf16.msra.mxu1 %v6264_v3  ;;  %v6322_v3 = vcombine.low %v730_v7, %v734_v51  ;;  %v6328_v12 = vcombine.low %v737_v59, %v741_v63  ;;  %v786_v50 = vld [vmem:[%s10376_s4 + $0x7d8] sm:$0xff] }
 0x38b   :  { %2403 = vmatpush1.bf16.msra.mxu0 %v6266_v4  ;;  %2322 = vmatprep.subr.bf16.mxu1 %v6273_v5  ;;  %v6329_v4 = vcombine.high %v737_v59, %v741_v63  ;;  %v6331_v5 = vcombine.high %v738_v0, %v742_v1  ;;  %v790_v7 = vld [vmem:[%s10376_s4 + $0x7f8] sm:$0xff]  ;;  %v7079_v63 = vld [vmem:[%s10378_s6 + $0x4] ss:$28 sps:$4 sm:$0xff]  }
 0x38c   :  { %2404 = vmatprep.subr.bf16.mxu0 %v6275_v10  ;;  %v745_v10 = vld [vmem:[%s10376_s4 + $0x690] sm:$0xff]  ;;  %v6378_v59 = vcombine.low %v786_v50, %v790_v7 }
 0x38d   :  { %v6336_v18 = vcombine.low %v745_v10, %v749_v11 }
 0x38e   :  { %2323 = vmatpush1.bf16.msra.mxu1 %v6272_v38  ;;  %v6330_v38 = vcombine.low %v738_v0, %v742_v1  ;;  %v7082_v0 = vld [vmem:[%s10378_s6 + $0xc] ss:$28 sps:$4 sm:$0xff]   ;;  %v7077_v1 = vld [vmem:[%s10378_s6] ss:$28 sps:$4 sm:$0xff]  }
 0x38f   :  { %2405 = vmatpush1.bf16.msra.mxu0 %v6274_v13  ;;  %2324 = vmatprep.subr.bf16.mxu1 %v6281_v15  ;;  %v6337_v13 = vcombine.high %v745_v10, %v749_v11  ;;  %v6339_v15 = vcombine.high %v746_v60, %v750_v8  ;;  %v7086_v10 = vld [vmem:[%s10378_s6 + $0x40] ss:$28 sps:$4 sm:$0xff]   ;;  %v7091_v11 = vld [vmem:[%s10378_s6 + $0x74] ss:$28 sps:$4 sm:$0xff]  }
 0x390   :  { %2406 = vmatprep.subr.bf16.mxu0 %v6283_v16  ;;  %v753_v16 = vld [vmem:[%s10376_s4 + $0x6d0] sm:$0xff] }
 0x391   :  { %v6344_v26 = vcombine.low %v753_v16, %v757_v53 }
 0x392   :  { %2325 = vmatpush1.bf16.msra.mxu1 %v6280_v19  ;;  %v6338_v19 = vcombine.low %v746_v60, %v750_v8  ;;  %v7089_v60 = vld [vmem:[%s10378_s6 + $0x70] ss:$28 sps:$4 sm:$0xff]   ;;  %v7092_v8 = vld [vmem:[%s10378_s6 + $0x78] ss:$28 sps:$4 sm:$0xff]  }
 0x393   :  { %2407 = vmatpush1.bf16.msra.mxu0 %v6282_v20  ;;  %2326 = vmatprep.subr.bf16.mxu1 %v6289_v22  ;;  %v6345_v20 = vcombine.high %v753_v16, %v757_v53  ;;  %v6347_v22 = vcombine.high %v754_v17, %v758_v61  ;;  %v7103_v16 = vld [vmem:[%s10378_s6 + $0xe4] ss:$28 sps:$4 sm:$0xff]   ;;  %v7106_v53 = vld [vmem:[%s10378_s6 + $0xec] ss:$28 sps:$4 sm:$0xff]  }
 0x394   :  { %2408 = vmatprep.subr.bf16.mxu0 %v6291_v23  ;;  %v761_v23 = vld [vmem:[%s10376_s4 + $0x710] sm:$0xff] }
 0x395   :  { %v6352_v34 = vcombine.low %v761_v23, %v765_v24 }
 0x396   :  { %2327 = vmatpush1.bf16.msra.mxu1 %v6288_v27  ;;  %v6346_v27 = vcombine.low %v754_v17, %v758_v61  ;;  %v7101_v17 = vld [vmem:[%s10378_s6 + $0xe0] ss:$28 sps:$4 sm:$0xff]   ;;  %v7104_v61 = vld [vmem:[%s10378_s6 + $0xe8] ss:$28 sps:$4 sm:$0xff]  }
 0x397   :  { %2409 = vmatpush1.bf16.msra.mxu0 %v6290_v28  ;;  %2328 = vmatprep.subr.bf16.mxu1 %v6297_v29  ;;  %v6353_v28 = vcombine.high %v761_v23, %v765_v24  ;;  %v6355_v29 = vcombine.high %v762_v21, %v766_v25  ;;  %v7115_v23 = vld [vmem:[%s10378_s6 + $0x154] ss:$28 sps:$4 sm:$0xff]   ;;  %v7118_v24 = vld [vmem:[%s10378_s6 + $0x15c] ss:$28 sps:$4 sm:$0xff]  }
 0x398   :  { %2410 = vmatprep.subr.bf16.mxu0 %v6299_v30  ;;  %v769_v30 = vld [vmem:[%s10376_s4 + $0x750] sm:$0xff] }
 0x399   :  { %v6360_v44 = vcombine.low %v769_v30, %v773_v31 }
 0x39a   :  { %2329 = vmatpush1.bf16.msra.mxu1 %v6296_v36  ;;  %v6354_v36 = vcombine.low %v762_v21, %v766_v25  ;;  %v7113_v21 = vld [vmem:[%s10378_s6 + $0x150] ss:$28 sps:$4 sm:$0xff]   ;;  %v7116_v25 = vld [vmem:[%s10378_s6 + $0x158] ss:$28 sps:$4 sm:$0xff]  }
 0x39b   :  { %2411 = vmatpush1.bf16.msra.mxu0 %v6298_v37  ;;  %2330 = vmatprep.subr.bf16.mxu1 %v6305_v39  ;;  %v6361_v37 = vcombine.high %v769_v30, %v773_v31  ;;  %v6363_v39 = vcombine.high %v770_v32, %v774_v33  ;;  %v7127_v30 = vld [vmem:[%s10378_s6 + $0x1c4] ss:$28 sps:$4 sm:$0xff]   ;;  %v7130_v31 = vld [vmem:[%s10378_s6 + $0x1cc] ss:$28 sps:$4 sm:$0xff]  }
 0x39c   :  { %2412 = vmatprep.subr.bf16.mxu0 %v6307_v40  ;;  %v777_v40 = vld [vmem:[%s10376_s4 + $0x790] sm:$0xff] }
 0x39d   :  { %v6368_v51 = vcombine.low %v777_v40, %v781_v41 }
 0x39e   :  { %2331 = vmatpush1.bf16.msra.mxu1 %v6304_v45  ;;  %v6362_v45 = vcombine.low %v770_v32, %v774_v33  ;;  %v7125_v32 = vld [vmem:[%s10378_s6 + $0x1c0] ss:$28 sps:$4 sm:$0xff]   ;;  %v7128_v33 = vld [vmem:[%s10378_s6 + $0x1c8] ss:$28 sps:$4 sm:$0xff]  }
 0x39f   :  { %2413 = vmatpush1.bf16.msra.mxu0 %v6306_v46  ;;  %2332 = vmatprep.subr.bf16.mxu1 %v6313_v47  ;;  %v6369_v46 = vcombine.high %v777_v40, %v781_v41  ;;  %v6371_v47 = vcombine.high %v778_v42, %v782_v43  ;;  %v7139_v40 = vld [vmem:[%s10378_s6 + $0x234] ss:$28 sps:$4 sm:$0xff]   ;;  %v7142_v41 = vld [vmem:[%s10378_s6 + $0x23c] ss:$28 sps:$4 sm:$0xff]  }
 0x3a0   :  { %2414 = vmatprep.subr.bf16.mxu0 %v6315_v48  ;;  %v785_v48 = vld [vmem:[%s10376_s4 + $0x7d0] sm:$0xff] }
 0x3a2   :  { %2333 = vmatpush1.bf16.msra.mxu1 %v6312_v55  ;;  %v6370_v55 = vcombine.low %v778_v42, %v782_v43  ;;  %v7137_v42 = vld [vmem:[%s10378_s6 + $0x230] ss:$28 sps:$4 sm:$0xff]   ;;  %v7140_v43 = vld [vmem:[%s10378_s6 + $0x238] ss:$28 sps:$4 sm:$0xff]  }
 0x3a3   :  { %2415 = vmatpush1.bf16.msra.mxu0 %v6314_v56  ;;  %2334 = vmatprep.subr.bf16.mxu1 %v6321_v57  ;;  %v6377_v56 = vcombine.high %v785_v48, %v789_v49  ;;  %v6379_v57 = vcombine.high %v786_v50, %v790_v7  ;;  %v7149_v50 = vld [vmem:[%s10378_s6 + $0x2a0] ss:$28 sps:$4 sm:$0xff]   ;;  %v7152_v7 = vld [vmem:[%s10378_s6 + $0x2a8] ss:$28 sps:$4 sm:$0xff]  }
 0x3a4   :  { %2416 = vmatprep.subr.bf16.mxu0 %v6323_v58  ;;  %v6376_v58 = vcombine.low %v785_v48, %v789_v49  ;;  %v7151_v48 = vld [vmem:[%s10378_s6 + $0x2a4] ss:$28 sps:$4 sm:$0xff]   ;;  %v7154_v49 = vld [vmem:[%s10378_s6 + $0x2ac] ss:$28 sps:$4 sm:$0xff]  }
 0x3a6   :  { %2335 = vmatpush1.bf16.msra.mxu1 %v6320_v2  ;;  %v7080_v2 = vld [vmem:[%s10378_s6 + $0x8] ss:$28 sps:$4 sm:$0xff]  }
 0x3a7   :  { %2417 = vmatpush1.bf16.msra.mxu0 %v6322_v3  ;;  %2336 = vmatprep.subr.bf16.mxu1 %v6329_v4  ;;  %v7085_v3 = vld [vmem:[%s10378_s6 + $0x3c] ss:$28 sps:$4 sm:$0xff]   ;;  %v7088_v4 = vld [vmem:[%s10378_s6 + $0x44] ss:$28 sps:$4 sm:$0xff]  }
 0x3a8   :  { %2418 = vmatprep.subr.bf16.mxu0 %v6331_v5  ;;  %v7083_v5 = vld [vmem:[%s10378_s6 + $0x38] ss:$28 sps:$4 sm:$0xff]  }
 0x3aa   :  { %2337 = vmatpush1.bf16.msra.mxu1 %v6328_v12  ;;  %v7097_v12 = vld [vmem:[%s10378_s6 + $0xac] ss:$28 sps:$4 sm:$0xff]  }
 0x3ab   :  { %2419 = vmatpush1.bf16.msra.mxu0 %v6330_v38  ;;  %2338 = vmatprep.subr.bf16.mxu1 %v6337_v13  ;;  %v7100_v38 = vld [vmem:[%s10378_s6 + $0xb4] ss:$28 sps:$4 sm:$0xff]   ;;  %v7095_v13 = vld [vmem:[%s10378_s6 + $0xa8] ss:$28 sps:$4 sm:$0xff]  }
 0x3ac   :  { %2420 = vmatprep.subr.bf16.mxu0 %v6339_v15  ;;  %v7098_v15 = vld [vmem:[%s10378_s6 + $0xb0] ss:$28 sps:$4 sm:$0xff]  }
 0x3ae   :  { %2339 = vmatpush1.bf16.msra.mxu1 %v6336_v18  ;;  %v7109_v18 = vld [vmem:[%s10378_s6 + $0x11c] ss:$28 sps:$4 sm:$0xff]  }
 0x3af   :  { %2421 = vmatpush1.bf16.msra.mxu0 %v6338_v19  ;;  %2340 = vmatprep.subr.bf16.mxu1 %v6345_v20  ;;  %v7112_v19 = vld [vmem:[%s10378_s6 + $0x124] ss:$28 sps:$4 sm:$0xff]   ;;  %v7107_v20 = vld [vmem:[%s10378_s6 + $0x118] ss:$28 sps:$4 sm:$0xff]  }
 0x3b0   :  { %2422 = vmatprep.subr.bf16.mxu0 %v6347_v22  ;;  %v7110_v22 = vld [vmem:[%s10378_s6 + $0x120] ss:$28 sps:$4 sm:$0xff]  }
 0x3b2   :  { %2341 = vmatpush1.bf16.msra.mxu1 %v6344_v26  ;;  %v7121_v26 = vld [vmem:[%s10378_s6 + $0x18c] ss:$28 sps:$4 sm:$0xff]  }
 0x3b3   :  { %2423 = vmatpush1.bf16.msra.mxu0 %v6346_v27  ;;  %2342 = vmatprep.subr.bf16.mxu1 %v6353_v28  ;;  %v7124_v27 = vld [vmem:[%s10378_s6 + $0x194] ss:$28 sps:$4 sm:$0xff]   ;;  %v7119_v28 = vld [vmem:[%s10378_s6 + $0x188] ss:$28 sps:$4 sm:$0xff]  }
 0x3b4   :  { %2424 = vmatprep.subr.bf16.mxu0 %v6355_v29  ;;  %v7122_v29 = vld [vmem:[%s10378_s6 + $0x190] ss:$28 sps:$4 sm:$0xff]  }
 0x3b6   :  { %2343 = vmatpush1.bf16.msra.mxu1 %v6352_v34  ;;  %v7133_v34 = vld [vmem:[%s10378_s6 + $0x1fc] ss:$28 sps:$4 sm:$0xff]  }
 0x3b7   :  { %2425 = vmatpush1.bf16.msra.mxu0 %v6354_v36  ;;  %2344 = vmatprep.subr.bf16.mxu1 %v6361_v37  ;;  %v7136_v36 = vld [vmem:[%s10378_s6 + $0x204] ss:$28 sps:$4 sm:$0xff]   ;;  %v7131_v37 = vld [vmem:[%s10378_s6 + $0x1f8] ss:$28 sps:$4 sm:$0xff]  }
 0x3b8   :  { %2426 = vmatprep.subr.bf16.mxu0 %v6363_v39  ;;  %v7134_v39 = vld [vmem:[%s10378_s6 + $0x200] ss:$28 sps:$4 sm:$0xff]  }
 0x3ba   :  { %2345 = vmatpush1.bf16.msra.mxu1 %v6360_v44  ;;  %v7145_v44 = vld [vmem:[%s10378_s6 + $0x26c] ss:$28 sps:$4 sm:$0xff]  }
 0x3bb   :  { %2427 = vmatpush1.bf16.msra.mxu0 %v6362_v45  ;;  %2346 = vmatprep.subr.bf16.mxu1 %v6369_v46  ;;  %v7148_v45 = vld [vmem:[%s10378_s6 + $0x274] ss:$28 sps:$4 sm:$0xff]   ;;  %v7143_v46 = vld [vmem:[%s10378_s6 + $0x268] ss:$28 sps:$4 sm:$0xff]  }
 0x3bc   :  { %2428 = vmatprep.subr.bf16.mxu0 %v6371_v47  ;;  %v7146_v47 = vld [vmem:[%s10378_s6 + $0x270] ss:$28 sps:$4 sm:$0xff]  }
 0x3be   :  { %2347 = vmatpush1.bf16.msra.mxu1 %v6368_v51  ;;  %v7157_v51 = vld [vmem:[%s10378_s6 + $0x2dc] ss:$28 sps:$4 sm:$0xff]  }
 0x3bf   :  { %2429 = vmatpush1.bf16.msra.mxu0 %v6370_v55  ;;  %2348 = vmatprep.subr.bf16.mxu1 %v6377_v56  ;;  %v7160_v55 = vld [vmem:[%s10378_s6 + $0x2e4] ss:$28 sps:$4 sm:$0xff]   ;;  %v7155_v56 = vld [vmem:[%s10378_s6 + $0x2d8] ss:$28 sps:$4 sm:$0xff]  }
 0x3c0   :  { %2430 = vmatprep.subr.bf16.mxu0 %v6379_v57  ;;  %v7158_v57 = vld [vmem:[%s10378_s6 + $0x2e0] ss:$28 sps:$4 sm:$0xff]  }
 0x3c2   :  { %2349 = vmatpush1.bf16.msra.mxu1 %v6376_v58  ;;  %v7163_v58 = vld [vmem:[%s10378_s6 + $0x314] ss:$28 sps:$4 sm:$0xff]  }
 0x3c3   :  { %2431 = vmatpush1.bf16.msra.mxu0 %v6378_v59  ;;  %5310 = vmatprep.subr.bf16.mxu1 %v7079_v63  ;;  %v7166_v59 = vld [vmem:[%s10378_s6 + $0x31c] ss:$28 sps:$4 sm:$0xff]   ;;  %v7161_v63 = vld [vmem:[%s10378_s6 + $0x310] ss:$28 sps:$4 sm:$0xff]  }
 0x3c4   :  { %5474 = vmatprep.subr.bf16.mxu0 %v7082_v0  ;;  %v7164_v0 = vld [vmem:[%s10378_s6 + $0x318] ss:$28 sps:$4 sm:$0xff]  }
 0x3c5   :  { %2351 = vmatmul.mubr.bf16.vlgmr.msra.gmra.mrb[4].mxu1 %v8525_v35 }
 0x3c6   :  { %2433 = vmatmul.mubr.bf16.vlgmr.msra.gmra.mrb[16].mxu0 %v8525_v35  ;;  %5311 = vmatpush1.bf16.msra.mxu1 %v7077_v1  ;;  %v7094_v35 = vld [vmem:[%s10378_s6 + $0x7c] ss:$28 sps:$4 sm:$0xff]   ;;  %v7169_v1 = vld [vmem:[%s10378_s6 + $0x34c] ss:$28 sps:$4 sm:$0xff]  }
 0x3c7   :  { %5475 = vmatpush1.bf16.msra.mxu0 %v7080_v2  ;;  %5312 = vmatprep.subr.bf16.mxu1 %v7085_v3  ;;  %v7172_v2 = vld [vmem:[%s10378_s6 + $0x354] ss:$28 sps:$4 sm:$0xff]   ;;  %v7167_v3 = vld [vmem:[%s10378_s6 + $0x348] ss:$28 sps:$4 sm:$0xff]  }
 0x3c8   :  { %5476 = vmatprep.subr.bf16.mxu0 %v7088_v4  ;;  %v7170_v4 = vld [vmem:[%s10378_s6 + $0x350] ss:$28 sps:$4 sm:$0xff]  }
 0x3ca   :  { %5313 = vmatpush1.bf16.msra.mxu1 %v7083_v5  ;;  %v7175_v5 = vld [vmem:[%s10378_s6 + $0x384] ss:$28 sps:$4 sm:$0xff]  }
 0x3cb   :  { %5477 = vmatpush1.bf16.msra.mxu0 %v7086_v10  ;;  %5314 = vmatprep.subr.bf16.mxu1 %v7091_v11  ;;  %v7178_v10 = vld [vmem:[%s10378_s6 + $0x38c] ss:$28 sps:$4 sm:$0xff]   ;;  %v9098_v11 = vld [vmem:[%s10377_s5] sm:$0xff] }
 0x3cc   :  { %5478 = vmatprep.subr.bf16.mxu0 %v7094_v35  ;;  %v796_v35 = vrot.slane %v9098_v11, %v8282_v52 }
 0x3ce   :  { %5315 = vmatpush1.bf16.msra.mxu1 %v7089_v60  ;;  %v800_v60 = vrot.slane %v9098_v11, %v8290_v54 }
 0x3cf   :  { %5479 = vmatpush1.bf16.msra.mxu0 %v7092_v8  ;;  %5316 = vmatprep.subr.bf16.mxu1 %v7097_v12  ;;  %v808_v8 = vrot.slane %v9098_v11, %v8401_v6 }
 0x3d0   :  { %5480 = vmatprep.subr.bf16.mxu0 %v7100_v38 }
 0x3d2   :  { %5317 = vmatpush1.bf16.msra.mxu1 %v7095_v13 }
 0x3d3   :  { %5481 = vmatpush1.bf16.msra.mxu0 %v7098_v15  ;;  %5318 = vmatprep.subr.bf16.mxu1 %v7103_v16 }
 0x3d4   :  { %5482 = vmatprep.subr.bf16.mxu0 %v7106_v53 }
 0x3d6   :  { %5319 = vmatpush1.bf16.msra.mxu1 %v7101_v17 }
 0x3d7   :  { %5483 = vmatpush1.bf16.msra.mxu0 %v7104_v61  ;;  %5320 = vmatprep.subr.bf16.mxu1 %v7109_v18 }
 0x3d8   :  { %5484 = vmatprep.subr.bf16.mxu0 %v7112_v19 }
 0x3da   :  { %5321 = vmatpush1.bf16.msra.mxu1 %v7107_v20 }
 0x3db   :  { %5485 = vmatpush1.bf16.msra.mxu0 %v7110_v22  ;;  %5322 = vmatprep.subr.bf16.mxu1 %v7115_v23 }
 0x3dc   :  { %5486 = vmatprep.subr.bf16.mxu0 %v7118_v24 }
 0x3de   :  { %5323 = vmatpush1.bf16.msra.mxu1 %v7113_v21 }
 0x3df   :  { %5487 = vmatpush1.bf16.msra.mxu0 %v7116_v25  ;;  %5324 = vmatprep.subr.bf16.mxu1 %v7121_v26  ;;  %v7173_v25 = vld [vmem:[%s10378_s6 + $0x380] ss:$28 sps:$4 sm:$0xff]   ;;  %v7176_v26 = vld [vmem:[%s10378_s6 + $0x388] ss:$28 sps:$4 sm:$0xff]  }
 0x3e0   :  { %5488 = vmatprep.subr.bf16.mxu0 %v7124_v27 }
 0x3e2   :  { %5325 = vmatpush1.bf16.msra.mxu1 %v7119_v28  ;;  %v7181_v28 = vld [vmem:[%s10378_s6 + $0x3bc] ss:$28 sps:$4 sm:$0xff]  }
 0x3e3   :  { %5489 = vmatpush1.bf16.msra.mxu0 %v7122_v29  ;;  %5326 = vmatprep.subr.bf16.mxu1 %v7127_v30  ;;  %v7184_v29 = vld [vmem:[%s10378_s6 + $0x3c4] ss:$28 sps:$4 sm:$0xff]  }
 0x3e4   :  { %5490 = vmatprep.subr.bf16.mxu0 %v7130_v31  ;;  %v7179_v31 = vld [vmem:[%s10378_s6 + $0x3b8] ss:$28 sps:$4 sm:$0xff]  }
 0x3e6   :  { %5327 = vmatpush1.bf16.msra.mxu1 %v7125_v32  ;;  %v7182_v32 = vld [vmem:[%s10378_s6 + $0x3c0] ss:$28 sps:$4 sm:$0xff]  }
 0x3e7   :  { %5491 = vmatpush1.bf16.msra.mxu0 %v7128_v33  ;;  %5328 = vmatprep.subr.bf16.mxu1 %v7133_v34  ;;  %v7187_v33 = vld [vmem:[%s10378_s6 + $0x3f4] ss:$28 sps:$4 sm:$0xff]   ;;  %v7190_v34 = vld [vmem:[%s10378_s6 + $0x3fc] ss:$28 sps:$4 sm:$0xff]  }
 0x3e8   :  { %5492 = vmatprep.subr.bf16.mxu0 %v7136_v36  ;;  %v7185_v36 = vld [vmem:[%s10378_s6 + $0x3f0] ss:$28 sps:$4 sm:$0xff]  }
 0x3ea   :  { %5329 = vmatpush1.bf16.msra.mxu1 %v7131_v37  ;;  %v7188_v37 = vld [vmem:[%s10378_s6 + $0x3f8] ss:$28 sps:$4 sm:$0xff]  }
 0x3eb   :  { %5493 = vmatpush1.bf16.msra.mxu0 %v7134_v39  ;;  %5330 = vmatprep.subr.bf16.mxu1 %v7139_v40  ;;  %v7193_v39 = vld [vmem:[%s10378_s6 + $0x42c] ss:$28 sps:$4 sm:$0xff]   ;;  %v7196_v40 = vld [vmem:[%s10378_s6 + $0x434] ss:$28 sps:$4 sm:$0xff]  }
 0x3ec   :  { %5494 = vmatprep.subr.bf16.mxu0 %v7142_v41  ;;  %v7191_v41 = vld [vmem:[%s10378_s6 + $0x428] ss:$28 sps:$4 sm:$0xff]  }
 0x3ee   :  { %5331 = vmatpush1.bf16.msra.mxu1 %v7137_v42  ;;  %v7194_v42 = vld [vmem:[%s10378_s6 + $0x430] ss:$28 sps:$4 sm:$0xff]  }
 0x3ef   :  { %5495 = vmatpush1.bf16.msra.mxu0 %v7140_v43  ;;  %5332 = vmatprep.subr.bf16.mxu1 %v7145_v44  ;;  %v7199_v43 = vld [vmem:[%s10378_s6 + $0x464] ss:$28 sps:$4 sm:$0xff]   ;;  %v7202_v44 = vld [vmem:[%s10378_s6 + $0x46c] ss:$28 sps:$4 sm:$0xff]  }
 0x3f0   :  { %5496 = vmatprep.subr.bf16.mxu0 %v7148_v45  ;;  %v7197_v45 = vld [vmem:[%s10378_s6 + $0x460] ss:$28 sps:$4 sm:$0xff]  }
 0x3f2   :  { %5333 = vmatpush1.bf16.msra.mxu1 %v7143_v46  ;;  %v7200_v46 = vld [vmem:[%s10378_s6 + $0x468] ss:$28 sps:$4 sm:$0xff]  }
 0x3f3   :  { %5497 = vmatpush1.bf16.msra.mxu0 %v7146_v47  ;;  %5334 = vmatprep.subr.bf16.mxu1 %v7151_v48  ;;  %v7205_v47 = vld [vmem:[%s10378_s6 + $0x49c] ss:$28 sps:$4 sm:$0xff]   ;;  %v7208_v48 = vld [vmem:[%s10378_s6 + $0x4a4] ss:$28 sps:$4 sm:$0xff]  }
 0x3f4   :  { %5498 = vmatprep.subr.bf16.mxu0 %v7154_v49  ;;  %v7203_v49 = vld [vmem:[%s10378_s6 + $0x498] ss:$28 sps:$4 sm:$0xff]  }
 0x3f6   :  { %5335 = vmatpush1.bf16.msra.mxu1 %v7149_v50  ;;  %v7206_v50 = vld [vmem:[%s10378_s6 + $0x4a0] ss:$28 sps:$4 sm:$0xff]  }
 0x3f7   :  { %5499 = vmatpush1.bf16.msra.mxu0 %v7152_v7  ;;  %5336 = vmatprep.subr.bf16.mxu1 %v7157_v51  ;;  %v7211_v7 = vld [vmem:[%s10378_s6 + $0x4d4] ss:$28 sps:$4 sm:$0xff]   ;;  %v7214_v51 = vld [vmem:[%s10378_s6 + $0x4dc] ss:$28 sps:$4 sm:$0xff]  }
 0x3f8   :  { %5500 = vmatprep.subr.bf16.mxu0 %v7160_v55  ;;  %v7209_v55 = vld [vmem:[%s10378_s6 + $0x4d0] ss:$28 sps:$4 sm:$0xff]  }
 0x3fa   :  { %5337 = vmatpush1.bf16.msra.mxu1 %v7155_v56  ;;  %v7212_v56 = vld [vmem:[%s10378_s6 + $0x4d8] ss:$28 sps:$4 sm:$0xff]  }
 0x3fb   :  { %5501 = vmatpush1.bf16.msra.mxu0 %v7158_v57  ;;  %5338 = vmatprep.subr.bf16.mxu1 %v7163_v58  ;;  %v7217_v57 = vld [vmem:[%s10378_s6 + $0x50c] ss:$28 sps:$4 sm:$0xff]   ;;  %v7220_v58 = vld [vmem:[%s10378_s6 + $0x514] ss:$28 sps:$4 sm:$0xff]  }
 0x3fc   :  { %5502 = vmatprep.subr.bf16.mxu0 %v7166_v59  ;;  %v7215_v59 = vld [vmem:[%s10378_s6 + $0x508] ss:$28 sps:$4 sm:$0xff]  }
 0x3fe   :  { %5339 = vmatpush1.bf16.msra.mxu1 %v7161_v63  ;;  %v7218_v63 = vld [vmem:[%s10378_s6 + $0x510] ss:$28 sps:$4 sm:$0xff]  }
 0x3ff   :  { %5503 = vmatpush1.bf16.msra.mxu0 %v7164_v0  ;;  %5340 = vmatprep.subr.bf16.mxu1 %v7169_v1  ;;  %v7223_v0 = vld [vmem:[%s10378_s6 + $0x544] ss:$28 sps:$4 sm:$0xff]   ;;  %v7226_v1 = vld [vmem:[%s10378_s6 + $0x54c] ss:$28 sps:$4 sm:$0xff]  }
 0x400   :  { %5504 = vmatprep.subr.bf16.mxu0 %v7172_v2  ;;  %v7221_v2 = vld [vmem:[%s10378_s6 + $0x540] ss:$28 sps:$4 sm:$0xff]  }
 0x402   :  { %5341 = vmatpush1.bf16.msra.mxu1 %v7167_v3  ;;  %v7224_v3 = vld [vmem:[%s10378_s6 + $0x548] ss:$28 sps:$4 sm:$0xff]  }
 0x403   :  { %5505 = vmatpush1.bf16.msra.mxu0 %v7170_v4  ;;  %5351 = vmatprep.subr.bf16.mxu1 %v7175_v5  ;;  %v7229_v4 = vld [vmem:[%s10378_s6 + $0x57c] ss:$28 sps:$4 sm:$0xff]   ;;  %v7232_v5 = vld [vmem:[%s10378_s6 + $0x584] ss:$28 sps:$4 sm:$0xff]  }
 0x404   :  { %5515 = vmatprep.subr.bf16.mxu0 %v7178_v10  ;;  %v7227_v10 = vld [vmem:[%s10378_s6 + $0x578] ss:$28 sps:$4 sm:$0xff]  }
 0x418   :  { %v2188_v12 = vpop.f32.mrb[0].mxu1  ;;  %v9106_v38 = vpop.f32.mrb[12].mxu0 }
 0x419   :  { %v6946_v13 = vadd.f32 %v2188_v12, %v796_v35  ;;  %v2190_v15 = vpop.f32.mrb[1].mxu1  ;;  %v2272_v16 = vpop.f32.mrb[13].mxu0  ;;  %v7230_v35 = vld [vmem:[%s10378_s6 + $0x580] ss:$28 sps:$4 sm:$0xff]   ;;  %v7233_v12 = vld [vmem:[%s10378_s6 + $0x5b0] ss:$28 sps:$4 sm:$0xff]  }
 0x41a   :  { %v6947_v53 = vadd.f32 %v2190_v15, %v800_v60  ;;  %v6949_v17 = vadd.f32 %v2272_v16, %v808_v8  ;;  %v2192_v61 = vpop.f32.mrb[2].mxu1  ;;  %v2274_v18 = vpop.f32.mrb[14].mxu0  ;;  %v7235_v60 = vld [vmem:[%s10378_s6 + $0x5b4] ss:$28 sps:$4 sm:$0xff]   ;;  %v7238_v8 = vld [vmem:[%s10378_s6 + $0x5bc] ss:$28 sps:$4 sm:$0xff]  }
 0x41b   :  { %v2441_v19 = vmax.f32 %v6946_v13, 0.0  ;;  %v2193_v20 = vpop.f32.mrb[3].mxu1  ;;  %v2275_v22 = vpop.f32.mrb[15].mxu0  ;;  %v7236_v13 = vld [vmem:[%s10378_s6 + $0x5b8] ss:$28 sps:$4 sm:$0xff]  }
 0x41c   :  { %v2442_v23 = vmax.f32 %v6947_v53, 0.0  ;;  %v2444_v24 = vmax.f32 %v6949_v17, 0.0  ;;  %v7241_v15 = vld [vmem:[%s10378_s6 + $0x5ec] ss:$28 sps:$4 sm:$0xff]   ;;  %v7244_v16 = vld [vmem:[%s10378_s6 + $0x5f4] ss:$28 sps:$4 sm:$0xff]  }
 0x41d   :  { %v9116_v27 = vpack.c.bf16 %v2441_v19, %v2441_v19  ;;  %v7239_v53 = vld [vmem:[%s10378_s6 + $0x5e8] ss:$28 sps:$4 sm:$0xff]   ;;  %v7242_v17 = vld [vmem:[%s10378_s6 + $0x5f0] ss:$28 sps:$4 sm:$0xff]   ;;  %v7245_v19 = vld [vmem:[%s10378_s6 + $0x620] ss:$28 sps:$4 sm:$0xff]  }
 0x41e   :  { %v9108_v21 = vpack.c.bf16 %v2442_v23, %v2442_v23  ;;  %v9126_v30 = vpack.c.bf16 %v2444_v24, %v2444_v24  ;;  %v7247_v61 = vld [vmem:[%s10378_s6 + $0x624] ss:$28 sps:$4 sm:$0xff]   ;;  %v7250_v18 = vld [vmem:[%s10378_s6 + $0x62c] ss:$28 sps:$4 sm:$0xff]   ;;  %v7253_v22 = vld [vmem:[%s10378_s6 + $0x65c] ss:$28 sps:$4 sm:$0xff]  }
 0x41f   :  { %v7248_v20 = vld [vmem:[%s10378_s6 + $0x628] ss:$28 sps:$4 sm:$0xff]   ;;  %v7251_v24 = vld [vmem:[%s10378_s6 + $0x658] ss:$28 sps:$4 sm:$0xff]  }
 0x420   :  { %5342 = vmatprep.mubr.bf16.mxu1 %v9108_v21  ;;  %5506 = vmatprep.mubr.bf16.mxu0 %v9108_v21  ;;  %v7256_v23 = vld [vmem:[%s10378_s6 + $0x664] ss:$28 sps:$4 sm:$0xff]  }
 0x421   :  { %5343 = vmatmul.mubr.bf16.vlgmr.msra.gmra.mrb[8].mxu1 %v9116_v27  ;;  %5507 = vmatmul.mubr.bf16.vlgmr.msra.gmra.mrb[20].mxu0 %v9116_v27 }
 0x422   :  { %5352 = vmatpush1.bf16.msra.mxu1 %v7173_v25  ;;  %5516 = vmatpush1.bf16.msra.mxu0 %v7176_v26  ;;  %v7254_v25 = vld [vmem:[%s10378_s6 + $0x660] ss:$28 sps:$4 sm:$0xff]   ;;  %v804_v26 = vrot.slane %v9098_v11, %v8472_v62 }
 0x423   :  { %5383 = vmatprep.mubr.bf16.mxu1 %v9126_v30  ;;  %5547 = vmatprep.mubr.bf16.mxu0 %v9126_v30 }
 0x424   :  { %5353 = vmatprep.subr.bf16.mxu1 %v7181_v28  ;;  %5517 = vmatprep.subr.bf16.mxu0 %v7184_v29  ;;  %v7259_v28 = vld [vmem:[%s10378_s6 + $0x694] ss:$28 sps:$4 sm:$0xff]   ;;  %v7262_v29 = vld [vmem:[%s10378_s6 + $0x69c] ss:$28 sps:$4 sm:$0xff]  }
 0x426   :  { %5354 = vmatpush1.bf16.msra.mxu1 %v7179_v31  ;;  %5518 = vmatpush1.bf16.msra.mxu0 %v7182_v32  ;;  %v7257_v31 = vld [vmem:[%s10378_s6 + $0x690] ss:$28 sps:$4 sm:$0xff]   ;;  %v7260_v32 = vld [vmem:[%s10378_s6 + $0x698] ss:$28 sps:$4 sm:$0xff]  }
 0x427   :  { %5355 = vmatprep.subr.bf16.mxu1 %v7187_v33  ;;  %5519 = vmatprep.subr.bf16.mxu0 %v7190_v34  ;;  %v6948_v33 = vadd.f32 %v9106_v38, %v804_v26  ;;  %v7265_v34 = vld [vmem:[%s10378_s6 + $0x6cc] ss:$28 sps:$4 sm:$0xff]  }
 0x428   :  { %v7266_v38 = vld [vmem:[%s10378_s6 + $0x6d0] ss:$28 sps:$4 sm:$0xff]  }
 0x429   :  { %v7329_v26 = vld [vmem:[%s10378_s6 + $0x930] ss:$28 sps:$4 sm:$0xff]  }
 0x42a   :  { %5356 = vmatpush1.bf16.msra.mxu1 %v7185_v36  ;;  %5520 = vmatpush1.bf16.msra.mxu0 %v7188_v37  ;;  %v7268_v36 = vld [vmem:[%s10378_s6 + $0x6d4] ss:$28 sps:$4 sm:$0xff]   ;;  %v7263_v37 = vld [vmem:[%s10378_s6 + $0x6c8] ss:$28 sps:$4 sm:$0xff]  }
 0x42b   :  { %5357 = vmatprep.subr.bf16.mxu1 %v7193_v39  ;;  %5521 = vmatprep.subr.bf16.mxu0 %v7196_v40  ;;  %v2443_v39 = vmax.f32 %v6948_v33, 0.0  ;;  %v7271_v40 = vld [vmem:[%s10378_s6 + $0x704] ss:$28 sps:$4 sm:$0xff]   ;;  %v7338_v33 = vld [vmem:[%s10378_s6 + $0x970] ss:$28 sps:$4 sm:$0xff]  }
 0x42e   :  { %5358 = vmatpush1.bf16.msra.mxu1 %v7191_v41  ;;  %5522 = vmatpush1.bf16.msra.mxu0 %v7194_v42  ;;  %v7274_v41 = vld [vmem:[%s10378_s6 + $0x70c] ss:$28 sps:$4 sm:$0xff]   ;;  %v7269_v42 = vld [vmem:[%s10378_s6 + $0x700] ss:$28 sps:$4 sm:$0xff]  }
 0x42f   :  { %5359 = vmatprep.subr.bf16.mxu1 %v7199_v43  ;;  %5523 = vmatprep.subr.bf16.mxu0 %v7202_v44  ;;  %v7272_v43 = vld [vmem:[%s10378_s6 + $0x708] ss:$28 sps:$4 sm:$0xff]   ;;  %v9321_v44 = vpack.c.bf16 %v2443_v39, %v2443_v39  ;;  %v7349_v39 = vld [vmem:[%s10378_s6 + $0x9dc] ss:$28 sps:$4 sm:$0xff]  }
 0x432   :  { %5360 = vmatpush1.bf16.msra.mxu1 %v7197_v45  ;;  %5524 = vmatpush1.bf16.msra.mxu0 %v7200_v46  ;;  %v7277_v45 = vld [vmem:[%s10378_s6 + $0x73c] ss:$28 sps:$4 sm:$0xff]   ;;  %v7280_v46 = vld [vmem:[%s10378_s6 + $0x744] ss:$28 sps:$4 sm:$0xff]  }
 0x433   :  { %5361 = vmatprep.subr.bf16.mxu1 %v7205_v47  ;;  %5525 = vmatprep.subr.bf16.mxu0 %v7208_v48  ;;  %v7275_v47 = vld [vmem:[%s10378_s6 + $0x738] ss:$28 sps:$4 sm:$0xff]   ;;  %v7278_v48 = vld [vmem:[%s10378_s6 + $0x740] ss:$28 sps:$4 sm:$0xff]  }
 0x436   :  { %5362 = vmatpush1.bf16.msra.mxu1 %v7203_v49  ;;  %5526 = vmatpush1.bf16.msra.mxu0 %v7206_v50  ;;  %v7283_v49 = vld [vmem:[%s10378_s6 + $0x774] ss:$28 sps:$4 sm:$0xff]   ;;  %v7286_v50 = vld [vmem:[%s10378_s6 + $0x77c] ss:$28 sps:$4 sm:$0xff]  }
 0x437   :  { %5363 = vmatprep.subr.bf16.mxu1 %v7211_v7  ;;  %5527 = vmatprep.subr.bf16.mxu0 %v7214_v51  ;;  %v7281_v7 = vld [vmem:[%s10378_s6 + $0x770] ss:$28 sps:$4 sm:$0xff]   ;;  %v7284_v51 = vld [vmem:[%s10378_s6 + $0x778] ss:$28 sps:$4 sm:$0xff]  }
 0x43a   :  { %5364 = vmatpush1.bf16.msra.mxu1 %v7209_v55  ;;  %5528 = vmatpush1.bf16.msra.mxu0 %v7212_v56  ;;  %v7289_v55 = vld [vmem:[%s10378_s6 + $0x7ac] ss:$28 sps:$4 sm:$0xff]   ;;  %v7292_v56 = vld [vmem:[%s10378_s6 + $0x7b4] ss:$28 sps:$4 sm:$0xff]  }
 0x43b   :  { %5365 = vmatprep.subr.bf16.mxu1 %v7217_v57  ;;  %5529 = vmatprep.subr.bf16.mxu0 %v7220_v58  ;;  %v7287_v57 = vld [vmem:[%s10378_s6 + $0x7a8] ss:$28 sps:$4 sm:$0xff]   ;;  %v7290_v58 = vld [vmem:[%s10378_s6 + $0x7b0] ss:$28 sps:$4 sm:$0xff]  }
 0x43e   :  { %5366 = vmatpush1.bf16.msra.mxu1 %v7215_v59  ;;  %5530 = vmatpush1.bf16.msra.mxu0 %v7218_v63  ;;  %v7295_v59 = vld [vmem:[%s10378_s6 + $0x7e4] ss:$28 sps:$4 sm:$0xff]   ;;  %v7298_v63 = vld [vmem:[%s10378_s6 + $0x7ec] ss:$28 sps:$4 sm:$0xff]  }
 0x43f   :  { %5367 = vmatprep.subr.bf16.mxu1 %v7223_v0  ;;  %5531 = vmatprep.subr.bf16.mxu0 %v7226_v1  ;;  %v7293_v0 = vld [vmem:[%s10378_s6 + $0x7e0] ss:$28 sps:$4 sm:$0xff]   ;;  %v7296_v1 = vld [vmem:[%s10378_s6 + $0x7e8] ss:$28 sps:$4 sm:$0xff]  }
 0x442   :  { %5368 = vmatpush1.bf16.msra.mxu1 %v7221_v2  ;;  %5532 = vmatpush1.bf16.msra.mxu0 %v7224_v3  ;;  %v7301_v2 = vld [vmem:[%s10378_s6 + $0x81c] ss:$28 sps:$4 sm:$0xff]   ;;  %v7304_v3 = vld [vmem:[%s10378_s6 + $0x824] ss:$28 sps:$4 sm:$0xff]  }
 0x443   :  { %5369 = vmatprep.subr.bf16.mxu1 %v7229_v4  ;;  %5533 = vmatprep.subr.bf16.mxu0 %v7232_v5  ;;  %v7299_v4 = vld [vmem:[%s10378_s6 + $0x818] ss:$28 sps:$4 sm:$0xff]   ;;  %v7302_v5 = vld [vmem:[%s10378_s6 + $0x820] ss:$28 sps:$4 sm:$0xff]  }
 0x446   :  { %5370 = vmatpush1.bf16.msra.mxu1 %v7227_v10  ;;  %5534 = vmatpush1.bf16.msra.mxu0 %v7230_v35  ;;  %v7307_v10 = vld [vmem:[%s10378_s6 + $0x854] ss:$28 sps:$4 sm:$0xff]   ;;  %v7310_v35 = vld [vmem:[%s10378_s6 + $0x85c] ss:$28 sps:$4 sm:$0xff]  }
 0x447   :  { %5371 = vmatprep.subr.bf16.mxu1 %v7235_v60  ;;  %5535 = vmatprep.subr.bf16.mxu0 %v7238_v8  ;;  %v7305_v60 = vld [vmem:[%s10378_s6 + $0x850] ss:$28 sps:$4 sm:$0xff]   ;;  %v7308_v8 = vld [vmem:[%s10378_s6 + $0x858] ss:$28 sps:$4 sm:$0xff]  }
 0x44a   :  { %5372 = vmatpush1.bf16.msra.mxu1 %v7233_v12  ;;  %5536 = vmatpush1.bf16.msra.mxu0 %v7236_v13  ;;  %v7313_v12 = vld [vmem:[%s10378_s6 + $0x88c] ss:$28 sps:$4 sm:$0xff]   ;;  %v7316_v13 = vld [vmem:[%s10378_s6 + $0x894] ss:$28 sps:$4 sm:$0xff]  }
 0x44b   :  { %5373 = vmatprep.subr.bf16.mxu1 %v7241_v15  ;;  %5537 = vmatprep.subr.bf16.mxu0 %v7244_v16  ;;  %v7311_v15 = vld [vmem:[%s10378_s6 + $0x888] ss:$28 sps:$4 sm:$0xff]   ;;  %v7314_v16 = vld [vmem:[%s10378_s6 + $0x890] ss:$28 sps:$4 sm:$0xff]  }
 0x44e   :  { %5374 = vmatpush1.bf16.msra.mxu1 %v7239_v53  ;;  %5538 = vmatpush1.bf16.msra.mxu0 %v7242_v17  ;;  %v7319_v53 = vld [vmem:[%s10378_s6 + $0x8c4] ss:$28 sps:$4 sm:$0xff]   ;;  %v7322_v17 = vld [vmem:[%s10378_s6 + $0x8cc] ss:$28 sps:$4 sm:$0xff]  }
 0x44f   :  { %5375 = vmatprep.subr.bf16.mxu1 %v7247_v61  ;;  %5539 = vmatprep.subr.bf16.mxu0 %v7250_v18  ;;  %v7317_v61 = vld [vmem:[%s10378_s6 + $0x8c0] ss:$28 sps:$4 sm:$0xff]   ;;  %v7320_v18 = vld [vmem:[%s10378_s6 + $0x8c8] ss:$28 sps:$4 sm:$0xff]  }
 0x452   :  { %5376 = vmatpush1.bf16.msra.mxu1 %v7245_v19  ;;  %5540 = vmatpush1.bf16.msra.mxu0 %v7248_v20  ;;  %v7325_v19 = vld [vmem:[%s10378_s6 + $0x8fc] ss:$28 sps:$4 sm:$0xff]   ;;  %v7328_v20 = vld [vmem:[%s10378_s6 + $0x904] ss:$28 sps:$4 sm:$0xff]  }
 0x453   :  { %5377 = vmatprep.subr.bf16.mxu1 %v7253_v22  ;;  %5541 = vmatprep.subr.bf16.mxu0 %v7256_v23  ;;  %v7323_v22 = vld [vmem:[%s10378_s6 + $0x8f8] ss:$28 sps:$4 sm:$0xff]   ;;  %v7326_v23 = vld [vmem:[%s10378_s6 + $0x900] ss:$28 sps:$4 sm:$0xff]  }
 0x456   :  { %5378 = vmatpush1.bf16.msra.mxu1 %v7251_v24  ;;  %5542 = vmatpush1.bf16.msra.mxu0 %v7254_v25  ;;  %v7331_v24 = vld [vmem:[%s10378_s6 + $0x934] ss:$28 sps:$4 sm:$0xff]   ;;  %v7334_v25 = vld [vmem:[%s10378_s6 + $0x93c] ss:$28 sps:$4 sm:$0xff]  }
 0x457   :  { %5379 = vmatprep.subr.bf16.mxu1 %v7259_v28  ;;  %5543 = vmatprep.subr.bf16.mxu0 %v7262_v29  ;;  %v7332_v28 = vld [vmem:[%s10378_s6 + $0x938] ss:$28 sps:$4 sm:$0xff]   ;;  %v7337_v29 = vld [vmem:[%s10378_s6 + $0x96c] ss:$28 sps:$4 sm:$0xff]  }
 0x45a   :  { %5380 = vmatpush1.bf16.msra.mxu1 %v7257_v31  ;;  %5544 = vmatpush1.bf16.msra.mxu0 %v7260_v32  ;;  %v7340_v31 = vld [vmem:[%s10378_s6 + $0x974] ss:$28 sps:$4 sm:$0xff]   ;;  %v7335_v32 = vld [vmem:[%s10378_s6 + $0x968] ss:$28 sps:$4 sm:$0xff]  }
 0x45b   :  { %5381 = vmatprep.subr.bf16.mxu1 %v7265_v34  ;;  %5545 = vmatprep.subr.bf16.mxu0 %v7268_v36  ;;  %v7343_v34 = vld [vmem:[%s10378_s6 + $0x9a4] ss:$28 sps:$4 sm:$0xff]   ;;  %v7346_v36 = vld [vmem:[%s10378_s6 + $0x9ac] ss:$28 sps:$4 sm:$0xff]  }
 0x45e   :  { %5382 = vmatpush1.bf16.msra.mxu1 %v7263_v37  ;;  %5546 = vmatpush1.bf16.msra.mxu0 %v7266_v38  ;;  %v7341_v37 = vld [vmem:[%s10378_s6 + $0x9a0] ss:$28 sps:$4 sm:$0xff]   ;;  %v7344_v38 = vld [vmem:[%s10378_s6 + $0x9a8] ss:$28 sps:$4 sm:$0xff]  }
 0x45f   :  { %5392 = vmatprep.subr.bf16.mxu1 %v7271_v40  ;;  %5556 = vmatprep.subr.bf16.mxu0 %v7274_v41  ;;  %v7352_v40 = vld [vmem:[%s10378_s6 + $0x9e4] ss:$28 sps:$4 sm:$0xff]   ;;  %v811_v41 = vsub.s32 4, %v7863_v9 }
 0x461   :  { %5384 = vmatmul.mubr.bf16.vlgmr.msra.gmra.mrb[8].mxu1 %v9321_v44  ;;  %5548 = vmatmul.mubr.bf16.vlgmr.msra.gmra.mrb[20].mxu0 %v9321_v44 }
 0x462   :  { %5393 = vmatpush1.bf16.msra.mxu1 %v7269_v42  ;;  %5557 = vmatpush1.bf16.msra.mxu0 %v7272_v43  ;;  %v7347_v42 = vld [vmem:[%s10378_s6 + $0x9d8] ss:$28 sps:$4 sm:$0xff]   ;;  %v7350_v43 = vld [vmem:[%s10378_s6 + $0x9e0] ss:$28 sps:$4 sm:$0xff]  }
 0x463   :  { %5394 = vmatprep.subr.bf16.mxu1 %v7277_v45  ;;  %5558 = vmatprep.subr.bf16.mxu0 %v7280_v46  ;;  %v815_v45 = vsub.s32 5, %v7863_v9  ;;  %v7355_v46 = vld [vmem:[%s10378_s6 + $0xa14] ss:$28 sps:$4 sm:$0xff]  }
 0x466   :  { %5395 = vmatpush1.bf16.msra.mxu1 %v7275_v47  ;;  %5559 = vmatpush1.bf16.msra.mxu0 %v7278_v48  ;;  %v7358_v47 = vld [vmem:[%s10378_s6 + $0xa1c] ss:$28 sps:$4 sm:$0xff]   ;;  %v823_v48 = vsub.s32 7, %v7863_v9 }
 0x467   :  { %5396 = vmatprep.subr.bf16.mxu1 %v7283_v49  ;;  %5560 = vmatprep.subr.bf16.mxu0 %v7286_v50  ;;  %v812_v49 = vrot.slane %v9098_v11, %v811_v41  ;;  %v7353_v50 = vld [vmem:[%s10378_s6 + $0xa10] ss:$28 sps:$4 sm:$0xff]  }
 0x46a   :  { %5397 = vmatpush1.bf16.msra.mxu1 %v7281_v7  ;;  %5561 = vmatpush1.bf16.msra.mxu0 %v7284_v51  ;;  %v7356_v7 = vld [vmem:[%s10378_s6 + $0xa18] ss:$28 sps:$4 sm:$0xff]   ;;  %v816_v51 = vrot.slane %v9098_v11, %v815_v45 }
 0x46b   :  { %5398 = vmatprep.subr.bf16.mxu1 %v7289_v55  ;;  %5562 = vmatprep.subr.bf16.mxu0 %v7292_v56  ;;  %v824_v55 = vrot.slane %v9098_v11, %v823_v48  ;;  %v7361_v56 = vld [vmem:[%s10378_s6 + $0xa4c] ss:$28 sps:$4 sm:$0xff]   ;;  %v7403_v48 = vld [vmem:[%s10378_s6 + $0xbd4] ss:$28 sps:$4 sm:$0xff]  }
 0x46e   :  { %5399 = vmatpush1.bf16.msra.mxu1 %v7287_v57  ;;  %5563 = vmatpush1.bf16.msra.mxu0 %v7290_v58  ;;  %v7364_v57 = vld [vmem:[%s10378_s6 + $0xa54] ss:$28 sps:$4 sm:$0xff]  }
 0x46f   :  { %5400 = vmatprep.subr.bf16.mxu1 %v7295_v59  ;;  %5564 = vmatprep.subr.bf16.mxu0 %v7298_v63 }
 0x472   :  { %5401 = vmatpush1.bf16.msra.mxu1 %v7293_v0  ;;  %5565 = vmatpush1.bf16.msra.mxu0 %v7296_v1  ;;  %v7359_v1 = vld [vmem:[%s10378_s6 + $0xa48] ss:$28 sps:$4 sm:$0xff]  }
 0x473   :  { %5402 = vmatprep.subr.bf16.mxu1 %v7301_v2  ;;  %5566 = vmatprep.subr.bf16.mxu0 %v7304_v3 }
 0x476   :  { %5403 = vmatpush1.bf16.msra.mxu1 %v7299_v4  ;;  %5567 = vmatpush1.bf16.msra.mxu0 %v7302_v5  ;;  %v7362_v5 = vld [vmem:[%s10378_s6 + $0xa50] ss:$28 sps:$4 sm:$0xff]  }
 0x477   :  { %5404 = vmatprep.subr.bf16.mxu1 %v7307_v10  ;;  %5568 = vmatprep.subr.bf16.mxu0 %v7310_v35  ;;  %v7367_v10 = vld [vmem:[%s10378_s6 + $0xa84] ss:$28 sps:$4 sm:$0xff]  }
 0x47a   :  { %5405 = vmatpush1.bf16.msra.mxu1 %v7305_v60  ;;  %5569 = vmatpush1.bf16.msra.mxu0 %v7308_v8 }
 0x47b   :  { %5406 = vmatprep.subr.bf16.mxu1 %v7313_v12  ;;  %5570 = vmatprep.subr.bf16.mxu0 %v7316_v13  ;;  %v7370_v13 = vld [vmem:[%s10378_s6 + $0xa8c] ss:$28 sps:$4 sm:$0xff]  }
 0x47e   :  { %5407 = vmatpush1.bf16.msra.mxu1 %v7311_v15  ;;  %5571 = vmatpush1.bf16.msra.mxu0 %v7314_v16 }
 0x47f   :  { %5408 = vmatprep.subr.bf16.mxu1 %v7319_v53  ;;  %5572 = vmatprep.subr.bf16.mxu0 %v7322_v17 }
 0x482   :  { %5409 = vmatpush1.bf16.msra.mxu1 %v7317_v61  ;;  %5573 = vmatpush1.bf16.msra.mxu0 %v7320_v18  ;;  %v7365_v61 = vld [vmem:[%s10378_s6 + $0xa80] ss:$28 sps:$4 sm:$0xff]   ;;  %v7368_v18 = vld [vmem:[%s10378_s6 + $0xa88] ss:$28 sps:$4 sm:$0xff]  }
 0x483   :  { %5410 = vmatprep.subr.bf16.mxu1 %v7325_v19  ;;  %5574 = vmatprep.subr.bf16.mxu0 %v7328_v20  ;;  %v7373_v20 = vld [vmem:[%s10378_s6 + $0xabc] ss:$28 sps:$4 sm:$0xff]  }
 0x486   :  { %5411 = vmatpush1.bf16.msra.mxu1 %v7323_v22  ;;  %5575 = vmatpush1.bf16.msra.mxu0 %v7326_v23  ;;  %v7376_v22 = vld [vmem:[%s10378_s6 + $0xac4] ss:$28 sps:$4 sm:$0xff]  }
 0x487   :  { %5412 = vmatprep.subr.bf16.mxu1 %v7331_v24  ;;  %5576 = vmatprep.subr.bf16.mxu0 %v7334_v25  ;;  %v7371_v24 = vld [vmem:[%s10378_s6 + $0xab8] ss:$28 sps:$4 sm:$0xff]   ;;  %v7374_v25 = vld [vmem:[%s10378_s6 + $0xac0] ss:$28 sps:$4 sm:$0xff]  }
 0x48a   :  { %5413 = vmatpush1.bf16.msra.mxu1 %v7329_v26  ;;  %5577 = vmatpush1.bf16.msra.mxu0 %v7332_v28  ;;  %v7379_v26 = vld [vmem:[%s10378_s6 + $0xaf4] ss:$28 sps:$4 sm:$0xff]   ;;  %v7382_v28 = vld [vmem:[%s10378_s6 + $0xafc] ss:$28 sps:$4 sm:$0xff]  }
 0x48b   :  { %5414 = vmatprep.subr.bf16.mxu1 %v7337_v29  ;;  %5578 = vmatprep.subr.bf16.mxu0 %v7340_v31  ;;  %v7377_v29 = vld [vmem:[%s10378_s6 + $0xaf0] ss:$28 sps:$4 sm:$0xff]   ;;  %v7380_v31 = vld [vmem:[%s10378_s6 + $0xaf8] ss:$28 sps:$4 sm:$0xff]  }
 0x48e   :  { %5415 = vmatpush1.bf16.msra.mxu1 %v7335_v32  ;;  %5579 = vmatpush1.bf16.msra.mxu0 %v7338_v33  ;;  %v7385_v32 = vld [vmem:[%s10378_s6 + $0xb2c] ss:$28 sps:$4 sm:$0xff]   ;;  %v7388_v33 = vld [vmem:[%s10378_s6 + $0xb34] ss:$28 sps:$4 sm:$0xff]  }
 0x48f   :  { %5416 = vmatprep.subr.bf16.mxu1 %v7343_v34  ;;  %5580 = vmatprep.subr.bf16.mxu0 %v7346_v36  ;;  %v7383_v34 = vld [vmem:[%s10378_s6 + $0xb28] ss:$28 sps:$4 sm:$0xff]   ;;  %v7386_v36 = vld [vmem:[%s10378_s6 + $0xb30] ss:$28 sps:$4 sm:$0xff]  }
 0x492   :  { %5417 = vmatpush1.bf16.msra.mxu1 %v7341_v37  ;;  %5581 = vmatpush1.bf16.msra.mxu0 %v7344_v38  ;;  %v7391_v37 = vld [vmem:[%s10378_s6 + $0xb64] ss:$28 sps:$4 sm:$0xff]   ;;  %v7394_v38 = vld [vmem:[%s10378_s6 + $0xb6c] ss:$28 sps:$4 sm:$0xff]  }
 0x493   :  { %5418 = vmatprep.subr.bf16.mxu1 %v7349_v39  ;;  %5582 = vmatprep.subr.bf16.mxu0 %v7352_v40  ;;  %v7389_v39 = vld [vmem:[%s10378_s6 + $0xb60] ss:$28 sps:$4 sm:$0xff]   ;;  %v7392_v40 = vld [vmem:[%s10378_s6 + $0xb68] ss:$28 sps:$4 sm:$0xff]  }
 0x496   :  { %5419 = vmatpush1.bf16.msra.mxu1 %v7347_v42  ;;  %5583 = vmatpush1.bf16.msra.mxu0 %v7350_v43  ;;  %v7397_v42 = vld [vmem:[%s10378_s6 + $0xb9c] ss:$28 sps:$4 sm:$0xff]   ;;  %v7400_v43 = vld [vmem:[%s10378_s6 + $0xba4] ss:$28 sps:$4 sm:$0xff]  }
 0x497   :  { %5420 = vmatprep.subr.bf16.mxu1 %v7355_v46  ;;  %5584 = vmatprep.subr.bf16.mxu0 %v7358_v47  ;;  %v7395_v46 = vld [vmem:[%s10378_s6 + $0xb98] ss:$28 sps:$4 sm:$0xff]   ;;  %v7398_v47 = vld [vmem:[%s10378_s6 + $0xba0] ss:$28 sps:$4 sm:$0xff]  }
 0x498   :  { %v2352_v58 = vpop.f32.mrb[4].mxu1 }
 0x499   :  { %v6950_v59 = vadd.f32 %v2352_v58, %v812_v49  ;;  %v9509_v63 = vpop.f32.mrb[16].mxu0  ;;  %v2354_v0 = vpop.f32.mrb[5].mxu1  ;;  %v7406_v49 = vld [vmem:[%s10378_s6 + $0xbdc] ss:$28 sps:$4 sm:$0xff]   ;;  %v7415_v58 = vld [vmem:[%s10378_s6 + $0xc44] ss:$28 sps:$4 sm:$0xff]  }
 0x49a   :  { %v6951_v2 = vadd.f32 %v2354_v0, %v816_v51  ;;  %v2436_v3 = vpop.f32.mrb[17].mxu0  ;;  %5421 = vmatpush1.bf16.msra.mxu1 %v7353_v50  ;;  %5585 = vmatpush1.bf16.msra.mxu0 %v7356_v7  ;;  %v2356_v4 = vpop.f32.mrb[6].mxu1  ;;  %v7401_v50 = vld [vmem:[%s10378_s6 + $0xbd0] ss:$28 sps:$4 sm:$0xff]   ;;  %v7404_v7 = vld [vmem:[%s10378_s6 + $0xbd8] ss:$28 sps:$4 sm:$0xff]  }
 0x49b   :  { %v2445_v35 = vmax.f32 %v6950_v59, 0.0  ;;  %v6953_v60 = vadd.f32 %v2436_v3, %v824_v55  ;;  %v2438_v8 = vpop.f32.mrb[18].mxu0  ;;  %v2357_v12 = vpop.f32.mrb[7].mxu1  ;;  %5422 = vmatprep.subr.bf16.mxu1 %v7361_v56  ;;  %5586 = vmatprep.subr.bf16.mxu0 %v7364_v57  ;;  %v7409_v51 = vld [vmem:[%s10378_s6 + $0xc0c] ss:$28 sps:$4 sm:$0xff]  }
 0x49c   :  { %v2446_v15 = vmax.f32 %v6951_v2, 0.0  ;;  %v2439_v16 = vpop.f32.mrb[19].mxu0  ;;  %v7412_v55 = vld [vmem:[%s10378_s6 + $0xc14] ss:$28 sps:$4 sm:$0xff]   ;;  %v7407_v56 = vld [vmem:[%s10378_s6 + $0xc08] ss:$28 sps:$4 sm:$0xff]  }
 0x49d   :  { %v2448_v53 = vmax.f32 %v6953_v60, 0.0  ;;  %v9531_v19 = vpack.c.bf16 %v2445_v35, %v2445_v35  ;;  %v7410_v57 = vld [vmem:[%s10378_s6 + $0xc10] ss:$28 sps:$4 sm:$0xff]   ;;  %v7413_v0 = vld [vmem:[%s10378_s6 + $0xc40] ss:$28 sps:$4 sm:$0xff]  }
 0x49e   :  { %v9523_v17 = vpack.c.bf16 %v2446_v15, %v2446_v15  ;;  %5423 = vmatpush1.bf16.msra.mxu1 %v7359_v1  ;;  %5587 = vmatpush1.bf16.msra.mxu0 %v7362_v5  ;;  %v7418_v59 = vld [vmem:[%s10378_s6 + $0xc4c] ss:$28 sps:$4 sm:$0xff]   ;;  %v7421_v2 = vld [vmem:[%s10378_s6 + $0xc7c] ss:$28 sps:$4 sm:$0xff]   ;;  %v7424_v3 = vld [vmem:[%s10378_s6 + $0xc84] ss:$28 sps:$4 sm:$0xff]  }
 0x49f   :  { %5433 = vmatprep.subr.bf16.mxu1 %v7367_v10  ;;  %5597 = vmatprep.subr.bf16.mxu0 %v7370_v13  ;;  %v9541_v23 = vpack.c.bf16 %v2448_v53, %v2448_v53  ;;  %v7416_v1 = vld [vmem:[%s10378_s6 + $0xc48] ss:$28 sps:$4 sm:$0xff]   ;;  %v7419_v4 = vld [vmem:[%s10378_s6 + $0xc78] ss:$28 sps:$4 sm:$0xff]   ;;  %v7422_v5 = vld [vmem:[%s10378_s6 + $0xc80] ss:$28 sps:$4 sm:$0xff]  }
 0x4a0   :  { %5424 = vmatprep.mubr.bf16.mxu1 %v9523_v17  ;;  %5588 = vmatprep.mubr.bf16.mxu0 %v9523_v17  ;;  %v7427_v10 = vld [vmem:[%s10378_s6 + $0xcb4] ss:$28 sps:$4 sm:$0xff]   ;;  %v7430_v35 = vld [vmem:[%s10378_s6 + $0xcbc] ss:$28 sps:$4 sm:$0xff]   ;;  %v7433_v12 = vld [vmem:[%s10378_s6 + $0xcec] ss:$28 sps:$4 sm:$0xff]  }
 0x4a1   :  { %5425 = vmatmul.mubr.bf16.vlgmr.msra.gmra.mrb[8].mxu1 %v9531_v19  ;;  %5589 = vmatmul.mubr.bf16.vlgmr.msra.gmra.mrb[20].mxu0 %v9531_v19  ;;  %v7425_v60 = vld [vmem:[%s10378_s6 + $0xcb0] ss:$28 sps:$4 sm:$0xff]   ;;  %v7428_v8 = vld [vmem:[%s10378_s6 + $0xcb8] ss:$28 sps:$4 sm:$0xff]   ;;  %v7431_v15 = vld [vmem:[%s10378_s6 + $0xce8] ss:$28 sps:$4 sm:$0xff]  }
 0x4a2   :  { %5434 = vmatpush1.bf16.msra.mxu1 %v7365_v61  ;;  %5598 = vmatpush1.bf16.msra.mxu0 %v7368_v18  ;;  %v7436_v13 = vld [vmem:[%s10378_s6 + $0xcf4] ss:$28 sps:$4 sm:$0xff]   ;;  %v7439_v53 = vld [vmem:[%s10378_s6 + $0xd24] ss:$28 sps:$4 sm:$0xff]   ;;  %v7442_v61 = vld [vmem:[%s10378_s6 + $0xd2c] ss:$28 sps:$4 sm:$0xff]  }
 0x4a3   :  { %5465 = vmatprep.mubr.bf16.mxu1 %v9541_v23  ;;  %5629 = vmatprep.mubr.bf16.mxu0 %v9541_v23  ;;  %v7434_v16 = vld [vmem:[%s10378_s6 + $0xcf0] ss:$28 sps:$4 sm:$0xff]   ;;  %v7437_v18 = vld [vmem:[%s10378_s6 + $0xd20] ss:$28 sps:$4 sm:$0xff]  }
 0x4a4   :  { %5435 = vmatprep.subr.bf16.mxu1 %v7373_v20  ;;  %5599 = vmatprep.subr.bf16.mxu0 %v7376_v22  ;;  %v7440_v20 = vld [vmem:[%s10378_s6 + $0xd28] ss:$28 sps:$4 sm:$0xff]   ;;  %v819_v22 = vsub.s32 6, %v7863_v9 }
 0x4a6   :  { %5436 = vmatpush1.bf16.msra.mxu1 %v7371_v24  ;;  %5600 = vmatpush1.bf16.msra.mxu0 %v7374_v25  ;;  %v7445_v24 = vld [vmem:[%s10378_s6 + $0xd5c] ss:$28 sps:$4 sm:$0xff]   ;;  %v7448_v25 = vld [vmem:[%s10378_s6 + $0xd64] ss:$28 sps:$4 sm:$0xff]  }
 0x4a7   :  { %5437 = vmatprep.subr.bf16.mxu1 %v7379_v26  ;;  %5601 = vmatprep.subr.bf16.mxu0 %v7382_v28  ;;  %v7443_v26 = vld [vmem:[%s10378_s6 + $0xd58] ss:$28 sps:$4 sm:$0xff]   ;;  %v7446_v28 = vld [vmem:[%s10378_s6 + $0xd60] ss:$28 sps:$4 sm:$0xff]  }
 0x4aa   :  { %5438 = vmatpush1.bf16.msra.mxu1 %v7377_v29  ;;  %5602 = vmatpush1.bf16.msra.mxu0 %v7380_v31  ;;  %v820_v29 = vrot.slane %v9098_v11, %v819_v22  ;;  %v7451_v31 = vld [vmem:[%s10378_s6 + $0xd94] ss:$28 sps:$4 sm:$0xff]  }
 0x4ab   :  { %5439 = vmatprep.subr.bf16.mxu1 %v7385_v32  ;;  %5603 = vmatprep.subr.bf16.mxu0 %v7388_v33  ;;  %v7454_v32 = vld [vmem:[%s10378_s6 + $0xd9c] ss:$28 sps:$4 sm:$0xff]   ;;  %v7449_v33 = vld [vmem:[%s10378_s6 + $0xd90] ss:$28 sps:$4 sm:$0xff]  }
 0x4ac   :  { %v7452_v11 = vld [vmem:[%s10378_s6 + $0xd98] ss:$28 sps:$4 sm:$0xff]  }
 0x4ae   :  { %5440 = vmatpush1.bf16.msra.mxu1 %v7383_v34  ;;  %5604 = vmatpush1.bf16.msra.mxu0 %v7386_v36  ;;  %v6952_v34 = vadd.f32 %v9509_v63, %v820_v29  ;;  %v7457_v36 = vld [vmem:[%s10378_s6 + $0xdcc] ss:$28 sps:$4 sm:$0xff]  }
 0x4af   :  { %5441 = vmatprep.subr.bf16.mxu1 %v7391_v37  ;;  %5605 = vmatprep.subr.bf16.mxu0 %v7394_v38  ;;  %v7460_v37 = vld [vmem:[%s10378_s6 + $0xdd4] ss:$28 sps:$4 sm:$0xff]   ;;  %v7455_v38 = vld [vmem:[%s10378_s6 + $0xdc8] ss:$28 sps:$4 sm:$0xff]  }
 0x4b0   :  { %v7458_v63 = vld [vmem:[%s10378_s6 + $0xdd0] ss:$28 sps:$4 sm:$0xff]  }
 0x4b1   :  { %v7509_v29 = vld [vmem:[%s10378_s6 + $0x590] ss:$28 sps:$4 sm:$0xff]  }
 0x4b2   :  { %5442 = vmatpush1.bf16.msra.mxu1 %v7389_v39  ;;  %5606 = vmatpush1.bf16.msra.mxu0 %v7392_v40  ;;  %v2447_v39 = vmax.f32 %v6952_v34, 0.0  ;;  %v7463_v40 = vld [vmem:[%s10378_s6 + $0x14] ss:$28 sps:$4 sm:$0xff]   ;;  %v7511_v34 = vld [vmem:[%s10378_s6 + $0x240] ss:$28 sps:$4 sm:$0xff]  }
 0x4b3   :  { %5443 = vmatprep.subr.bf16.mxu1 %v7397_v42  ;;  %5607 = vmatprep.subr.bf16.mxu0 %v7400_v43  ;;  %v7464_v42 = vld [vmem:[%s10378_s6 + $0x1d8] ss:$28 sps:$4 sm:$0xff]   ;;  %v7461_v43 = vld [vmem:[%s10378_s6 + $0x10] ss:$28 sps:$4 sm:$0xff]  }
 0x4b6   :  { %5444 = vmatpush1.bf16.msra.mxu1 %v7395_v46  ;;  %5608 = vmatpush1.bf16.msra.mxu0 %v7398_v47  ;;  %v9735_v46 = vpack.c.bf16 %v2447_v39, %v2447_v39  ;;  %v7465_v47 = vld [vmem:[%s10378_s6 + $0x18] ss:$28 sps:$4 sm:$0xff]   ;;  %v7520_v39 = vld [vmem:[%s10378_s6 + $0x440] ss:$28 sps:$4 sm:$0xff]  }
 0x4b7   :  { %5445 = vmatprep.subr.bf16.mxu1 %v7403_v48  ;;  %5609 = vmatprep.subr.bf16.mxu0 %v7406_v49  ;;  %v7468_v48 = vld [vmem:[%s10378_s6 + $0x4c] ss:$28 sps:$4 sm:$0xff]  }
 0x4b8   :  { %v7469_v49 = vld [vmem:[%s10378_s6 + $0x210] ss:$28 sps:$4 sm:$0xff]  }
 0x4ba   :  { %5446 = vmatpush1.bf16.msra.mxu1 %v7401_v50  ;;  %5610 = vmatpush1.bf16.msra.mxu0 %v7404_v7  ;;  %v7466_v50 = vld [vmem:[%s10378_s6 + $0x48] ss:$28 sps:$4 sm:$0xff]   ;;  %v7470_v7 = vld [vmem:[%s10378_s6 + $0x50] ss:$28 sps:$4 sm:$0xff]  }
 0x4bb   :  { %5447 = vmatprep.subr.bf16.mxu1 %v7409_v51  ;;  %5611 = vmatprep.subr.bf16.mxu0 %v7412_v55  ;;  %v7473_v51 = vld [vmem:[%s10378_s6 + $0x84] ss:$28 sps:$4 sm:$0xff]  }
 0x4bc   :  { %v7474_v55 = vld [vmem:[%s10378_s6 + $0x248] ss:$28 sps:$4 sm:$0xff]  }
 0x4be   :  { %5448 = vmatpush1.bf16.msra.mxu1 %v7407_v56  ;;  %5612 = vmatpush1.bf16.msra.mxu0 %v7410_v57  ;;  %v7471_v56 = vld [vmem:[%s10378_s6 + $0x80] ss:$28 sps:$4 sm:$0xff]  }
 0x4bf   :  { %5449 = vmatprep.subr.bf16.mxu1 %v7415_v58  ;;  %5613 = vmatprep.subr.bf16.mxu0 %v7418_v59  ;;  %v7478_v57 = vld [vmem:[%s10378_s6 + $0xbc] ss:$28 sps:$4 sm:$0xff]  }
 0x4c0   :  { %v7479_v58 = vld [vmem:[%s10378_s6 + $0x280] ss:$28 sps:$4 sm:$0xff]   ;;  %v7476_v59 = vld [vmem:[%s10378_s6 + $0xb8] ss:$28 sps:$4 sm:$0xff]  }
 0x4c2   :  { %5450 = vmatpush1.bf16.msra.mxu1 %v7413_v0  ;;  %5614 = vmatpush1.bf16.msra.mxu0 %v7416_v1  ;;  %v7480_v0 = vld [vmem:[%s10378_s6 + $0xc0] ss:$28 sps:$4 sm:$0xff]   ;;  %v7483_v1 = vld [vmem:[%s10378_s6 + $0xf4] ss:$28 sps:$4 sm:$0xff]  }
 0x4c3   :  { %5451 = vmatprep.subr.bf16.mxu1 %v7421_v2  ;;  %5615 = vmatprep.subr.bf16.mxu0 %v7424_v3  ;;  %v7484_v2 = vld [vmem:[%s10378_s6 + $0x2b8] ss:$28 sps:$4 sm:$0xff]   ;;  %v7481_v3 = vld [vmem:[%s10378_s6 + $0xf0] ss:$28 sps:$4 sm:$0xff]  }
 0x4c6   :  { %5452 = vmatpush1.bf16.msra.mxu1 %v7419_v4  ;;  %5616 = vmatpush1.bf16.msra.mxu0 %v7422_v5  ;;  %v7485_v4 = vld [vmem:[%s10378_s6 + $0xf8] ss:$28 sps:$4 sm:$0xff]   ;;  %v7488_v5 = vld [vmem:[%s10378_s6 + $0x12c] ss:$28 sps:$4 sm:$0xff]  }
 0x4c7   :  { %5453 = vmatprep.subr.bf16.mxu1 %v7427_v10  ;;  %5617 = vmatprep.subr.bf16.mxu0 %v7430_v35  ;;  %v7489_v10 = vld [vmem:[%s10378_s6 + $0x2f0] ss:$28 sps:$4 sm:$0xff]   ;;  %v7486_v35 = vld [vmem:[%s10378_s6 + $0x128] ss:$28 sps:$4 sm:$0xff]  }
 0x4ca   :  { %5454 = vmatpush1.bf16.msra.mxu1 %v7425_v60  ;;  %5618 = vmatpush1.bf16.msra.mxu0 %v7428_v8  ;;  %v7490_v60 = vld [vmem:[%s10378_s6 + $0x130] ss:$28 sps:$4 sm:$0xff]   ;;  %v7493_v8 = vld [vmem:[%s10378_s6 + $0x164] ss:$28 sps:$4 sm:$0xff]  }
 0x4cb   :  { %5455 = vmatprep.subr.bf16.mxu1 %v7433_v12  ;;  %5619 = vmatprep.subr.bf16.mxu0 %v7436_v13  ;;  %v7494_v12 = vld [vmem:[%s10378_s6 + $0x328] ss:$28 sps:$4 sm:$0xff]   ;;  %v7491_v13 = vld [vmem:[%s10378_s6 + $0x160] ss:$28 sps:$4 sm:$0xff]  }
 0x4ce   :  { %5456 = vmatpush1.bf16.msra.mxu1 %v7431_v15  ;;  %5620 = vmatpush1.bf16.msra.mxu0 %v7434_v16  ;;  %v7495_v15 = vld [vmem:[%s10378_s6 + $0x168] ss:$28 sps:$4 sm:$0xff]   ;;  %v7498_v16 = vld [vmem:[%s10378_s6 + $0x19c] ss:$28 sps:$4 sm:$0xff]  }
 0x4cf   :  { %5457 = vmatprep.subr.bf16.mxu1 %v7439_v53  ;;  %5621 = vmatprep.subr.bf16.mxu0 %v7442_v61  ;;  %v7499_v53 = vld [vmem:[%s10378_s6 + $0x360] ss:$28 sps:$4 sm:$0xff]   ;;  %v7496_v61 = vld [vmem:[%s10378_s6 + $0x198] ss:$28 sps:$4 sm:$0xff]  }
 0x4d2   :  { %5458 = vmatpush1.bf16.msra.mxu1 %v7437_v18  ;;  %5622 = vmatpush1.bf16.msra.mxu0 %v7440_v20  ;;  %v7500_v18 = vld [vmem:[%s10378_s6 + $0x1a0] ss:$28 sps:$4 sm:$0xff]   ;;  %v7503_v20 = vld [vmem:[%s10378_s6 + $0x1d4] ss:$28 sps:$4 sm:$0xff]  }
 0x4d3   :  { %5459 = vmatprep.subr.bf16.mxu1 %v7445_v24  ;;  %5623 = vmatprep.subr.bf16.mxu0 %v7448_v25  ;;  %v7504_v24 = vld [vmem:[%s10378_s6 + $0x558] ss:$28 sps:$4 sm:$0xff]   ;;  %v7501_v25 = vld [vmem:[%s10378_s6 + $0x1d0] ss:$28 sps:$4 sm:$0xff]  }
 0x4d6   :  { %5460 = vmatpush1.bf16.msra.mxu1 %v7443_v26  ;;  %5624 = vmatpush1.bf16.msra.mxu0 %v7446_v28  ;;  %v7505_v26 = vld [vmem:[%s10378_s6 + $0x398] ss:$28 sps:$4 sm:$0xff]   ;;  %v7508_v28 = vld [vmem:[%s10378_s6 + $0x20c] ss:$28 sps:$4 sm:$0xff]  }
 0x4d7   :  { %5461 = vmatprep.subr.bf16.mxu1 %v7451_v31  ;;  %5625 = vmatprep.subr.bf16.mxu0 %v7454_v32  ;;  %v7506_v31 = vld [vmem:[%s10378_s6 + $0x208] ss:$28 sps:$4 sm:$0xff]   ;;  %v7510_v32 = vld [vmem:[%s10378_s6 + $0x3d0] ss:$28 sps:$4 sm:$0xff]  }
 0x4da   :  { %5462 = vmatpush1.bf16.msra.mxu1 %v7449_v33  ;;  %5626 = vmatpush1.bf16.msra.mxu0 %v7452_v11  ;;  %v7513_v33 = vld [vmem:[%s10378_s6 + $0x244] ss:$28 sps:$4 sm:$0xff]  }
 0x4db   :  { %5463 = vmatprep.subr.bf16.mxu1 %v7457_v36  ;;  %5627 = vmatprep.subr.bf16.mxu0 %v7460_v37  ;;  %v7514_v11 = vld [vmem:[%s10378_s6 + $0x5c8] ss:$28 sps:$4 sm:$0xff]   ;;  %v7518_v37 = vld [vmem:[%s10378_s6 + $0x27c] ss:$28 sps:$4 sm:$0xff]  }
 0x4dc   :  { %v7515_v36 = vld [vmem:[%s10378_s6 + $0x408] ss:$28 sps:$4 sm:$0xff]  }
 0x4de   :  { %5464 = vmatpush1.bf16.msra.mxu1 %v7455_v38  ;;  %5628 = vmatpush1.bf16.msra.mxu0 %v7458_v63  ;;  %v7519_v38 = vld [vmem:[%s10378_s6 + $0x600] ss:$28 sps:$4 sm:$0xff]   ;;  %v7516_v63 = vld [vmem:[%s10378_s6 + $0x278] ss:$28 sps:$4 sm:$0xff]  }
 0x4df   :  { %5638 = vmatprep.subr.bf16.mxu1 %v7463_v40  ;;  %6828 = vmatprep.subr.bf16.mxu0 %v7464_v42  ;;  %v7523_v40 = vld [vmem:[%s10378_s6 + $0x2b4] ss:$28 sps:$4 sm:$0xff]  }
 0x4e0   :  { %v7524_v42 = vld [vmem:[%s10378_s6 + $0x638] ss:$28 sps:$4 sm:$0xff]  }
 0x4e1   :  { %5466 = vmatmul.mubr.bf16.vlgmr.msra.gmra.mrb[8].mxu1 %v9735_v46  ;;  %5630 = vmatmul.mubr.bf16.vlgmr.msra.gmra.mrb[20].mxu0 %v9735_v46 }
 0x4e2   :  { %5639 = vmatpush1.bf16.msra.mxu1 %v7461_v43  ;;  %5670 = vmatprep.mubr.bf16.mxu1 %v9108_v21  ;;  %v7521_v43 = vld [vmem:[%s10378_s6 + $0x2b0] ss:$28 sps:$4 sm:$0xff]  }
 0x4e3   :  { %6829 = vmatpush3.bf16.msra.mxu0 %v7465_v47  ;;  %5834 = vmatprep.mubr.bf16.mxu0 %v9108_v21  ;;  %v7475_v21 = vld [vmem:[%s10378_s6 + $0x88] ss:$28 sps:$4 sm:$0xff]   ;;  %v7525_v47 = vld [vmem:[%s10378_s6 + $0x478] ss:$28 sps:$4 sm:$0xff]  }
 0x4e4   :  { %5640 = vmatprep.subr.bf16.mxu1 %v7468_v48  ;;  %6830 = vmatprep.subr.bf16.mxu0 %v7469_v49  ;;  %v7528_v48 = vld [vmem:[%s10378_s6 + $0x2ec] ss:$28 sps:$4 sm:$0xff]  }
 0x4e5   :  { %v7529_v49 = vld [vmem:[%s10378_s6 + $0x670] ss:$28 sps:$4 sm:$0xff]  }
 0x4e6   :  { %5641 = vmatpush1.bf16.msra.mxu1 %v7466_v50  ;;  %v7526_v50 = vld [vmem:[%s10378_s6 + $0x2e8] ss:$28 sps:$4 sm:$0xff]  }
 0x4e7   :  { %6831 = vmatpush3.bf16.msra.mxu0 %v7470_v7  ;;  %5642 = vmatprep.subr.bf16.mxu1 %v7473_v51  ;;  %v7530_v7 = vld [vmem:[%s10378_s6 + $0x4b0] ss:$28 sps:$4 sm:$0xff]   ;;  %v7533_v51 = vld [vmem:[%s10378_s6 + $0x324] ss:$28 sps:$4 sm:$0xff]  }
 0x4e8   :  { %6832 = vmatprep.subr.bf16.mxu0 %v7474_v55  ;;  %v7534_v55 = vld [vmem:[%s10378_s6 + $0x6a8] ss:$28 sps:$4 sm:$0xff]  }
 0x4ea   :  { %5643 = vmatpush1.bf16.msra.mxu1 %v7471_v56  ;;  %v7531_v56 = vld [vmem:[%s10378_s6 + $0x320] ss:$28 sps:$4 sm:$0xff]  }
 0x4eb   :  { %6833 = vmatpush3.bf16.msra.mxu0 %v7475_v21  ;;  %5644 = vmatprep.subr.bf16.mxu1 %v7478_v57  ;;  %v7535_v21 = vld [vmem:[%s10378_s6 + $0x4e8] ss:$28 sps:$4 sm:$0xff]   ;;  %v7538_v57 = vld [vmem:[%s10378_s6 + $0x35c] ss:$28 sps:$4 sm:$0xff]  }
 0x4ec   :  { %6834 = vmatprep.subr.bf16.mxu0 %v7479_v58  ;;  %v7539_v58 = vld [vmem:[%s10378_s6 + $0x6e0] ss:$28 sps:$4 sm:$0xff]  }
 0x4ee   :  { %5645 = vmatpush1.bf16.msra.mxu1 %v7476_v59  ;;  %v7536_v59 = vld [vmem:[%s10378_s6 + $0x358] ss:$28 sps:$4 sm:$0xff]  }
 0x4ef   :  { %6835 = vmatpush3.bf16.msra.mxu0 %v7480_v0  ;;  %5646 = vmatprep.subr.bf16.mxu1 %v7483_v1  ;;  %v7540_v0 = vld [vmem:[%s10378_s6 + $0x520] ss:$28 sps:$4 sm:$0xff]   ;;  %v7543_v1 = vld [vmem:[%s10378_s6 + $0x394] ss:$28 sps:$4 sm:$0xff]  }
 0x4f0   :  { %6836 = vmatprep.subr.bf16.mxu0 %v7484_v2  ;;  %v7544_v2 = vld [vmem:[%s10378_s6 + $0x8d8] ss:$28 sps:$4 sm:$0xff]  }
 0x4f2   :  { %5647 = vmatpush1.bf16.msra.mxu1 %v7481_v3  ;;  %v7541_v3 = vld [vmem:[%s10378_s6 + $0x390] ss:$28 sps:$4 sm:$0xff]  }
 0x4f3   :  { %6837 = vmatpush3.bf16.msra.mxu0 %v7485_v4  ;;  %5648 = vmatprep.subr.bf16.mxu1 %v7488_v5  ;;  %v7545_v4 = vld [vmem:[%s10378_s6 + $0x718] ss:$28 sps:$4 sm:$0xff]   ;;  %v7548_v5 = vld [vmem:[%s10378_s6 + $0x3cc] ss:$28 sps:$4 sm:$0xff]  }
 0x4f4   :  { %6838 = vmatprep.subr.bf16.mxu0 %v7489_v10  ;;  %v7549_v10 = vld [vmem:[%s10378_s6 + $0x910] ss:$28 sps:$4 sm:$0xff]  }
 0x4f6   :  { %5649 = vmatpush1.bf16.msra.mxu1 %v7486_v35  ;;  %v7546_v35 = vld [vmem:[%s10378_s6 + $0x3c8] ss:$28 sps:$4 sm:$0xff]  }
 0x4f7   :  { %6839 = vmatpush3.bf16.msra.mxu0 %v7490_v60  ;;  %5650 = vmatprep.subr.bf16.mxu1 %v7493_v8  ;;  %v7550_v60 = vld [vmem:[%s10378_s6 + $0x750] ss:$28 sps:$4 sm:$0xff]   ;;  %v7554_v8 = vld [vmem:[%s10378_s6 + $0x948] ss:$28 sps:$4 sm:$0xff]  }
 0x4f8   :  { %6840 = vmatprep.subr.bf16.mxu0 %v7494_v12  ;;  %v7555_v12 = vld [vmem:[%s10378_s6 + $0x788] ss:$28 sps:$4 sm:$0xff]  }
 0x4fa   :  { %5651 = vmatpush1.bf16.msra.mxu1 %v7491_v13  ;;  %v7558_v13 = vld [vmem:[%s10378_s6 + $0x43c] ss:$28 sps:$4 sm:$0xff]  }
 0x4fb   :  { %6841 = vmatpush3.bf16.msra.mxu0 %v7495_v15  ;;  %5652 = vmatprep.subr.bf16.mxu1 %v7498_v16  ;;  %v7559_v15 = vld [vmem:[%s10378_s6 + $0x980] ss:$28 sps:$4 sm:$0xff]   ;;  %v7556_v16 = vld [vmem:[%s10378_s6 + $0x438] ss:$28 sps:$4 sm:$0xff]  }
 0x4fc   :  { %6842 = vmatprep.subr.bf16.mxu0 %v7499_v53  ;;  %v7560_v53 = vld [vmem:[%s10378_s6 + $0x7c0] ss:$28 sps:$4 sm:$0xff]  }
 0x4fe   :  { %5653 = vmatpush1.bf16.msra.mxu1 %v7496_v61  ;;  %v7563_v61 = vld [vmem:[%s10378_s6 + $0x474] ss:$28 sps:$4 sm:$0xff]  }
 0x4ff   :  { %6843 = vmatpush3.bf16.msra.mxu0 %v7500_v18  ;;  %5654 = vmatprep.subr.bf16.mxu1 %v7503_v20  ;;  %v7564_v18 = vld [vmem:[%s10378_s6 + $0x9b8] ss:$28 sps:$4 sm:$0xff]   ;;  %v7561_v20 = vld [vmem:[%s10378_s6 + $0x470] ss:$28 sps:$4 sm:$0xff]  }
 0x500   :  { %6850 = vmatprep.subr.bf16.mxu0 %v7504_v24  ;;  %v7565_v24 = vld [vmem:[%s10378_s6 + $0x7f8] ss:$28 sps:$4 sm:$0xff]  }
 0x502   :  { %5835 = vmatmul.mubr.bf16.vlgmr.msra.gmra.mrb[24].mxu0 %v9116_v27  ;;  %5655 = vmatpush1.bf16.msra.mxu1 %v7501_v25  ;;  %v7568_v25 = vld [vmem:[%s10378_s6 + $0x4ac] ss:$28 sps:$4 sm:$0xff]  }
 0x503   :  { %6851 = vmatpush3.bf16.msra.mxu0 %v7505_v26  ;;  %5874 = vmatprep.mubr.bf16.mxu0 %v9126_v30  ;;  %v7569_v26 = vld [vmem:[%s10378_s6 + $0x9f0] ss:$28 sps:$4 sm:$0xff]  }
 0x504   :  { %5656 = vmatprep.subr.bf16.mxu1 %v7508_v28  ;;  %6852 = vmatprep.subr.bf16.mxu0 %v7509_v29  ;;  %v7566_v28 = vld [vmem:[%s10378_s6 + $0x4a8] ss:$28 sps:$4 sm:$0xff]   ;;  %v7570_v29 = vld [vmem:[%s10378_s6 + $0x830] ss:$28 sps:$4 sm:$0xff]  }
 0x506   :  { %5657 = vmatpush1.bf16.msra.mxu1 %v7506_v31  ;;  %v7573_v31 = vld [vmem:[%s10378_s6 + $0x4e4] ss:$28 sps:$4 sm:$0xff]  }
 0x507   :  { %6853 = vmatpush3.bf16.msra.mxu0 %v7510_v32  ;;  %5658 = vmatprep.subr.bf16.mxu1 %v7513_v33  ;;  %v7574_v32 = vld [vmem:[%s10378_s6 + $0xa28] ss:$28 sps:$4 sm:$0xff]   ;;  %v7571_v33 = vld [vmem:[%s10378_s6 + $0x4e0] ss:$28 sps:$4 sm:$0xff]  }
 0x508   :  { %6854 = vmatprep.subr.bf16.mxu0 %v7514_v11  ;;  %v7575_v11 = vld [vmem:[%s10378_s6 + $0x868] ss:$28 sps:$4 sm:$0xff]  }
 0x50a   :  { %5659 = vmatpush1.bf16.msra.mxu1 %v7511_v34  ;;  %v7578_v34 = vld [vmem:[%s10378_s6 + $0x51c] ss:$28 sps:$4 sm:$0xff]  }
 0x50b   :  { %6855 = vmatpush3.bf16.msra.mxu0 %v7515_v36  ;;  %5660 = vmatprep.subr.bf16.mxu1 %v7518_v37  ;;  %v7579_v36 = vld [vmem:[%s10378_s6 + $0xa60] ss:$28 sps:$4 sm:$0xff]   ;;  %v7576_v37 = vld [vmem:[%s10378_s6 + $0x518] ss:$28 sps:$4 sm:$0xff]  }
 0x50c   :  { %6856 = vmatprep.subr.bf16.mxu0 %v7519_v38  ;;  %v7580_v38 = vld [vmem:[%s10378_s6 + $0x8a0] ss:$28 sps:$4 sm:$0xff]  }
 0x50e   :  { %5661 = vmatpush1.bf16.msra.mxu1 %v7516_v63  ;;  %v7583_v63 = vld [vmem:[%s10378_s6 + $0x554] ss:$28 sps:$4 sm:$0xff]  }
 0x50f   :  { %6857 = vmatpush3.bf16.msra.mxu0 %v7520_v39  ;;  %5662 = vmatprep.subr.bf16.mxu1 %v7523_v40  ;;  %v7584_v39 = vld [vmem:[%s10378_s6 + $0xc58] ss:$28 sps:$4 sm:$0xff]   ;;  %v7581_v40 = vld [vmem:[%s10378_s6 + $0x550] ss:$28 sps:$4 sm:$0xff]  }
 0x510   :  { %6858 = vmatprep.subr.bf16.mxu0 %v7524_v42  ;;  %v7585_v42 = vld [vmem:[%s10378_s6 + $0xa98] ss:$28 sps:$4 sm:$0xff]  }
 0x512   :  { %5663 = vmatpush1.bf16.msra.mxu1 %v7521_v43  ;;  %v7588_v43 = vld [vmem:[%s10378_s6 + $0x58c] ss:$28 sps:$4 sm:$0xff]  }
 0x513   :  { %6859 = vmatpush3.bf16.msra.mxu0 %v7525_v47  ;;  %5664 = vmatprep.subr.bf16.mxu1 %v7528_v48  ;;  %v7589_v47 = vld [vmem:[%s10378_s6 + $0xc90] ss:$28 sps:$4 sm:$0xff]   ;;  %v7586_v48 = vld [vmem:[%s10378_s6 + $0x588] ss:$28 sps:$4 sm:$0xff]  }
 0x514   :  { %6860 = vmatprep.subr.bf16.mxu0 %v7529_v49  ;;  %v7590_v49 = vld [vmem:[%s10378_s6 + $0xad0] ss:$28 sps:$4 sm:$0xff]  }
 0x516   :  { %5665 = vmatpush1.bf16.msra.mxu1 %v7526_v50  ;;  %v7593_v50 = vld [vmem:[%s10378_s6 + $0x5c4] ss:$28 sps:$4 sm:$0xff]  }
 0x517   :  { %6861 = vmatpush3.bf16.msra.mxu0 %v7530_v7  ;;  %5666 = vmatprep.subr.bf16.mxu1 %v7533_v51  ;;  %v7594_v7 = vld [vmem:[%s10378_s6 + $0xcc8] ss:$28 sps:$4 sm:$0xff]   ;;  %v7591_v51 = vld [vmem:[%s10378_s6 + $0x5c0] ss:$28 sps:$4 sm:$0xff]  }
 0x518   :  { %6862 = vmatprep.subr.bf16.mxu0 %v7534_v55  ;;  %v7595_v55 = vld [vmem:[%s10378_s6 + $0xb08] ss:$28 sps:$4 sm:$0xff]  }
 0x51a   :  { %5667 = vmatpush1.bf16.msra.mxu1 %v7531_v56  ;;  %v7598_v56 = vld [vmem:[%s10378_s6 + $0x5fc] ss:$28 sps:$4 sm:$0xff]  }
 0x51b   :  { %6863 = vmatpush3.bf16.msra.mxu0 %v7535_v21  ;;  %5668 = vmatprep.subr.bf16.mxu1 %v7538_v57  ;;  %v7599_v21 = vld [vmem:[%s10378_s6 + $0xd00] ss:$28 sps:$4 sm:$0xff]   ;;  %v7596_v57 = vld [vmem:[%s10378_s6 + $0x5f8] ss:$28 sps:$4 sm:$0xff]  }
 0x51c   :  { %6864 = vmatprep.subr.bf16.mxu0 %v7539_v58  ;;  %v7600_v58 = vld [vmem:[%s10378_s6 + $0xb40] ss:$28 sps:$4 sm:$0xff]  }
 0x51e   :  { %5669 = vmatpush1.bf16.msra.mxu1 %v7536_v59  ;;  %v7603_v59 = vld [vmem:[%s10378_s6 + $0x634] ss:$28 sps:$4 sm:$0xff]  }
 0x51f   :  { %6865 = vmatpush3.bf16.msra.mxu0 %v7540_v0  ;;  %5679 = vmatprep.subr.bf16.mxu1 %v7543_v1  ;;  %v7604_v0 = vld [vmem:[%s10378_s6 + $0xd38] ss:$28 sps:$4 sm:$0xff]   ;;  %v7601_v1 = vld [vmem:[%s10378_s6 + $0x630] ss:$28 sps:$4 sm:$0xff]  }
 0x520   :  { %6872 = vmatprep.subr.bf16.mxu0 %v7544_v2  ;;  %v7605_v2 = vld [vmem:[%s10378_s6 + $0xb78] ss:$28 sps:$4 sm:$0xff]  }
 0x521   :  { %5671 = vmatmul.mubr.bf16.vlgmr.msra.gmra.mrb[12].mxu1 %v9116_v27  ;;  %v7553_v27 = vld [vmem:[%s10378_s6 + $0x404] ss:$28 sps:$4 sm:$0xff]  }
 0x522   :  { %5875 = vmatmul.mubr.bf16.vlgmr.msra.gmra.mrb[28].mxu0 %v9321_v44  ;;  %5680 = vmatpush1.bf16.msra.mxu1 %v7541_v3  ;;  %v7608_v3 = vld [vmem:[%s10378_s6 + $0x66c] ss:$28 sps:$4 sm:$0xff]  }
 0x523   :  { %5711 = vmatprep.mubr.bf16.mxu1 %v9126_v30  ;;  %6873 = vmatpush3.bf16.msra.mxu0 %v7545_v4  ;;  %v7551_v30 = vld [vmem:[%s10378_s6 + $0x400] ss:$28 sps:$4 sm:$0xff]   ;;  %v7609_v4 = vld [vmem:[%s10378_s6 + $0xd70] ss:$28 sps:$4 sm:$0xff]  }
 0x524   :  { %5914 = vmatprep.mubr.bf16.mxu0 %v9523_v17  ;;  %5681 = vmatprep.subr.bf16.mxu1 %v7548_v5  ;;  %v7606_v5 = vld [vmem:[%s10378_s6 + $0x668] ss:$28 sps:$4 sm:$0xff]  }
 0x525   :  { %6874 = vmatprep.subr.bf16.mxu0 %v7549_v10  ;;  %v7610_v10 = vld [vmem:[%s10378_s6 + $0xbb0] ss:$28 sps:$4 sm:$0xff]  }
 0x526   :  { %5682 = vmatpush1.bf16.msra.mxu1 %v7546_v35  ;;  %v7613_v35 = vld [vmem:[%s10378_s6 + $0x6a4] ss:$28 sps:$4 sm:$0xff]  }
 0x527   :  { %6875 = vmatpush3.bf16.msra.mxu0 %v7550_v60  ;;  %5683 = vmatprep.subr.bf16.mxu1 %v7553_v27  ;;  %v7614_v60 = vld [vmem:[%s10378_s6 + $0xda8] ss:$28 sps:$4 sm:$0xff]   ;;  %v7611_v27 = vld [vmem:[%s10378_s6 + $0x6a0] ss:$28 sps:$4 sm:$0xff]  }
 0x528   :  { %6876 = vmatprep.subr.bf16.mxu0 %v7554_v8  ;;  %v7615_v8 = vld [vmem:[%s10378_s6 + $0xbe8] ss:$28 sps:$4 sm:$0xff]  }
 0x52a   :  { %5684 = vmatpush1.bf16.msra.mxu1 %v7551_v30  ;;  %v7618_v30 = vld [vmem:[%s10378_s6 + $0x6dc] ss:$28 sps:$4 sm:$0xff]  }
 0x52b   :  { %6877 = vmatpush3.bf16.msra.mxu0 %v7555_v12  ;;  %5685 = vmatprep.subr.bf16.mxu1 %v7558_v13  ;;  %v7619_v12 = vld [vmem:[%s10378_s6 + $0xde0] ss:$28 sps:$4 sm:$0xff]   ;;  %v7616_v13 = vld [vmem:[%s10378_s6 + $0x6d8] ss:$28 sps:$4 sm:$0xff]  }
 0x52c   :  { %6878 = vmatprep.subr.bf16.mxu0 %v7559_v15  ;;  %v7620_v15 = vld [vmem:[%s10378_s6 + $0xc20] ss:$28 sps:$4 sm:$0xff]  }
 0x52e   :  { %5686 = vmatpush1.bf16.msra.mxu1 %v7556_v16  ;;  %v7623_v16 = vld [vmem:[%s10378_s6 + $0x714] ss:$28 sps:$4 sm:$0xff]  }
 0x52f   :  { %6879 = vmatpush3.bf16.msra.mxu0 %v7560_v53  ;;  %5687 = vmatprep.subr.bf16.mxu1 %v7563_v61  ;;  %v7621_v53 = vld [vmem:[%s10378_s6 + $0x710] ss:$28 sps:$4 sm:$0xff]  }
 0x530   :  { %6880 = vmatprep.subr.bf16.mxu0 %v7564_v18  ;;  %v7626_v61 = vld [vmem:[%s10378_s6 + $0x74c] ss:$28 sps:$4 sm:$0xff]  }
 0x531   :  { %v7624_v18 = vld [vmem:[%s10378_s6 + $0x748] ss:$28 sps:$4 sm:$0xff]  }
 0x532   :  { %5688 = vmatpush1.bf16.msra.mxu1 %v7561_v20  ;;  %v7629_v20 = vld [vmem:[%s10378_s6 + $0x784] ss:$28 sps:$4 sm:$0xff]  }
 0x533   :  { %6881 = vmatpush3.bf16.msra.mxu0 %v7565_v24  ;;  %5689 = vmatprep.subr.bf16.mxu1 %v7568_v25  ;;  %v7627_v24 = vld [vmem:[%s10378_s6 + $0x780] ss:$28 sps:$4 sm:$0xff]   ;;  %v7635_v25 = vld [vmem:[%s10378_s6 + $0x7f4] ss:$28 sps:$4 sm:$0xff]  }
 0x534   :  { %6882 = vmatprep.subr.bf16.mxu0 %v7569_v26  ;;  %v7633_v26 = vld [vmem:[%s10378_s6 + $0x7f0] ss:$28 sps:$4 sm:$0xff]  }
 0x536   :  { %5690 = vmatpush1.bf16.msra.mxu1 %v7566_v28  ;;  %v7638_v28 = vld [vmem:[%s10378_s6 + $0x82c] ss:$28 sps:$4 sm:$0xff]  }
 0x537   :  { %6883 = vmatpush3.bf16.msra.mxu0 %v7570_v29  ;;  %5691 = vmatprep.subr.bf16.mxu1 %v7573_v31  ;;  %v7636_v29 = vld [vmem:[%s10378_s6 + $0x828] ss:$28 sps:$4 sm:$0xff]  }
 0x538   :  { %6884 = vmatprep.subr.bf16.mxu0 %v7574_v32  ;;  %v7641_v31 = vld [vmem:[%s10378_s6 + $0x864] ss:$28 sps:$4 sm:$0xff]  }
 0x539   :  { %v7639_v32 = vld [vmem:[%s10378_s6 + $0x860] ss:$28 sps:$4 sm:$0xff]  }
 0x53a   :  { %5692 = vmatpush1.bf16.msra.mxu1 %v7571_v33  ;;  %v7644_v33 = vld [vmem:[%s10378_s6 + $0x89c] ss:$28 sps:$4 sm:$0xff]  }
 0x53b   :  { %6885 = vmatpush3.bf16.msra.mxu0 %v7575_v11  ;;  %5693 = vmatprep.subr.bf16.mxu1 %v7578_v34  ;;  %v7642_v11 = vld [vmem:[%s10378_s6 + $0x898] ss:$28 sps:$4 sm:$0xff]  }
 0x53c   :  { %6886 = vmatprep.subr.bf16.mxu0 %v7579_v36  ;;  %v7647_v34 = vld [vmem:[%s10378_s6 + $0x8d4] ss:$28 sps:$4 sm:$0xff]  }
 0x53d   :  { %v7645_v36 = vld [vmem:[%s10378_s6 + $0x8d0] ss:$28 sps:$4 sm:$0xff]  }
 0x53e   :  { %5694 = vmatpush1.bf16.msra.mxu1 %v7576_v37  ;;  %v7650_v37 = vld [vmem:[%s10378_s6 + $0x90c] ss:$28 sps:$4 sm:$0xff]  }
 0x53f   :  { %6887 = vmatpush3.bf16.msra.mxu0 %v7580_v38  ;;  %5695 = vmatprep.subr.bf16.mxu1 %v7583_v63  ;;  %v7648_v38 = vld [vmem:[%s10378_s6 + $0x908] ss:$28 sps:$4 sm:$0xff]  }
 0x540   :  { %6894 = vmatprep.subr.bf16.mxu0 %v7584_v39  ;;  %v7653_v63 = vld [vmem:[%s10378_s6 + $0x944] ss:$28 sps:$4 sm:$0xff]  }
 0x541   :  { %v7651_v39 = vld [vmem:[%s10378_s6 + $0x940] ss:$28 sps:$4 sm:$0xff]  }
 0x542   :  { %5915 = vmatmul.mubr.bf16.vlgmr.msra.gmra.mrb[32].mxu0 %v9531_v19  ;;  %5696 = vmatpush1.bf16.msra.mxu1 %v7581_v40  ;;  %v7656_v40 = vld [vmem:[%s10378_s6 + $0x97c] ss:$28 sps:$4 sm:$0xff]  }
 0x543   :  { %6895 = vmatpush3.bf16.msra.mxu0 %v7585_v42  ;;  %5954 = vmatprep.mubr.bf16.mxu0 %v9541_v23  ;;  %v7654_v42 = vld [vmem:[%s10378_s6 + $0x978] ss:$28 sps:$4 sm:$0xff]  }
 0x544   :  { %5697 = vmatprep.subr.bf16.mxu1 %v7588_v43  ;;  %6896 = vmatprep.subr.bf16.mxu0 %v7589_v47  ;;  %v7659_v43 = vld [vmem:[%s10378_s6 + $0x9b4] ss:$28 sps:$4 sm:$0xff]  }
 0x545   :  { %v7657_v47 = vld [vmem:[%s10378_s6 + $0x9b0] ss:$28 sps:$4 sm:$0xff]  }
 0x546   :  { %5698 = vmatpush1.bf16.msra.mxu1 %v7586_v48  ;;  %v7662_v48 = vld [vmem:[%s10378_s6 + $0x9ec] ss:$28 sps:$4 sm:$0xff]  }
 0x547   :  { %6897 = vmatpush3.bf16.msra.mxu0 %v7590_v49  ;;  %5699 = vmatprep.subr.bf16.mxu1 %v7593_v50  ;;  %v7660_v49 = vld [vmem:[%s10378_s6 + $0x9e8] ss:$28 sps:$4 sm:$0xff]  }
 0x548   :  { %6898 = vmatprep.subr.bf16.mxu0 %v7594_v7  ;;  %v7665_v50 = vld [vmem:[%s10378_s6 + $0xa24] ss:$28 sps:$4 sm:$0xff]  }
 0x549   :  { %v7663_v7 = vld [vmem:[%s10378_s6 + $0xa20] ss:$28 sps:$4 sm:$0xff]  }
 0x54a   :  { %5700 = vmatpush1.bf16.msra.mxu1 %v7591_v51  ;;  %v7668_v51 = vld [vmem:[%s10378_s6 + $0xa5c] ss:$28 sps:$4 sm:$0xff]  }
 0x54b   :  { %6899 = vmatpush3.bf16.msra.mxu0 %v7595_v55  ;;  %5701 = vmatprep.subr.bf16.mxu1 %v7598_v56  ;;  %v7666_v55 = vld [vmem:[%s10378_s6 + $0xa58] ss:$28 sps:$4 sm:$0xff]  }
 0x54c   :  { %6900 = vmatprep.subr.bf16.mxu0 %v7599_v21  ;;  %v7671_v56 = vld [vmem:[%s10378_s6 + $0xa94] ss:$28 sps:$4 sm:$0xff]  }
 0x54d   :  { %v7669_v21 = vld [vmem:[%s10378_s6 + $0xa90] ss:$28 sps:$4 sm:$0xff]  }
 0x54e   :  { %5702 = vmatpush1.bf16.msra.mxu1 %v7596_v57  ;;  %v7674_v57 = vld [vmem:[%s10378_s6 + $0xacc] ss:$28 sps:$4 sm:$0xff]  }
 0x54f   :  { %6901 = vmatpush3.bf16.msra.mxu0 %v7600_v58  ;;  %5703 = vmatprep.subr.bf16.mxu1 %v7603_v59  ;;  %v7672_v58 = vld [vmem:[%s10378_s6 + $0xac8] ss:$28 sps:$4 sm:$0xff]  }
 0x550   :  { %6902 = vmatprep.subr.bf16.mxu0 %v7604_v0  ;;  %v7677_v59 = vld [vmem:[%s10378_s6 + $0xb04] ss:$28 sps:$4 sm:$0xff]  }
 0x551   :  { %v7675_v0 = vld [vmem:[%s10378_s6 + $0xb00] ss:$28 sps:$4 sm:$0xff]  }
 0x552   :  { %5704 = vmatpush1.bf16.msra.mxu1 %v7601_v1  ;;  %v7683_v1 = vld [vmem:[%s10378_s6 + $0xb74] ss:$28 sps:$4 sm:$0xff]  }
 0x553   :  { %6903 = vmatpush3.bf16.msra.mxu0 %v7605_v2  ;;  %5705 = vmatprep.subr.bf16.mxu1 %v7608_v3  ;;  %v7681_v2 = vld [vmem:[%s10378_s6 + $0xb70] ss:$28 sps:$4 sm:$0xff]   ;;  %v10258_v3 = vld [vmem:[%s10379_s7] sm:$0x7f] }
 0x554   :  { %6904 = vmatprep.subr.bf16.mxu0 %v7609_v4  ;;  %v7686_v4 = vld [vmem:[%s10378_s6 + $0xbac] ss:$28 sps:$4 sm:$0xff]  }
 0x556   :  { %5706 = vmatpush1.bf16.msra.mxu1 %v7606_v5  ;;  %v2974_v5 = vrot.slane %v10258_v3, %v8282_v52 }
 0x557   :  { %6905 = vmatpush3.bf16.msra.mxu0 %v7610_v10  ;;  %5707 = vmatprep.subr.bf16.mxu1 %v7613_v35  ;;  %v2982_v10 = vrot.slane %v10258_v3, %v8472_v62  ;;  %v2978_v35 = vrot.slane %v10258_v3, %v8290_v54 }
 0x558   :  { %6906 = vmatprep.subr.bf16.mxu0 %v7614_v60  ;;  %v2986_v60 = vrot.slane %v10258_v3, %v8401_v6  ;;  %v7687_v6 = vld [vmem:[%s10378_s6 + $0xbe0] ss:$28 sps:$4 sm:$0xff]  }
 0x55a   :  { %5708 = vmatpush1.bf16.msra.mxu1 %v7611_v27  ;;  %v7684_v27 = vld [vmem:[%s10378_s6 + $0xba8] ss:$28 sps:$4 sm:$0xff]  }
 0x55b   :  { %6907 = vmatpush3.bf16.msra.mxu0 %v7615_v8  ;;  %5709 = vmatprep.subr.bf16.mxu1 %v7618_v30  ;;  %v7689_v8 = vld [vmem:[%s10378_s6 + $0xbe4] ss:$28 sps:$4 sm:$0xff]  }
 0x55c   :  { %6908 = vmatprep.subr.bf16.mxu0 %v7619_v12 }
 0x55e   :  { %5710 = vmatpush1.bf16.msra.mxu1 %v7616_v13 }
 0x55f   :  { %6909 = vmatpush3.bf16.msra.mxu0 %v7620_v15  ;;  %5720 = vmatprep.subr.bf16.mxu1 %v7623_v16 }
 0x561   :  { %5712 = vmatmul.mubr.bf16.vlgmr.msra.gmra.mrb[12].mxu1 %v9321_v44  ;;  %v7632_v44 = vld [vmem:[%s10378_s6 + $0x7bc] ss:$28 sps:$4 sm:$0xff]  }
 0x562   :  { %5955 = vmatmul.mubr.bf16.vlgmr.msra.gmra.mrb[36].mxu0 %v9735_v46  ;;  %5721 = vmatpush1.bf16.msra.mxu1 %v7621_v53 }
 0x563   :  { %5752 = vmatprep.mubr.bf16.mxu1 %v9523_v17  ;;  %5722 = vmatprep.subr.bf16.mxu1 %v7626_v61  ;;  %v7630_v17 = vld [vmem:[%s10378_s6 + $0x7b8] ss:$28 sps:$4 sm:$0xff]  }
 0x566   :  { %5723 = vmatpush1.bf16.msra.mxu1 %v7624_v18 }
 0x567   :  { %5724 = vmatprep.subr.bf16.mxu1 %v7629_v20 }
 0x56a   :  { %5725 = vmatpush1.bf16.msra.mxu1 %v7627_v24 }
 0x56b   :  { %5726 = vmatprep.subr.bf16.mxu1 %v7632_v44 }
 0x56e   :  { %5727 = vmatpush1.bf16.msra.mxu1 %v7630_v17  ;;  %v7692_v17 = vld [vmem:[%s10378_s6 + $0xc1c] ss:$28 sps:$4 sm:$0xff]  }
 0x56f   :  { %5728 = vmatprep.subr.bf16.mxu1 %v7635_v25 }
 0x572   :  { %5729 = vmatpush1.bf16.msra.mxu1 %v7633_v26 }
 0x573   :  { %5730 = vmatprep.subr.bf16.mxu1 %v7638_v28 }
 0x576   :  { %5731 = vmatpush1.bf16.msra.mxu1 %v7636_v29 }
 0x577   :  { %5732 = vmatprep.subr.bf16.mxu1 %v7641_v31 }
 0x57a   :  { %5733 = vmatpush1.bf16.msra.mxu1 %v7639_v32 }
 0x57b   :  { %5734 = vmatprep.subr.bf16.mxu1 %v7644_v33  ;;  %v7690_v33 = vld [vmem:[%s10378_s6 + $0xc18] ss:$28 sps:$4 sm:$0xff]  }
 0x57e   :  { %5735 = vmatpush1.bf16.msra.mxu1 %v7642_v11  ;;  %v7695_v11 = vld [vmem:[%s10378_s6 + $0xc54] ss:$28 sps:$4 sm:$0xff]  }
 0x57f   :  { %5736 = vmatprep.subr.bf16.mxu1 %v7647_v34  ;;  %v7693_v34 = vld [vmem:[%s10378_s6 + $0xc50] ss:$28 sps:$4 sm:$0xff]  }
 0x582   :  { %5737 = vmatpush1.bf16.msra.mxu1 %v7645_v36  ;;  %v7698_v36 = vld [vmem:[%s10378_s6 + $0xc8c] ss:$28 sps:$4 sm:$0xff]  }
 0x583   :  { %5738 = vmatprep.subr.bf16.mxu1 %v7650_v37  ;;  %v7696_v37 = vld [vmem:[%s10378_s6 + $0xc88] ss:$28 sps:$4 sm:$0xff]  }
 0x586   :  { %5739 = vmatpush1.bf16.msra.mxu1 %v7648_v38  ;;  %v7701_v38 = vld [vmem:[%s10378_s6 + $0xcc4] ss:$28 sps:$4 sm:$0xff]  }
 0x587   :  { %5740 = vmatprep.subr.bf16.mxu1 %v7653_v63 }
 0x58a   :  { %5741 = vmatpush1.bf16.msra.mxu1 %v7651_v39 }
 0x58b   :  { %5742 = vmatprep.subr.bf16.mxu1 %v7656_v40 }
 0x58e   :  { %5743 = vmatpush1.bf16.msra.mxu1 %v7654_v42  ;;  %v7699_v42 = vld [vmem:[%s10378_s6 + $0xcc0] ss:$28 sps:$4 sm:$0xff]  }
 0x58f   :  { %5744 = vmatprep.subr.bf16.mxu1 %v7659_v43 }
 0x592   :  { %5745 = vmatpush1.bf16.msra.mxu1 %v7657_v47 }
 0x593   :  { %5746 = vmatprep.subr.bf16.mxu1 %v7662_v48  ;;  %v7704_v48 = vld [vmem:[%s10378_s6 + $0xcfc] ss:$28 sps:$4 sm:$0xff]  }
 0x596   :  { %5747 = vmatpush1.bf16.msra.mxu1 %v7660_v49 }
 0x597   :  { %5748 = vmatprep.subr.bf16.mxu1 %v7665_v50 }
 0x59a   :  { %5749 = vmatpush1.bf16.msra.mxu1 %v7663_v7 }
 0x59b   :  { %5750 = vmatprep.subr.bf16.mxu1 %v7668_v51  ;;  %v7702_v51 = vld [vmem:[%s10378_s6 + $0xcf8] ss:$28 sps:$4 sm:$0xff]  }
 0x59e   :  { %5751 = vmatpush1.bf16.msra.mxu1 %v7666_v55  ;;  %v7707_v55 = vld [vmem:[%s10378_s6 + $0xd34] ss:$28 sps:$4 sm:$0xff]  }
 0x59f   :  { %5761 = vmatprep.subr.bf16.mxu1 %v7671_v56  ;;  %v7705_v56 = vld [vmem:[%s10378_s6 + $0xd30] ss:$28 sps:$4 sm:$0xff]  }
 0x5a1   :  { %5753 = vmatmul.mubr.bf16.vlgmr.msra.gmra.mrb[12].mxu1 %v9531_v19  ;;  %v7680_v19 = vld [vmem:[%s10378_s6 + $0xb3c] ss:$28 sps:$4 sm:$0xff]  }
 0x5a2   :  { %5762 = vmatpush1.bf16.msra.mxu1 %v7669_v21  ;;  %5793 = vmatprep.mubr.bf16.mxu1 %v9541_v23  ;;  %v7678_v23 = vld [vmem:[%s10378_s6 + $0xb38] ss:$28 sps:$4 sm:$0xff]   ;;  %v7710_v21 = vld [vmem:[%s10378_s6 + $0xd6c] ss:$28 sps:$4 sm:$0xff]  }
 0x5a3   :  { %5763 = vmatprep.subr.bf16.mxu1 %v7674_v57 }
 0x5a6   :  { %5764 = vmatpush1.bf16.msra.mxu1 %v7672_v58  ;;  %v7708_v58 = vld [vmem:[%s10378_s6 + $0xd68] ss:$28 sps:$4 sm:$0xff]  }
 0x5a7   :  { %5765 = vmatprep.subr.bf16.mxu1 %v7677_v59 }
 0x5aa   :  { %5766 = vmatpush1.bf16.msra.mxu1 %v7675_v0  ;;  %v7713_v0 = vld [vmem:[%s10378_s6 + $0xda4] ss:$28 sps:$4 sm:$0xff]  }
 0x5ab   :  { %5767 = vmatprep.subr.bf16.mxu1 %v7680_v19 }
 0x5ae   :  { %5768 = vmatpush1.bf16.msra.mxu1 %v7678_v23 }
 0x5af   :  { %5769 = vmatprep.subr.bf16.mxu1 %v7683_v1 }
 0x5b2   :  { %5770 = vmatpush1.bf16.msra.mxu1 %v7681_v2 }
 0x5b3   :  { %5771 = vmatprep.subr.bf16.mxu1 %v7686_v4 }
 0x5b4   :  { %v5467_v52 = vpop.f32.mrb[8].mxu1  ;;  %v5631_v30 = vpop.f32.mrb[20].mxu0 }
 0x5b5   :  { %v6954_v12 = vadd.f32 %v5467_v52, %v2974_v5  ;;  %v6956_v62 = vadd.f32 %v5631_v30, %v2982_v10  ;;  %v5469_v13 = vpop.f32.mrb[9].mxu1  ;;  %v5633_v15 = vpop.f32.mrb[21].mxu0  ;;  %v7711_v5 = vld [vmem:[%s10378_s6 + $0xda0] ss:$28 sps:$4 sm:$0xff]  }
 0x5b6   :  { %v6955_v16 = vadd.f32 %v5469_v13, %v2978_v35  ;;  %v6957_v54 = vadd.f32 %v5633_v15, %v2986_v60  ;;  %v5471_v53 = vpop.f32.mrb[10].mxu1  ;;  %v5635_v61 = vpop.f32.mrb[22].mxu0  ;;  %5772 = vmatpush1.bf16.msra.mxu1 %v7684_v27  ;;  %v7716_v27 = vld [vmem:[%s10378_s6 + $0xddc] ss:$28 sps:$4 sm:$0xff]   ;;  %v2998_v13 = vrot.slane %v10258_v3, %v819_v22 }
 0x5b7   :  { %v5962_v18 = vsub.f32 0.0, %v6954_v12  ;;  %v5964_v20 = vsub.f32 0.0, %v6956_v62  ;;  %v5472_v24 = vpop.f32.mrb[11].mxu1  ;;  %v5636_v44 = vpop.f32.mrb[23].mxu0  ;;  %5773 = vmatprep.subr.bf16.mxu1 %v7689_v8  ;;  %v7714_v12 = vld [vmem:[%s10378_s6 + $0xdd8] ss:$28 sps:$4 sm:$0xff]  }
 0x5b8   :  { %v5963_v25 = vsub.f32 0.0, %v6955_v16  ;;  %v5965_v26 = vsub.f32 0.0, %v6957_v54  ;;  %s7798_s6 = smov [#allocation4]  }
 0x5b9   :  { %v5969_v28 = vmul.f32 1.442695, %v5962_v18  ;;  %v5973_v29 = vmul.f32 1.442695, %v5964_v20  ;;  %s6062_s30 = sshll.u32 %s7798_s6, 4  ;;  %s6063_s30 = int_to_ptr.vmem [resolvable:$true] %s6062_s30 }
 0x5ba   :  { %v5971_v31 = vmul.f32 1.442695, %v5963_v25  ;;  %v5975_v32 = vmul.f32 1.442695, %v5965_v26  ;;  %5774 = vmatpush1.bf16.msra.mxu1 %v7687_v6  ;;  %s7747_s10 = scalar_lea.vmem %s6063_s30, 32  ;;  %p7752_p1 = scmp.lt.s32.totalorder %s6063_s30, %s6063_s30 }
 0x5bb   :  { %7717 = vpow2.f32 %v5969_v28  ;;  %5775 = vmatprep.subr.bf16.mxu1 %v7692_v17  ;;  %p7748_p0 = scmp.ne.s32.totalorder %s6063_s30, %s7747_s10  ;;  %p7753_p2 = scmp.lt.s32.totalorder %s7747_s10, %s7747_s10 }
 0x5bc   :  { %7719 = vpow2.f32 %v5973_v29 }
 0x5bd   :  { %7721 = vpow2.f32 %v5971_v31  ;;  %p7754_p3 = por %p7753_p2, %p7752_p1 }
 0x5be   :  { %7723 = vpow2.f32 %v5975_v32  ;;  %5776 = vmatpush1.bf16.msra.mxu1 %v7690_v33 }
 0x5bf   :  { %5777 = vmatprep.subr.bf16.mxu1 %v7695_v11  ;;  %p7755_p4 = pnand %p7754_p3, %p7748_p0 }
 0x5c2   :  { %5778 = vmatpush1.bf16.msra.mxu1 %v7693_v34 }
 0x5c3   :  { %5779 = vmatprep.subr.bf16.mxu1 %v7698_v36 }
 0x5c5   :  { %v7718_v63 = vpop.eup %7717 }
 0x5c6   :  { %v7720_v39 = vpop.eup %7719  ;;  %v5983_v40 = vadd.f32 1.0, %v7718_v63  ;;  %5780 = vmatpush1.bf16.msra.mxu1 %v7696_v37 }
 0x5c7   :  { %v7722_v43 = vpop.eup %7721  ;;  %v5985_v47 = vadd.f32 1.0, %v7720_v39  ;;  %5781 = vmatprep.subr.bf16.mxu1 %v7701_v38 }
 0x5c8   :  { %v7724_v49 = vpop.eup %7723  ;;  %7725 = vrcp.f32 %v5983_v40  ;;  %v5984_v50 = vadd.f32 1.0, %v7722_v43 }
 0x5c9   :  { %7727 = vrcp.f32 %v5985_v47  ;;  %v5986_v7 = vadd.f32 1.0, %v7724_v49 }
 0x5ca   :  { %7729 = vrcp.f32 %v5984_v50  ;;  %5782 = vmatpush1.bf16.msra.mxu1 %v7699_v42 }
 0x5cb   :  { %7731 = vrcp.f32 %v5986_v7  ;;  %5783 = vmatprep.subr.bf16.mxu1 %v7704_v48 }
 0x5ce   :  { %5784 = vmatpush1.bf16.msra.mxu1 %v7702_v51 }
 0x5cf   :  { %5785 = vmatprep.subr.bf16.mxu1 %v7707_v55 }
 0x5d2   :  { %v7726_v57 = vpop.eup %7725  ;;  %5786 = vmatpush1.bf16.msra.mxu1 %v7705_v56 }
 0x5d3   :  { %v7728_v59 = vpop.eup %7727  ;;  %5787 = vmatprep.subr.bf16.mxu1 %v7710_v21 }
 0x5d4   :  { %v7730_v19 = vpop.eup %7729 }
 0x5d5   :  { %v7732_v23 = vpop.eup %7731  ;;  %v6844_v1 = vpop.f32.mrb[24].mxu0  ;;  %v6004_v2 = vcombine.low %v7726_v57, %v7730_v19 }
 0x5d6   :  { %v6845_v4 = vpop.f32.mrb[25].mxu0  ;;  %5788 = vmatpush1.bf16.msra.mxu1 %v7708_v58  ;;  %v6005_v10 = vcombine.low %v7728_v59, %v7732_v23 }
 0x5d7   :  { %v6846_v35 = vadd.f32 %v6845_v4, %v6844_v1  ;;  %v6847_v60 = vpop.f32.mrb[26].mxu0  ;;  %5789 = vmatprep.subr.bf16.mxu1 %v7713_v0  ;;  %v6012_v8 = vrot.slane %v6004_v2, %v7872_v14 }
 0x5d8   :  { %v6848_v52 = vpop.f32.mrb[27].mxu0  ;;  %v6019_v30 = vrot.slane %v6005_v10, %v7872_v14 }
 0x5d9   :  { %v5837_v54 = vadd.f32 %v6846_v35, %v2998_v13 }
 0x5da   :  { %5790 = vmatpush1.bf16.msra.mxu1 %v7711_v5  ;;  %v6020_v62 = vcombine.low %v6012_v8, %v6019_v30 }
 0x5db   :  { %5791 = vmatprep.subr.bf16.mxu1 %v7716_v27 }
 0x5dc   :  { %6039 = vst [vmem:[#allocation2] sm:$0xff] %v6020_v62 }
 0x5de   :  { %5792 = vmatpush1.bf16.msra.mxu1 %v7714_v12 }
 0x5e1   :  { %5794 = vmatmul.mubr.bf16.vlgmr.msra.gmra.mrb[12].mxu1 %v9735_v46 }
 0x5f5   :  { %v6866_v15 = vpop.f32.mrb[28].mxu0 }
 0x5f6   :  { %v6867_v16 = vpop.f32.mrb[29].mxu0 }
 0x5f7   :  { %v6868_v53 = vadd.f32 %v6867_v16, %v6866_v15  ;;  %v6869_v61 = vpop.f32.mrb[30].mxu0 }
 0x5f8   :  { %v6870_v6 = vpop.f32.mrb[31].mxu0 }
 0x5f9   :  { %v5877_v18 = vadd.f32 %v6868_v53, %v5837_v54 }
 0x615   :  { %v6888_v20 = vpop.f32.mrb[32].mxu0 }
 0x616   :  { %v6889_v24 = vpop.f32.mrb[33].mxu0 }
 0x617   :  { %v6890_v44 = vadd.f32 %v6889_v24, %v6888_v20  ;;  %v6891_v17 = vpop.f32.mrb[34].mxu0 }
 0x618   :  { %v6892_v25 = vpop.f32.mrb[35].mxu0 }
 0x619   :  { %v5917_v26 = vadd.f32 %v6890_v44, %v5877_v18 }
 0x635   :  { %v6910_v28 = vpop.f32.mrb[36].mxu0 }
 0x636   :  { %v6911_v29 = vpop.f32.mrb[37].mxu0 }
 0x637   :  { %v6912_v46 = vadd.f32 %v6911_v29, %v6910_v28  ;;  %v6913_v31 = vpop.f32.mrb[38].mxu0 }
 0x638   :  { %v6914_v32 = vpop.f32.mrb[39].mxu0 }
 0x639   :  { %v5957_v33 = vadd.f32 %v6912_v46, %v5917_v26 }
 0x63a   :  { %7758 = shalt.err (!%p7755_p4)
}
 0x63b   :  { %s7759_s12 = scalar_lea.hbm %s10381_s9, 32 }
 0x63c   :  { %p7760_p5 = scmp.ne.s32.totalorder %s10381_s9, %s7759_s12  ;;  %p7763_p6 = scmp.lt.u32.totalorder %s7759_s12, %s10381_s9 }
 0x63e   :  { %p7765_p7 = pnand %p7763_p6, %p7760_p5 }
 0x640   :  { %7768 = shalt.err (!%p7765_p7)
}
 0x641   :  { %6065 = dma.vmem_to_hbm [thread:$0]  %s6063_s30, 32, %s10381_s9, [#allocation5]   ;;  %v5968_v22 = vsub.f32 0.0, %v5957_v33  ;;  %v2990_v11 = vrot.slane %v10258_v3, %v811_v41  ;;  %v2994_v36 = vrot.slane %v10258_v3, %v815_v45  ;;  %vm6040_vm11 = vcmask 1041408  }
 0x642   :  { %vm6041_vm12 = vcmask 1043458   ;;  %vm6043_vm14 = vcmask 128004   ;;  %s7799_s9 = smov [#allocation2]  }
 0x643   :  { %v5981_v34 = vmul.f32 1.442695, %v5968_v22  ;;  %vm6042_vm13 = vmor %vm6041_vm12, %vm6040_vm11  ;;  %s6052_s19 = sshll.u32 %s7799_s9, 4  ;;  %s6053_s19 = int_to_ptr.vmem [resolvable:$true] %s6052_s19 }
 0x644   :  { %vm6044_vm15 = vmor %vm6043_vm14, %vm6042_vm13  ;;  %s7769_s0 = scalar_lea.vmem %s6053_s19, 224  ;;  %p7774_p9 = scmp.lt.s32.totalorder %s6053_s19, %s6053_s19 }
 0x645   :  { %7733 = vpow2.f32 %v5981_v34  ;;  %p7770_p8 = scmp.ne.s32.totalorder %s6053_s19, %s7769_s0  ;;  %p7775_p10 = scmp.lt.s32.totalorder %s7769_s0, %s7769_s0 }
 0x647   :  { %p7776_p11 = por %p7775_p10, %p7774_p9 }
 0x649   :  { %p7777_p12 = pnand %p7776_p11, %p7770_p8 }
 0x64f   :  { %v7734_v50 = vpop.eup %7733 }
 0x650   :  { %v5989_v41 = vadd.f32 1.0, %v7734_v50 }
 0x6b4   :  { %v5795_v37 = vpop.f32.mrb[12].mxu1 }
 0x6b5   :  { %v6958_v38 = vadd.f32 %v5795_v37, %v2990_v11  ;;  %v5797_v63 = vpop.f32.mrb[13].mxu1 }
 0x6b6   :  { %v6959_v39 = vadd.f32 %v5797_v63, %v2994_v36  ;;  %v5799_v40 = vpop.f32.mrb[14].mxu1 }
 0x6b7   :  { %v5966_v42 = vsub.f32 0.0, %v6958_v38  ;;  %v5800_v43 = vpop.f32.mrb[15].mxu1 }
 0x6b8   :  { %v5967_v47 = vsub.f32 0.0, %v6959_v39 }
 0x6b9   :  { %v5977_v48 = vmul.f32 1.442695, %v5966_v42 }
 0x6ba   :  { %v5979_v49 = vmul.f32 1.442695, %v5967_v47 }
 0x6bb   :  { %7735 = vpow2.f32 %v5977_v48 }
 0x6bc   :  { %7737 = vpow2.f32 %v5979_v49 }
 0x6bd   :  { %7739 = vrcp.f32 %v5989_v41 }
 0x6c5   :  { %v7736_v7 = vpop.eup %7735 }
 0x6c6   :  { %v7738_v51 = vpop.eup %7737  ;;  %v5987_v9 = vadd.f32 1.0, %v7736_v7 }
 0x6c7   :  { %v5988_v45 = vadd.f32 1.0, %v7738_v51  ;;  %v7740_v3 = vpop.eup %7739 }
 0x6c8   :  { %7741 = vrcp.f32 %v5987_v9  ;;  %v6035_v58 = vrot.slane %v7740_v3, %v7872_v14 }
 0x6c9   :  { %7743 = vrcp.f32 %v5988_v45 }
 0x6d2   :  { %v7742_v55 = vpop.eup %7741 }
 0x6d3   :  { %v7744_v56 = vpop.eup %7743 }
 0x6d4   :  { %v6021_v21 = vcombine.low %v7742_v55, %v7744_v56 }
 0x6d6   :  { %v6028_v57 = vrot.slane %v6021_v21, %v7872_v14 }
 0x6d8   :  { %v6036_v59 = vcombine.low %v6028_v57, %v6035_v58 }
 0x6da   :  { %6045 = vst.msk [vmem:[#allocation2 + $0x8] sm:$0x3f] %vm6044_vm15, %v6036_v59 }
 0x6db   :  { %7780 = shalt.err (!%p7777_p12)
}
 0x6dc   :  { %s7781_s21 = scalar_lea.hbm %s10380_s8, 224 }
 0x6dd   :  { %p7782_p13 = scmp.ne.s32.totalorder %s10380_s8, %s7781_s21  ;;  %p7785_p0 = scmp.lt.u32.totalorder %s7781_s21, %s10380_s8 }
 0x6df   :  { %p7787_p1 = pnand %p7785_p0, %p7782_p13 }
 0x6e1   :  { %7790 = shalt.err (!%p7787_p1)
}
 0x6e2   :  { %6055 = dma.vmem_to_hbm [thread:$0]  %s6053_s19, 224, %s10380_s8, [#allocation3]  }
 0x6e3   :  { %7791 = dma.done.wait [#allocation3], 224  }
 0x6e4   :  { %7792 = vsyncadd [#allocation3], 4294967072 }
 0x6e5   :  { %7793 = dma.done.wait [#allocation5], 32  }
 0x6e6   :  { %7794 = vsyncadd [#allocation5], 4294967264 }
 0x6e7   :  { %6072 = vsyncpa [#allocation3], 1 }
 0x6e8   :  { %6073 = vsyncpa [#allocation5], 1 }

</bundles_post_ra>
